<compile_context>
chip_gen: v7x
topology: tpu7x:2x2x1
jax: 0.10.0
libtpu: 0.0.40
codegen_flags: <defaults>
</compile_context>

<pallas_src>
import functools
import math

import jax
import jax.numpy as jnp
from jax.experimental import pallas as pl
from jax.experimental.pallas import tpu as pltpu


def _encoder_kernel(xq_ref, xkv_ref, mask_ref,
                    wq_ref, bq_ref, wk_ref, bk_ref, wv_ref, bv_ref,
                    wo_ref, bo_ref, w1_ref, b1_ref, w2_ref, b2_ref,
                    g1_ref, be1_ref, g2_ref, be2_ref,
                    out_ref,
                    k_scr, v_scr,
                    *, num_heads, pre_norm, compute_dtype):
    f32 = jnp.float32
    cdt = compute_dtype

    xq = xq_ref[...]            # (TQ, E) f32 : query rows / residual stream
    add_mask = mask_ref[...]    # (1,  S) f32 : additive mask (0 or -1e9)

    TQ, E = xq.shape
    S = xkv_ref.shape[0]
    dh = E // num_heads
    scale = 1.0 / math.sqrt(dh)
    eps = 1e-5

    # Hoist parameter loads once (JAX does not CSE broadcast_in_dim).
    wq = wq_ref[...]; bq = bq_ref[...]
    wo = wo_ref[...]; bo = bo_ref[...]
    w1 = w1_ref[...]; b1 = b1_ref[...]
    w2 = w2_ref[...]; b2 = b2_ref[...]
    g1 = g1_ref[...]; be1 = be1_ref[...]
    g2 = g2_ref[...]; be2 = be2_ref[...]

    def layer_norm(h, gamma, beta):
        mu = jnp.mean(h, axis=-1, keepdims=True)
        var = jnp.mean((h - mu) * (h - mu), axis=-1, keepdims=True)
        return (h - mu) * jax.lax.rsqrt(var + eps) * gamma + beta

    # K / V projections depend only on the (full) sequence block, not on the
    # query tile -> compute them once per batch row and keep them in VMEM
    # scratch (query-tile axis is "arbitrary", so scratch persists across it).
    @pl.when(pl.program_id(1) == 0)
    def _compute_kv():
        xkv = xkv_ref[...]                                    # (S, E) f32
        akv = layer_norm(xkv, g1, be1) if pre_norm else xkv
        akv_c = akv.astype(cdt)
        wk = wk_ref[...]; bk = bk_ref[...]
        wv = wv_ref[...]; bv = bv_ref[...]
        k_scr[...] = (jnp.dot(akv_c, wk, preferred_element_type=f32)
                      + bk).astype(k_scr.dtype)
        v_scr[...] = (jnp.dot(akv_c, wv, preferred_element_type=f32)
                      + bv).astype(v_scr.dtype)

    def attention(aq):
        aq_c = aq.astype(cdt)
        # Fold 1/sqrt(dh) into q: saves H*TQ*S VALU multiplies on the scores.
        q = (jnp.dot(aq_c, wq, preferred_element_type=f32) + bq) * scale   # (TQ, E)

        # Batched-head layout (H, seq, dh): single contraction per step, no
        # per-head lane slices / concat.
        qh = pltpu.einshape("qhd->hqd", q.reshape(TQ, num_heads, dh).astype(cdt))
        kh = pltpu.einshape("khd->hkd", k_scr[...].reshape(S, num_heads, dh))
        vh = pltpu.einshape("khd->hkd", v_scr[...].reshape(S, num_heads, dh))

        s = jnp.einsum("hqd,hkd->hqk", qh, kh,
                       preferred_element_type=f32)            # (H, TQ, S) f32
        s = s + add_mask                                      # (1, S) broadcasts
        s = s - jnp.max(s, axis=-1, keepdims=True)
        p = jnp.exp(s)
        p = p * pl.reciprocal(jnp.sum(p, axis=-1, keepdims=True), approx=True)

        ctx = jnp.einsum("hqk,hkd->hqd", p.astype(cdt), vh,
                         preferred_element_type=f32)          # (H, TQ, dh)
        attn = pltpu.einshape("hqd->qhd", ctx).reshape(TQ, E)
        return jnp.dot(attn.astype(cdt), wo, preferred_element_type=f32) + bo

    def feed_forward(a):
        h = jnp.dot(a.astype(cdt), w1, preferred_element_type=f32) + b1
        h = jnp.maximum(h, 0.0)
        return jnp.dot(h.astype(cdt), w2, preferred_element_type=f32) + b2

    # dropout == identity (eval mode)
    if pre_norm:
        inter = xq + attention(layer_norm(xq, g1, be1))
        out = inter + feed_forward(layer_norm(inter, g2, be2))
    else:
        inter = layer_norm(xq + attention(xq), g1, be1)
        out = layer_norm(inter + feed_forward(inter), g2, be2)

    out_ref[...] = out.astype(out_ref.dtype)


def _vmem_limit_bytes(S, E, Hf, TQ, H, cdt_bytes):
    """Rough per-step VMEM estimate with 2x headroom, clamped to [32, 64] MiB."""
    f32 = 4
    io = 2 * (2 * TQ * E * f32 + S * E * f32 + S * f32)          # double-buffered blocks
    params = (4 * E * E + 2 * E * Hf) * cdt_bytes + (10 * E + Hf) * f32
    scratch = 2 * S * E * cdt_bytes
    work = 3 * H * TQ * S * f32 + 2 * TQ * Hf * f32 + 8 * TQ * E * f32 + 3 * S * E * f32
    est = 2 * (io + 2 * params + scratch + work)
    return int(min(64 * 2**20, max(32 * 2**20, est)))


def encoder_layer(embeddings, padding_mask, params, *, num_heads, pre_norm=False,
                  q_tile=None, compute_dtype=jnp.bfloat16):
    """embeddings: (B, S, E) f32;  padding_mask: (B, S) bool (True = pad)."""
    B, S, E = embeddings.shape
    Hf = params["w1"].shape[1]
    assert E % num_heads == 0
    TQ = S if q_tile is None else q_tile
    assert S % TQ == 0
    NQ = S // TQ

    # additive attention mask, broadcast over query rows and heads
    add_mask = jnp.where(padding_mask, -1e9, 0.0).astype(jnp.float32)[:, None, :]  # (B,1,S)

    cdt = jnp.dtype(compute_dtype)
    wq = params["wq"].astype(cdt)
    wk = params["wk"].astype(cdt)
    wv = params["wv"].astype(cdt)
    wo = params["wo"].astype(cdt)
    w1 = params["w1"].astype(cdt)
    w2 = params["w2"].astype(cdt)

    kernel = functools.partial(_encoder_kernel, num_heads=num_heads,
                               pre_norm=pre_norm, compute_dtype=cdt)
    vmem_limit = _vmem_limit_bytes(S, E, Hf, TQ, num_heads, cdt.itemsize)

    def call(weight_pipeline_mode):
        def wspec(shape):
            idx = lambda b, qt: (0,) * len(shape)
            if weight_pipeline_mode is None:
                return pl.BlockSpec(shape, idx)
            return pl.BlockSpec(shape, idx, pipeline_mode=weight_pipeline_mode)

        in_specs = [
            pl.BlockSpec((None, TQ, E), lambda b, qt: (b, qt, 0)),  # query / residual rows
            pl.BlockSpec((None, S, E), lambda b, qt: (b, 0, 0)),    # full sequence for K/V
            pl.BlockSpec((None, 1, S), lambda b, qt: (b, 0, 0)),    # additive mask
            wspec((E, E)), wspec((1, E)),       # Wq, bq
            wspec((E, E)), wspec((1, E)),       # Wk, bk
            wspec((E, E)), wspec((1, E)),       # Wv, bv
            wspec((E, E)), wspec((1, E)),       # Wo, bo
            wspec((E, Hf)), wspec((1, Hf)),     # W1, b1
            wspec((Hf, E)), wspec((1, E)),      # W2, b2
            wspec((1, E)), wspec((1, E)),       # ln1 gamma, beta
            wspec((1, E)), wspec((1, E)),       # ln2 gamma, beta
        ]

        return pl.pallas_call(
            kernel,
            out_shape=jax.ShapeDtypeStruct((B, S, E), jnp.float32),
            grid_spec=pltpu.PrefetchScalarGridSpec(
                num_scalar_prefetch=0,
                grid=(B, NQ),
                in_specs=in_specs,
                out_specs=pl.BlockSpec((None, TQ, E), lambda b, qt: (b, qt, 0)),
                scratch_shapes=[pltpu.VMEM((S, E), cdt),   # K, reused across query tiles
                                pltpu.VMEM((S, E), cdt)],  # V
            ),
            compiler_params=pltpu.CompilerParams(
                # batch axis sharded across TensorCores; query-tile axis must be
                # sequential so the K/V scratch computed at qt==0 can be reused.
                dimension_semantics=("parallel", "arbitrary"),
                vmem_limit_bytes=vmem_limit,
            ),
        )(embeddings, embeddings, add_mask,
          wq, params["bq"], wk, params["bk"], wv, params["bv"],
          wo, params["bo"], w1, params["b1"], w2, params["b2"],
          params["g1"], params["be1"], params["g2"], params["be2"])

    try:
        # Weight blocks never change across the grid -> single-buffer them.
        return call(pl.Buffered(1))
    except Exception:
        # Fallback for jax versions that reject single-buffered BlockSpecs.
        return call(None)


def encoder_layer_ref(x, padding_mask, params, *, num_heads, pre_norm=False):
    """Pure-JAX reference (f32), used only for correctness checks."""
    B, S, E = x.shape
    dh = E // num_heads
    add_mask = jnp.where(padding_mask, -1e9, 0.0)[:, None, None, :]   # (B,1,1,S)

    def proj(a, w, b):
        return a @ w + b[0]

    def split_heads(t):  # (B,S,E) -> (B,H,S,dh)
        return t.reshape(B, S, num_heads, dh).transpose(0, 2, 1, 3)

    def ln(h, g, b):
        mu = h.mean(-1, keepdims=True)
        var = ((h - mu) ** 2).mean(-1, keepdims=True)
        return (h - mu) / jnp.sqrt(var + 1e-5) * g[0] + b[0]

    def attention(a):
        q, k, v = (split_heads(proj(a, params[w], params[b]))
                   for w, b in (("wq", "bq"), ("wk", "bk"), ("wv", "bv")))
        s = jnp.einsum("bhqd,bhkd->bhqk", q, k) / math.sqrt(dh) + add_mask
        p = jax.nn.softmax(s, axis=-1)
        o = jnp.einsum("bhqk,bhkd->bhqd", p, v).transpose(0, 2, 1, 3).reshape(B, S, E)
        return proj(o, params["wo"], params["bo"])

    def ffn(a):
        return proj(jax.nn.relu(proj(a, params["w1"], params["b1"])),
                    params["w2"], params["b2"])

    if pre_norm:
        inter = x + attention(ln(x, params["g1"], params["be1"]))
        return inter + ffn(ln(inter, params["g2"], params["be2"]))
    inter = ln(x + attention(x), params["g1"], params["be1"])
    return ln(inter + ffn(inter), params["g2"], params["be2"])


def init_params(key, emb_size, hidden_size):
    keys = jax.random.split(key, 12)
    std = 0.02
    return {
        "wq": jax.random.normal(keys[0], (emb_size, emb_size), jnp.float32) * std,
        "wk": jax.random.normal(keys[1], (emb_size, emb_size), jnp.float32) * std,
        "wv": jax.random.normal(keys[2], (emb_size, emb_size), jnp.float32) * std,
        "wo": jax.random.normal(keys[3], (emb_size, emb_size), jnp.float32) * std,
        "w1": jax.random.normal(keys[4], (emb_size, hidden_size), jnp.float32) * std,
        "w2": jax.random.normal(keys[5], (hidden_size, emb_size), jnp.float32) * std,
        "bq": jax.random.normal(keys[6], (1, emb_size), jnp.float32) * 0.02,
        "bk": jax.random.normal(keys[7], (1, emb_size), jnp.float32) * 0.02,
        "bv": jax.random.normal(keys[8], (1, emb_size), jnp.float32) * 0.02,
        "bo": jax.random.normal(keys[9], (1, emb_size), jnp.float32) * 0.02,
        "b1": jnp.full((1, hidden_size), 0.01, jnp.float32),
        "b2": jnp.full((1, emb_size), 0.01, jnp.float32),
        "g1": 1.0 + jax.random.normal(keys[10], (1, emb_size), jnp.float32) * 0.1,
        "be1": jnp.full((1, emb_size), 0.02, jnp.float32),
        "g2": 1.0 + jax.random.normal(keys[11], (1, emb_size), jnp.float32) * 0.1,
        "be2": jnp.full((1, emb_size), -0.02, jnp.float32),
    }


if __name__ == "__main__":
    B, S, E, NH, HIDDEN = 2, 16, 32, 4, 64
    TQ = 8  # two query tiles -> exercises the K/V-scratch reuse across the qt axis

    key = jax.random.PRNGKey(0)
    k_x, k_p = jax.random.split(key)
    x = jax.random.normal(k_x, (B, S, E), jnp.float32)
    # True = padding token; mask out the last three positions of the second row
    padding_mask = jnp.zeros((B, S), jnp.bool_).at[1, -3:].set(True)
    params = init_params(k_p, E, HIDDEN)

    # 1) exact-arithmetic configuration (f32 matmul inputs) vs pure-JAX reference
    out_f32 = jax.block_until_ready(
        encoder_layer(x, padding_mask, params, num_heads=NH, pre_norm=False,
                      q_tile=TQ, compute_dtype=jnp.float32))
    ref = encoder_layer_ref(x, padding_mask, params, num_heads=NH, pre_norm=False)
    assert out_f32.shape == (B, S, E)
    assert jnp.allclose(out_f32, ref, atol=2e-3, rtol=2e-3), (
        "post-norm f32 mismatch, max abs err = %e"
        % float(jnp.max(jnp.abs(out_f32 - ref))))

    # 2) performance configuration (bf16 MXU inputs, f32 accumulation)
    out_bf16 = jax.block_until_ready(
        encoder_layer(x, padding_mask, params, num_heads=NH, pre_norm=False,
                      q_tile=TQ, compute_dtype=jnp.bfloat16))
    assert jnp.allclose(out_bf16, ref, atol=3e-2, rtol=3e-2), (
        "post-norm bf16 mismatch, max abs err = %e"
        % float(jnp.max(jnp.abs(out_bf16 - ref))))

    # 3) pre-norm path
    out_pre = jax.block_until_ready(
        encoder_layer(x, padding_mask, params, num_heads=NH, pre_norm=True,
                      q_tile=TQ, compute_dtype=jnp.float32))
    ref_pre = encoder_layer_ref(x, padding_mask, params, num_heads=NH, pre_norm=True)
    assert jnp.allclose(out_pre, ref_pre, atol=2e-3, rtol=2e-3), (
        "pre-norm mismatch, max abs err = %e"
        % float(jnp.max(jnp.abs(out_pre - ref_pre))))

    print("KERNEL_OK")
</pallas_src>

<mosaic_0001>
module attributes {stable_mosaic.version = 11 : i64} {
  func.func @_encoder_kernel(%arg0: i32, %arg1: i32, %arg2: memref<1x8x32xf32, #tpu.memory_space<vmem>>, %arg3: memref<1x16x32xf32, #tpu.memory_space<vmem>>, %arg4: memref<1x1x16xf32, #tpu.memory_space<vmem>>, %arg5: memref<32x32xf32, #tpu.memory_space<vmem>>, %arg6: memref<1x32xf32, #tpu.memory_space<vmem>>, %arg7: memref<32x32xf32, #tpu.memory_space<vmem>>, %arg8: memref<1x32xf32, #tpu.memory_space<vmem>>, %arg9: memref<32x32xf32, #tpu.memory_space<vmem>>, %arg10: memref<1x32xf32, #tpu.memory_space<vmem>>, %arg11: memref<32x32xf32, #tpu.memory_space<vmem>>, %arg12: memref<1x32xf32, #tpu.memory_space<vmem>>, %arg13: memref<32x64xf32, #tpu.memory_space<vmem>>, %arg14: memref<1x64xf32, #tpu.memory_space<vmem>>, %arg15: memref<64x32xf32, #tpu.memory_space<vmem>>, %arg16: memref<1x32xf32, #tpu.memory_space<vmem>>, %arg17: memref<1x32xf32, #tpu.memory_space<vmem>>, %arg18: memref<1x32xf32, #tpu.memory_space<vmem>>, %arg19: memref<1x32xf32, #tpu.memory_space<vmem>>, %arg20: memref<1x32xf32, #tpu.memory_space<vmem>>, %arg21: memref<1x8x32xf32, #tpu.memory_space<vmem>>, %arg22: memref<16x32xf32, #tpu.memory_space<vmem>>, %arg23: memref<16x32xf32, #tpu.memory_space<vmem>>) attributes {dimension_semantics = [#tpu.dimension_semantics<parallel>, #tpu.dimension_semantics<arbitrary>], iteration_bounds = array<i64: 2, 2>, scalar_prefetch = 0 : i64, scratch_operands = 2 : i64, tpu.core_type = #tpu.core_type<tc>, window_params = [{transform_indices = @transform_0, window_bounds = array<i64: 1, 8, 32>}, {transform_indices = @transform_1, window_bounds = array<i64: 1, 16, 32>}, {transform_indices = @transform_2, window_bounds = array<i64: 1, 1, 16>}, {pipeline_mode = #tpu.pipeline_mode<synchronous>, transform_indices = @transform_3, window_bounds = array<i64: 32, 32>}, {pipeline_mode = #tpu.pipeline_mode<synchronous>, transform_indices = @transform_4, window_bounds = array<i64: 1, 32>}, {pipeline_mode = #tpu.pipeline_mode<synchronous>, transform_indices = @transform_5, window_bounds = array<i64: 32, 32>}, {pipeline_mode = #tpu.pipeline_mode<synchronous>, transform_indices = @transform_6, window_bounds = array<i64: 1, 32>}, {pipeline_mode = #tpu.pipeline_mode<synchronous>, transform_indices = @transform_7, window_bounds = array<i64: 32, 32>}, {pipeline_mode = #tpu.pipeline_mode<synchronous>, transform_indices = @transform_8, window_bounds = array<i64: 1, 32>}, {pipeline_mode = #tpu.pipeline_mode<synchronous>, transform_indices = @transform_9, window_bounds = array<i64: 32, 32>}, {pipeline_mode = #tpu.pipeline_mode<synchronous>, transform_indices = @transform_10, window_bounds = array<i64: 1, 32>}, {pipeline_mode = #tpu.pipeline_mode<synchronous>, transform_indices = @transform_11, window_bounds = array<i64: 32, 64>}, {pipeline_mode = #tpu.pipeline_mode<synchronous>, transform_indices = @transform_12, window_bounds = array<i64: 1, 64>}, {pipeline_mode = #tpu.pipeline_mode<synchronous>, transform_indices = @transform_13, window_bounds = array<i64: 64, 32>}, {pipeline_mode = #tpu.pipeline_mode<synchronous>, transform_indices = @transform_14, window_bounds = array<i64: 1, 32>}, {pipeline_mode = #tpu.pipeline_mode<synchronous>, transform_indices = @transform_15, window_bounds = array<i64: 1, 32>}, {pipeline_mode = #tpu.pipeline_mode<synchronous>, transform_indices = @transform_16, window_bounds = array<i64: 1, 32>}, {pipeline_mode = #tpu.pipeline_mode<synchronous>, transform_indices = @transform_17, window_bounds = array<i64: 1, 32>}, {pipeline_mode = #tpu.pipeline_mode<synchronous>, transform_indices = @transform_18, window_bounds = array<i64: 1, 32>}, {transform_indices = @transform_19, window_bounds = array<i64: 1, 8, 32>}]} {
    %c0 = arith.constant 0 : index
    %c0_0 = arith.constant 0 : index
    %c0_1 = arith.constant 0 : index
    %0 = vector.load %arg2[%c0, %c0_0, %c0_1] : memref<1x8x32xf32, #tpu.memory_space<vmem>>, vector<1x8x32xf32>
    %1 = vector.shape_cast %0 : vector<1x8x32xf32> to vector<8x32xf32>
    %c0_2 = arith.constant 0 : index
    %c0_3 = arith.constant 0 : index
    %c0_4 = arith.constant 0 : index
    %2 = vector.load %arg4[%c0_2, %c0_3, %c0_4] : memref<1x1x16xf32, #tpu.memory_space<vmem>>, vector<1x1x16xf32>
    %3 = vector.shape_cast %2 : vector<1x1x16xf32> to vector<1x16xf32>
    %c0_5 = arith.constant 0 : index
    %c0_6 = arith.constant 0 : index
    %4 = vector.load %arg5[%c0_5, %c0_6] : memref<32x32xf32, #tpu.memory_space<vmem>>, vector<32x32xf32>
    %c0_7 = arith.constant 0 : index
    %c0_8 = arith.constant 0 : index
    %5 = vector.load %arg6[%c0_7, %c0_8] : memref<1x32xf32, #tpu.memory_space<vmem>>, vector<1x32xf32>
    %c0_9 = arith.constant 0 : index
    %c0_10 = arith.constant 0 : index
    %6 = vector.load %arg11[%c0_9, %c0_10] : memref<32x32xf32, #tpu.memory_space<vmem>>, vector<32x32xf32>
    %c0_11 = arith.constant 0 : index
    %c0_12 = arith.constant 0 : index
    %7 = vector.load %arg12[%c0_11, %c0_12] : memref<1x32xf32, #tpu.memory_space<vmem>>, vector<1x32xf32>
    %c0_13 = arith.constant 0 : index
    %c0_14 = arith.constant 0 : index
    %8 = vector.load %arg13[%c0_13, %c0_14] : memref<32x64xf32, #tpu.memory_space<vmem>>, vector<32x64xf32>
    %c0_15 = arith.constant 0 : index
    %c0_16 = arith.constant 0 : index
    %9 = vector.load %arg14[%c0_15, %c0_16] : memref<1x64xf32, #tpu.memory_space<vmem>>, vector<1x64xf32>
    %c0_17 = arith.constant 0 : index
    %c0_18 = arith.constant 0 : index
    %10 = vector.load %arg15[%c0_17, %c0_18] : memref<64x32xf32, #tpu.memory_space<vmem>>, vector<64x32xf32>
    %c0_19 = arith.constant 0 : index
    %c0_20 = arith.constant 0 : index
    %11 = vector.load %arg16[%c0_19, %c0_20] : memref<1x32xf32, #tpu.memory_space<vmem>>, vector<1x32xf32>
    %c0_21 = arith.constant 0 : index
    %c0_22 = arith.constant 0 : index
    %12 = vector.load %arg17[%c0_21, %c0_22] : memref<1x32xf32, #tpu.memory_space<vmem>>, vector<1x32xf32>
    %c0_23 = arith.constant 0 : index
    %c0_24 = arith.constant 0 : index
    %13 = vector.load %arg18[%c0_23, %c0_24] : memref<1x32xf32, #tpu.memory_space<vmem>>, vector<1x32xf32>
    %c0_25 = arith.constant 0 : index
    %c0_26 = arith.constant 0 : index
    %14 = vector.load %arg19[%c0_25, %c0_26] : memref<1x32xf32, #tpu.memory_space<vmem>>, vector<1x32xf32>
    %c0_27 = arith.constant 0 : index
    %c0_28 = arith.constant 0 : index
    %15 = vector.load %arg20[%c0_27, %c0_28] : memref<1x32xf32, #tpu.memory_space<vmem>>, vector<1x32xf32>
    %c0_i32 = arith.constant 0 : i32
    %16 = arith.cmpi eq, %arg1, %c0_i32 : i32
    %17 = arith.extui %16 : i1 to i32
    %c0_i32_29 = arith.constant 0 : i32
    %18 = arith.cmpi ne, %17, %c0_i32_29 : i32
    scf.if %18 {
      %c0_56 = arith.constant 0 : index
      %c0_57 = arith.constant 0 : index
      %c0_58 = arith.constant 0 : index
      %113 = vector.load %arg3[%c0_56, %c0_57, %c0_58] : memref<1x16x32xf32, #tpu.memory_space<vmem>>, vector<1x16x32xf32>
      %114 = vector.shape_cast %113 : vector<1x16x32xf32> to vector<16x32xf32>
      %c0_59 = arith.constant 0 : index
      %c0_60 = arith.constant 0 : index
      %115 = vector.load %arg7[%c0_59, %c0_60] : memref<32x32xf32, #tpu.memory_space<vmem>>, vector<32x32xf32>
      %c0_61 = arith.constant 0 : index
      %c0_62 = arith.constant 0 : index
      %116 = vector.load %arg8[%c0_61, %c0_62] : memref<1x32xf32, #tpu.memory_space<vmem>>, vector<1x32xf32>
      %c0_63 = arith.constant 0 : index
      %c0_64 = arith.constant 0 : index
      %117 = vector.load %arg9[%c0_63, %c0_64] : memref<32x32xf32, #tpu.memory_space<vmem>>, vector<32x32xf32>
      %c0_65 = arith.constant 0 : index
      %c0_66 = arith.constant 0 : index
      %118 = vector.load %arg10[%c0_65, %c0_66] : memref<1x32xf32, #tpu.memory_space<vmem>>, vector<1x32xf32>
      %cst_67 = arith.constant dense<0.000000e+00> : vector<16x32xf32>
      %119 = tpu.matmul %114, %115, %cst_67 {dimension_numbers = #tpu.dot_dimension_numbers<[1], [0], [0], [1], [0, 0, 1, 1], [], []>} : vector<16x32xf32>, vector<32x32xf32>, vector<16x32xf32> -> vector<16x32xf32>
      %120 = vector.broadcast %116 : vector<1x32xf32> to vector<16x32xf32>
      %121 = arith.addf %119, %120 : vector<16x32xf32>
      %c0_68 = arith.constant 0 : index
      %c0_69 = arith.constant 0 : index
      %122 = vector.load %arg22[%c0_68, %c0_69] : memref<16x32xf32, #tpu.memory_space<vmem>>, vector<16x32xf32>
      tpu.vector_store %arg22[%c0_68, %c0_69], %121 {strides = array<i32>} : memref<16x32xf32, #tpu.memory_space<vmem>>, vector<16x32xf32>,
      %cst_70 = arith.constant dense<0.000000e+00> : vector<16x32xf32>
      %123 = tpu.matmul %114, %117, %cst_70 {dimension_numbers = #tpu.dot_dimension_numbers<[1], [0], [0], [1], [0, 0, 1, 1], [], []>} : vector<16x32xf32>, vector<32x32xf32>, vector<16x32xf32> -> vector<16x32xf32>
      %124 = vector.broadcast %118 : vector<1x32xf32> to vector<16x32xf32>
      %125 = arith.addf %123, %124 : vector<16x32xf32>
      %c0_71 = arith.constant 0 : index
      %c0_72 = arith.constant 0 : index
      %126 = vector.load %arg23[%c0_71, %c0_72] : memref<16x32xf32, #tpu.memory_space<vmem>>, vector<16x32xf32>
      tpu.vector_store %arg23[%c0_71, %c0_72], %125 {strides = array<i32>} : memref<16x32xf32, #tpu.memory_space<vmem>>, vector<16x32xf32>,
    } else {
    }
    %cst = arith.constant dense<0.000000e+00> : vector<8x32xf32>
    %19 = tpu.matmul %1, %4, %cst {dimension_numbers = #tpu.dot_dimension_numbers<[1], [0], [0], [1], [0, 0, 1, 1], [], []>} : vector<8x32xf32>, vector<32x32xf32>, vector<8x32xf32> -> vector<8x32xf32>
    %20 = vector.broadcast %5 : vector<1x32xf32> to vector<8x32xf32>
    %21 = arith.addf %19, %20 : vector<8x32xf32>
    %cst_30 = arith.constant 0.353553385 : f32
    %22 = vector.broadcast %cst_30 : f32 to vector<8x32xf32>
    %23 = arith.mulf %21, %22 : vector<8x32xf32>
    %24 = vector.shape_cast %23 : vector<8x32xf32> to vector<8x4x8xf32>
    %25 = tpu.transpose %24, [1, 0, 2] : vector<8x4x8xf32> -> vector<4x8x8xf32>
    %c0_31 = arith.constant 0 : index
    %c0_32 = arith.constant 0 : index
    %26 = vector.load %arg22[%c0_31, %c0_32] : memref<16x32xf32, #tpu.memory_space<vmem>>, vector<16x32xf32>
    %27 = vector.shape_cast %26 : vector<16x32xf32> to vector<16x4x8xf32>
    %28 = tpu.transpose %27, [1, 0, 2] : vector<16x4x8xf32> -> vector<4x16x8xf32>
    %c0_33 = arith.constant 0 : index
    %c0_34 = arith.constant 0 : index
    %29 = vector.load %arg23[%c0_33, %c0_34] : memref<16x32xf32, #tpu.memory_space<vmem>>, vector<16x32xf32>
    %30 = vector.shape_cast %29 : vector<16x32xf32> to vector<16x4x8xf32>
    %31 = tpu.transpose %30, [1, 0, 2] : vector<16x4x8xf32> -> vector<4x16x8xf32>
    "tpu.trace_start"() <{level = 10 : i32, message = "hqd,hkd->hqk"}> : () -> ()
    %cst_35 = arith.constant dense<0.000000e+00> : vector<4x8x16xf32>
    %32 = tpu.matmul %25, %28, %cst_35 {dimension_numbers = #tpu.dot_dimension_numbers<[2], [2], [1], [1], [0, 0, 0, 1, 1, 1], [0], [0]>} : vector<4x8x8xf32>, vector<4x16x8xf32>, vector<4x8x16xf32> -> vector<4x8x16xf32>
    "tpu.trace_stop"() : () -> ()
    %33 = vector.shape_cast %3 : vector<1x16xf32> to vector<1x1x16xf32>
    %34 = vector.broadcast %33 : vector<1x1x16xf32> to vector<4x8x16xf32>
    %35 = arith.addf %32, %34 : vector<4x8x16xf32>
    %cst_36 = arith.constant dense<0xFF800000> : vector<4x8xf32>
    %36 = vector.multi_reduction <maximumf>, %35, %cst_36 [2] : vector<4x8x16xf32> to vector<4x8xf32>
    %37 = vector.shape_cast %36 : vector<4x8xf32> to vector<4x8x1xf32>
    %38 = vector.broadcast %37 : vector<4x8x1xf32> to vector<4x8x16xf32>
    %39 = arith.subf %35, %38 : vector<4x8x16xf32>
    %40 = math.exp %39 : vector<4x8x16xf32>
    %cst_37 = arith.constant dense<0.000000e+00> : vector<4x8xf32>
    %41 = vector.multi_reduction <add>, %40, %cst_37 [2] : vector<4x8x16xf32> to vector<4x8xf32>
    %42 = vector.shape_cast %41 : vector<4x8xf32> to vector<4x8x1xf32>
    %43 = tpu.reciprocal %42 {approx = true} : vector<4x8x1xf32> -> vector<4x8x1xf32>
    %44 = vector.broadcast %43 : vector<4x8x1xf32> to vector<4x8x16xf32>
    %45 = arith.mulf %40, %44 : vector<4x8x16xf32>
    "tpu.trace_start"() <{level = 10 : i32, message = "hqk,hkd->hqd"}> : () -> ()
    %cst_38 = arith.constant dense<0.000000e+00> : vector<4x8x8xf32>
    %46 = tpu.matmul %45, %31, %cst_38 {dimension_numbers = #tpu.dot_dimension_numbers<[2], [1], [1], [2], [0, 0, 0, 1, 1, 2], [0], [0]>} : vector<4x8x16xf32>, vector<4x16x8xf32>, vector<4x8x8xf32> -> vector<4x8x8xf32>
    "tpu.trace_stop"() : () -> ()
    %47 = tpu.transpose %46, [1, 0, 2] : vector<4x8x8xf32> -> vector<8x4x8xf32>
    %48 = vector.shape_cast %47 : vector<8x4x8xf32> to vector<8x32xf32>
    %cst_39 = arith.constant dense<0.000000e+00> : vector<8x32xf32>
    %49 = tpu.matmul %48, %6, %cst_39 {dimension_numbers = #tpu.dot_dimension_numbers<[1], [0], [0], [1], [0, 0, 1, 1], [], []>} : vector<8x32xf32>, vector<32x32xf32>, vector<8x32xf32> -> vector<8x32xf32>
    %50 = vector.broadcast %7 : vector<1x32xf32> to vector<8x32xf32>
    %51 = arith.addf %49, %50 : vector<8x32xf32>
    %52 = arith.addf %1, %51 : vector<8x32xf32>
    %cst_40 = arith.constant dense<0.000000e+00> : vector<8xf32>
    %53 = vector.multi_reduction <add>, %52, %cst_40 [1] : vector<8x32xf32> to vector<8xf32>
    %54 = vector.shape_cast %53 : vector<8xf32> to vector<8x1xf32>
    %cst_41 = arith.constant 3.200000e+01 : f32
    %55 = vector.broadcast %cst_41 : f32 to vector<8x1xf32>
    %56 = arith.divf %54, %55 : vector<8x1xf32>
    %57 = vector.broadcast %56 : vector<8x1xf32> to vector<8x32xf32>
    %58 = arith.subf %52, %57 : vector<8x32xf32>
    %59 = vector.broadcast %56 : vector<8x1xf32> to vector<8x32xf32>
    %60 = arith.subf %52, %59 : vector<8x32xf32>
    %61 = arith.mulf %58, %60 : vector<8x32xf32>
    %cst_42 = arith.constant dense<0.000000e+00> : vector<8xf32>
    %62 = vector.multi_reduction <add>, %61, %cst_42 [1] : vector<8x32xf32> to vector<8xf32>
    %63 = vector.shape_cast %62 : vector<8xf32> to vector<8x1xf32>
    %cst_43 = arith.constant 3.200000e+01 : f32
    %64 = vector.broadcast %cst_43 : f32 to vector<8x1xf32>
    %65 = arith.divf %63, %64 : vector<8x1xf32>
    %66 = vector.broadcast %56 : vector<8x1xf32> to vector<8x32xf32>
    %67 = arith.subf %52, %66 : vector<8x32xf32>
    %cst_44 = arith.constant 9.99999974E-6 : f32
    %68 = vector.broadcast %cst_44 : f32 to vector<8x1xf32>
    %69 = arith.addf %65, %68 : vector<8x1xf32>
    %70 = math.rsqrt %69 : vector<8x1xf32>
    %71 = vector.broadcast %70 : vector<8x1xf32> to vector<8x32xf32>
    %72 = arith.mulf %67, %71 : vector<8x32xf32>
    %73 = vector.broadcast %12 : vector<1x32xf32> to vector<8x32xf32>
    %74 = arith.mulf %72, %73 : vector<8x32xf32>
    %75 = vector.broadcast %13 : vector<1x32xf32> to vector<8x32xf32>
    %76 = arith.addf %74, %75 : vector<8x32xf32>
    %cst_45 = arith.constant dense<0.000000e+00> : vector<8x64xf32>
    %77 = tpu.matmul %76, %8, %cst_45 {dimension_numbers = #tpu.dot_dimension_numbers<[1], [0], [0], [1], [0, 0, 1, 1], [], []>} : vector<8x32xf32>, vector<32x64xf32>, vector<8x64xf32> -> vector<8x64xf32>
    %78 = vector.broadcast %9 : vector<1x64xf32> to vector<8x64xf32>
    %79 = arith.addf %77, %78 : vector<8x64xf32>
    %cst_46 = arith.constant 0.000000e+00 : f32
    %80 = vector.broadcast %cst_46 : f32 to vector<8x64xf32>
    %81 = arith.maximumf %79, %80 : vector<8x64xf32>
    %cst_47 = arith.constant dense<0.000000e+00> : vector<8x32xf32>
    %82 = tpu.matmul %81, %10, %cst_47 {dimension_numbers = #tpu.dot_dimension_numbers<[1], [0], [0], [1], [0, 0, 1, 1], [], []>} : vector<8x64xf32>, vector<64x32xf32>, vector<8x32xf32> -> vector<8x32xf32>
    %83 = vector.broadcast %11 : vector<1x32xf32> to vector<8x32xf32>
    %84 = arith.addf %82, %83 : vector<8x32xf32>
    %85 = arith.addf %76, %84 : vector<8x32xf32>
    %cst_48 = arith.constant dense<0.000000e+00> : vector<8xf32>
    %86 = vector.multi_reduction <add>, %85, %cst_48 [1] : vector<8x32xf32> to vector<8xf32>
    %87 = vector.shape_cast %86 : vector<8xf32> to vector<8x1xf32>
    %cst_49 = arith.constant 3.200000e+01 : f32
    %88 = vector.broadcast %cst_49 : f32 to vector<8x1xf32>
    %89 = arith.divf %87, %88 : vector<8x1xf32>
    %90 = vector.broadcast %89 : vector<8x1xf32> to vector<8x32xf32>
    %91 = arith.subf %85, %90 : vector<8x32xf32>
    %92 = vector.broadcast %89 : vector<8x1xf32> to vector<8x32xf32>
    %93 = arith.subf %85, %92 : vector<8x32xf32>
    %94 = arith.mulf %91, %93 : vector<8x32xf32>
    %cst_50 = arith.constant dense<0.000000e+00> : vector<8xf32>
    %95 = vector.multi_reduction <add>, %94, %cst_50 [1] : vector<8x32xf32> to vector<8xf32>
    %96 = vector.shape_cast %95 : vector<8xf32> to vector<8x1xf32>
    %cst_51 = arith.constant 3.200000e+01 : f32
    %97 = vector.broadcast %cst_51 : f32 to vector<8x1xf32>
    %98 = arith.divf %96, %97 : vector<8x1xf32>
    %99 = vector.broadcast %89 : vector<8x1xf32> to vector<8x32xf32>
    %100 = arith.subf %85, %99 : vector<8x32xf32>
    %cst_52 = arith.constant 9.99999974E-6 : f32
    %101 = vector.broadcast %cst_52 : f32 to vector<8x1xf32>
    %102 = arith.addf %98, %101 : vector<8x1xf32>
    %103 = math.rsqrt %102 : vector<8x1xf32>
    %104 = vector.broadcast %103 : vector<8x1xf32> to vector<8x32xf32>
    %105 = arith.mulf %100, %104 : vector<8x32xf32>
    %106 = vector.broadcast %14 : vector<1x32xf32> to vector<8x32xf32>
    %107 = arith.mulf %105, %106 : vector<8x32xf32>
    %108 = vector.broadcast %15 : vector<1x32xf32> to vector<8x32xf32>
    %109 = arith.addf %107, %108 : vector<8x32xf32>
    %c0_53 = arith.constant 0 : index
    %c0_54 = arith.constant 0 : index
    %c0_55 = arith.constant 0 : index
    %110 = vector.load %arg21[%c0_53, %c0_54, %c0_55] : memref<1x8x32xf32, #tpu.memory_space<vmem>>, vector<1x8x32xf32>
    %111 = vector.shape_cast %110 : vector<1x8x32xf32> to vector<8x32xf32>
    %112 = vector.shape_cast %109 : vector<8x32xf32> to vector<1x8x32xf32>
    tpu.vector_store %arg21[%c0_53, %c0_54, %c0_55], %112 {strides = array<i32>} : memref<1x8x32xf32, #tpu.memory_space<vmem>>, vector<1x8x32xf32>,
    return
  }
  func.func @transform_0(%arg0: i32, %arg1: i32) -> (i32, i32, i32) {
    %c0_i32 = arith.constant 0 : i32
    %c0_i32_0 = arith.constant 0 : i32
    return %arg0, %arg1, %c0_i32 : i32, i32, i32
  }
  func.func @transform_1(%arg0: i32, %arg1: i32) -> (i32, i32, i32) {
    %c0_i32 = arith.constant 0 : i32
    %c0_i32_0 = arith.constant 0 : i32
    %c0_i32_1 = arith.constant 0 : i32
    return %arg0, %c0_i32, %c0_i32_0 : i32, i32, i32
  }
  func.func @transform_2(%arg0: i32, %arg1: i32) -> (i32, i32, i32) {
    %c0_i32 = arith.constant 0 : i32
    %c0_i32_0 = arith.constant 0 : i32
    %c0_i32_1 = arith.constant 0 : i32
    return %arg0, %c0_i32, %c0_i32_0 : i32, i32, i32
  }
  func.func @transform_3(%arg0: i32, %arg1: i32) -> (i32, i32) {
    %c0_i32 = arith.constant 0 : i32
    %c0_i32_0 = arith.constant 0 : i32
    %c0_i32_1 = arith.constant 0 : i32
    return %c0_i32, %c0_i32_0 : i32, i32
  }
  func.func @transform_4(%arg0: i32, %arg1: i32) -> (i32, i32) {
    %c0_i32 = arith.constant 0 : i32
    %c0_i32_0 = arith.constant 0 : i32
    %c0_i32_1 = arith.constant 0 : i32
    return %c0_i32, %c0_i32_0 : i32, i32
  }
  func.func @transform_5(%arg0: i32, %arg1: i32) -> (i32, i32) {
    %c0_i32 = arith.constant 0 : i32
    %c0_i32_0 = arith.constant 0 : i32
    %c0_i32_1 = arith.constant 0 : i32
    return %c0_i32, %c0_i32_0 : i32, i32
  }
  func.func @transform_6(%arg0: i32, %arg1: i32) -> (i32, i32) {
    %c0_i32 = arith.constant 0 : i32
    %c0_i32_0 = arith.constant 0 : i32
    %c0_i32_1 = arith.constant 0 : i32
    return %c0_i32, %c0_i32_0 : i32, i32
  }
  func.func @transform_7(%arg0: i32, %arg1: i32) -> (i32, i32) {
    %c0_i32 = arith.constant 0 : i32
    %c0_i32_0 = arith.constant 0 : i32
    %c0_i32_1 = arith.constant 0 : i32
    return %c0_i32, %c0_i32_0 : i32, i32
  }
  func.func @transform_8(%arg0: i32, %arg1: i32) -> (i32, i32) {
    %c0_i32 = arith.constant 0 : i32
    %c0_i32_0 = arith.constant 0 : i32
    %c0_i32_1 = arith.constant 0 : i32
    return %c0_i32, %c0_i32_0 : i32, i32
  }
  func.func @transform_9(%arg0: i32, %arg1: i32) -> (i32, i32) {
    %c0_i32 = arith.constant 0 : i32
    %c0_i32_0 = arith.constant 0 : i32
    %c0_i32_1 = arith.constant 0 : i32
    return %c0_i32, %c0_i32_0 : i32, i32
  }
  func.func @transform_10(%arg0: i32, %arg1: i32) -> (i32, i32) {
    %c0_i32 = arith.constant 0 : i32
    %c0_i32_0 = arith.constant 0 : i32
    %c0_i32_1 = arith.constant 0 : i32
    return %c0_i32, %c0_i32_0 : i32, i32
  }
  func.func @transform_11(%arg0: i32, %arg1: i32) -> (i32, i32) {
    %c0_i32 = arith.constant 0 : i32
    %c0_i32_0 = arith.constant 0 : i32
    %c0_i32_1 = arith.constant 0 : i32
    return %c0_i32, %c0_i32_0 : i32, i32
  }
  func.func @transform_12(%arg0: i32, %arg1: i32) -> (i32, i32) {
    %c0_i32 = arith.constant 0 : i32
    %c0_i32_0 = arith.constant 0 : i32
    %c0_i32_1 = arith.constant 0 : i32
    return %c0_i32, %c0_i32_0 : i32, i32
  }
  func.func @transform_13(%arg0: i32, %arg1: i32) -> (i32, i32) {
    %c0_i32 = arith.constant 0 : i32
    %c0_i32_0 = arith.constant 0 : i32
    %c0_i32_1 = arith.constant 0 : i32
    return %c0_i32, %c0_i32_0 : i32, i32
  }
  func.func @transform_14(%arg0: i32, %arg1: i32) -> (i32, i32) {
    %c0_i32 = arith.constant 0 : i32
    %c0_i32_0 = arith.constant 0 : i32
    %c0_i32_1 = arith.constant 0 : i32
    return %c0_i32, %c0_i32_0 : i32, i32
  }
  func.func @transform_15(%arg0: i32, %arg1: i32) -> (i32, i32) {
    %c0_i32 = arith.constant 0 : i32
    %c0_i32_0 = arith.constant 0 : i32
    %c0_i32_1 = arith.constant 0 : i32
    return %c0_i32, %c0_i32_0 : i32, i32
  }
  func.func @transform_16(%arg0: i32, %arg1: i32) -> (i32, i32) {
    %c0_i32 = arith.constant 0 : i32
    %c0_i32_0 = arith.constant 0 : i32
    %c0_i32_1 = arith.constant 0 : i32
    return %c0_i32, %c0_i32_0 : i32, i32
  }
  func.func @transform_17(%arg0: i32, %arg1: i32) -> (i32, i32) {
    %c0_i32 = arith.constant 0 : i32
    %c0_i32_0 = arith.constant 0 : i32
    %c0_i32_1 = arith.constant 0 : i32
    return %c0_i32, %c0_i32_0 : i32, i32
  }
  func.func @transform_18(%arg0: i32, %arg1: i32) -> (i32, i32) {
    %c0_i32 = arith.constant 0 : i32
    %c0_i32_0 = arith.constant 0 : i32
    %c0_i32_1 = arith.constant 0 : i32
    return %c0_i32, %c0_i32_0 : i32, i32
  }
  func.func @transform_19(%arg0: i32, %arg1: i32) -> (i32, i32, i32) {
    %c0_i32 = arith.constant 0 : i32
    %c0_i32_0 = arith.constant 0 : i32
    return %arg0, %arg1, %c0_i32 : i32, i32, i32
  }
}

module attributes {stable_mosaic.version = 11 : i64} {
  func.func @_encoder_kernel(%arg0: i32, %arg1: i32, %arg2: memref<1x8x32xf32, #tpu.memory_space<vmem>>, %arg3: memref<1x16x32xf32, #tpu.memory_space<vmem>>, %arg4: memref<1x1x16xf32, #tpu.memory_space<vmem>>, %arg5: memref<32x32xf32, #tpu.memory_space<vmem>>, %arg6: memref<1x32xf32, #tpu.memory_space<vmem>>, %arg7: memref<32x32xf32, #tpu.memory_space<vmem>>, %arg8: memref<1x32xf32, #tpu.memory_space<vmem>>, %arg9: memref<32x32xf32, #tpu.memory_space<vmem>>, %arg10: memref<1x32xf32, #tpu.memory_space<vmem>>, %arg11: memref<32x32xf32, #tpu.memory_space<vmem>>, %arg12: memref<1x32xf32, #tpu.memory_space<vmem>>, %arg13: memref<32x64xf32, #tpu.memory_space<vmem>>, %arg14: memref<1x64xf32, #tpu.memory_space<vmem>>, %arg15: memref<64x32xf32, #tpu.memory_space<vmem>>, %arg16: memref<1x32xf32, #tpu.memory_space<vmem>>, %arg17: memref<1x32xf32, #tpu.memory_space<vmem>>, %arg18: memref<1x32xf32, #tpu.memory_space<vmem>>, %arg19: memref<1x32xf32, #tpu.memory_space<vmem>>, %arg20: memref<1x32xf32, #tpu.memory_space<vmem>>, %arg21: memref<1x8x32xf32, #tpu.memory_space<vmem>>, %arg22: memref<16x32xf32, #tpu.memory_space<vmem>>, %arg23: memref<16x32xf32, #tpu.memory_space<vmem>>) attributes {dimension_semantics = [#tpu.dimension_semantics<parallel>, #tpu.dimension_semantics<arbitrary>], iteration_bounds = array<i64: 2, 2>, scalar_prefetch = 0 : i64, scratch_operands = 2 : i64, tpu.core_type = #tpu.core_type<tc>, window_params = [{transform_indices = @transform_0, window_bounds = array<i64: 1, 8, 32>}, {transform_indices = @transform_1, window_bounds = array<i64: 1, 16, 32>}, {transform_indices = @transform_2, window_bounds = array<i64: 1, 1, 16>}, {pipeline_mode = #tpu.pipeline_mode<synchronous>, transform_indices = @transform_3, window_bounds = array<i64: 32, 32>}, {pipeline_mode = #tpu.pipeline_mode<synchronous>, transform_indices = @transform_4, window_bounds = array<i64: 1, 32>}, {pipeline_mode = #tpu.pipeline_mode<synchronous>, transform_indices = @transform_5, window_bounds = array<i64: 32, 32>}, {pipeline_mode = #tpu.pipeline_mode<synchronous>, transform_indices = @transform_6, window_bounds = array<i64: 1, 32>}, {pipeline_mode = #tpu.pipeline_mode<synchronous>, transform_indices = @transform_7, window_bounds = array<i64: 32, 32>}, {pipeline_mode = #tpu.pipeline_mode<synchronous>, transform_indices = @transform_8, window_bounds = array<i64: 1, 32>}, {pipeline_mode = #tpu.pipeline_mode<synchronous>, transform_indices = @transform_9, window_bounds = array<i64: 32, 32>}, {pipeline_mode = #tpu.pipeline_mode<synchronous>, transform_indices = @transform_10, window_bounds = array<i64: 1, 32>}, {pipeline_mode = #tpu.pipeline_mode<synchronous>, transform_indices = @transform_11, window_bounds = array<i64: 32, 64>}, {pipeline_mode = #tpu.pipeline_mode<synchronous>, transform_indices = @transform_12, window_bounds = array<i64: 1, 64>}, {pipeline_mode = #tpu.pipeline_mode<synchronous>, transform_indices = @transform_13, window_bounds = array<i64: 64, 32>}, {pipeline_mode = #tpu.pipeline_mode<synchronous>, transform_indices = @transform_14, window_bounds = array<i64: 1, 32>}, {pipeline_mode = #tpu.pipeline_mode<synchronous>, transform_indices = @transform_15, window_bounds = array<i64: 1, 32>}, {pipeline_mode = #tpu.pipeline_mode<synchronous>, transform_indices = @transform_16, window_bounds = array<i64: 1, 32>}, {pipeline_mode = #tpu.pipeline_mode<synchronous>, transform_indices = @transform_17, window_bounds = array<i64: 1, 32>}, {pipeline_mode = #tpu.pipeline_mode<synchronous>, transform_indices = @transform_18, window_bounds = array<i64: 1, 32>}, {transform_indices = @transform_19, window_bounds = array<i64: 1, 8, 32>}]} {
    %c0 = arith.constant 0 : index
    %c0_0 = arith.constant 0 : index
    %c0_1 = arith.constant 0 : index
    %0 = vector.load %arg2[%c0, %c0_0, %c0_1] : memref<1x8x32xf32, #tpu.memory_space<vmem>>, vector<1x8x32xf32>
    %1 = vector.shape_cast %0 : vector<1x8x32xf32> to vector<8x32xf32>
    %c0_2 = arith.constant 0 : index
    %c0_3 = arith.constant 0 : index
    %c0_4 = arith.constant 0 : index
    %2 = vector.load %arg4[%c0_2, %c0_3, %c0_4] : memref<1x1x16xf32, #tpu.memory_space<vmem>>, vector<1x1x16xf32>
    %3 = vector.shape_cast %2 : vector<1x1x16xf32> to vector<1x16xf32>
    %c0_5 = arith.constant 0 : index
    %c0_6 = arith.constant 0 : index
    %4 = vector.load %arg5[%c0_5, %c0_6] : memref<32x32xf32, #tpu.memory_space<vmem>>, vector<32x32xf32>
    %c0_7 = arith.constant 0 : index
    %c0_8 = arith.constant 0 : index
    %5 = vector.load %arg6[%c0_7, %c0_8] : memref<1x32xf32, #tpu.memory_space<vmem>>, vector<1x32xf32>
    %c0_9 = arith.constant 0 : index
    %c0_10 = arith.constant 0 : index
    %6 = vector.load %arg11[%c0_9, %c0_10] : memref<32x32xf32, #tpu.memory_space<vmem>>, vector<32x32xf32>
    %c0_11 = arith.constant 0 : index
    %c0_12 = arith.constant 0 : index
    %7 = vector.load %arg12[%c0_11, %c0_12] : memref<1x32xf32, #tpu.memory_space<vmem>>, vector<1x32xf32>
    %c0_13 = arith.constant 0 : index
    %c0_14 = arith.constant 0 : index
    %8 = vector.load %arg13[%c0_13, %c0_14] : memref<32x64xf32, #tpu.memory_space<vmem>>, vector<32x64xf32>
    %c0_15 = arith.constant 0 : index
    %c0_16 = arith.constant 0 : index
    %9 = vector.load %arg14[%c0_15, %c0_16] : memref<1x64xf32, #tpu.memory_space<vmem>>, vector<1x64xf32>
    %c0_17 = arith.constant 0 : index
    %c0_18 = arith.constant 0 : index
    %10 = vector.load %arg15[%c0_17, %c0_18] : memref<64x32xf32, #tpu.memory_space<vmem>>, vector<64x32xf32>
    %c0_19 = arith.constant 0 : index
    %c0_20 = arith.constant 0 : index
    %11 = vector.load %arg16[%c0_19, %c0_20] : memref<1x32xf32, #tpu.memory_space<vmem>>, vector<1x32xf32>
    %c0_21 = arith.constant 0 : index
    %c0_22 = arith.constant 0 : index
    %12 = vector.load %arg17[%c0_21, %c0_22] : memref<1x32xf32, #tpu.memory_space<vmem>>, vector<1x32xf32>
    %c0_23 = arith.constant 0 : index
    %c0_24 = arith.constant 0 : index
    %13 = vector.load %arg18[%c0_23, %c0_24] : memref<1x32xf32, #tpu.memory_space<vmem>>, vector<1x32xf32>
    %c0_25 = arith.constant 0 : index
    %c0_26 = arith.constant 0 : index
    %14 = vector.load %arg19[%c0_25, %c0_26] : memref<1x32xf32, #tpu.memory_space<vmem>>, vector<1x32xf32>
    %c0_27 = arith.constant 0 : index
    %c0_28 = arith.constant 0 : index
    %15 = vector.load %arg20[%c0_27, %c0_28] : memref<1x32xf32, #tpu.memory_space<vmem>>, vector<1x32xf32>
    %c0_i32 = arith.constant 0 : i32
    %16 = arith.cmpi eq, %arg1, %c0_i32 : i32
    %17 = arith.extui %16 : i1 to i32
    %c0_i32_29 = arith.constant 0 : i32
    %18 = arith.cmpi ne, %17, %c0_i32_29 : i32
    scf.if %18 {
      %c0_56 = arith.constant 0 : index
      %c0_57 = arith.constant 0 : index
      %c0_58 = arith.constant 0 : index
      %113 = vector.load %arg3[%c0_56, %c0_57, %c0_58] : memref<1x16x32xf32, #tpu.memory_space<vmem>>, vector<1x16x32xf32>
      %114 = vector.shape_cast %113 : vector<1x16x32xf32> to vector<16x32xf32>
      %c0_59 = arith.constant 0 : index
      %c0_60 = arith.constant 0 : index
      %115 = vector.load %arg7[%c0_59, %c0_60] : memref<32x32xf32, #tpu.memory_space<vmem>>, vector<32x32xf32>
      %c0_61 = arith.constant 0 : index
      %c0_62 = arith.constant 0 : index
      %116 = vector.load %arg8[%c0_61, %c0_62] : memref<1x32xf32, #tpu.memory_space<vmem>>, vector<1x32xf32>
      %c0_63 = arith.constant 0 : index
      %c0_64 = arith.constant 0 : index
      %117 = vector.load %arg9[%c0_63, %c0_64] : memref<32x32xf32, #tpu.memory_space<vmem>>, vector<32x32xf32>
      %c0_65 = arith.constant 0 : index
      %c0_66 = arith.constant 0 : index
      %118 = vector.load %arg10[%c0_65, %c0_66] : memref<1x32xf32, #tpu.memory_space<vmem>>, vector<1x32xf32>
      %cst_67 = arith.constant dense<0.000000e+00> : vector<16x32xf32>
      %119 = tpu.matmul %114, %115, %cst_67 {dimension_numbers = #tpu.dot_dimension_numbers<[1], [0], [0], [1], [0, 0, 1, 1], [], []>} : vector<16x32xf32>, vector<32x32xf32>, vector<16x32xf32> -> vector<16x32xf32>
      %120 = vector.broadcast %116 : vector<1x32xf32> to vector<16x32xf32>
      %121 = arith.addf %119, %120 : vector<16x32xf32>
      %c0_68 = arith.constant 0 : index
      %c0_69 = arith.constant 0 : index
      %122 = vector.load %arg22[%c0_68, %c0_69] : memref<16x32xf32, #tpu.memory_space<vmem>>, vector<16x32xf32>
      tpu.vector_store %arg22[%c0_68, %c0_69], %121 {strides = array<i32>} : memref<16x32xf32, #tpu.memory_space<vmem>>, vector<16x32xf32>,
      %cst_70 = arith.constant dense<0.000000e+00> : vector<16x32xf32>
      %123 = tpu.matmul %114, %117, %cst_70 {dimension_numbers = #tpu.dot_dimension_numbers<[1], [0], [0], [1], [0, 0, 1, 1], [], []>} : vector<16x32xf32>, vector<32x32xf32>, vector<16x32xf32> -> vector<16x32xf32>
      %124 = vector.broadcast %118 : vector<1x32xf32> to vector<16x32xf32>
      %125 = arith.addf %123, %124 : vector<16x32xf32>
      %c0_71 = arith.constant 0 : index
      %c0_72 = arith.constant 0 : index
      %126 = vector.load %arg23[%c0_71, %c0_72] : memref<16x32xf32, #tpu.memory_space<vmem>>, vector<16x32xf32>
      tpu.vector_store %arg23[%c0_71, %c0_72], %125 {strides = array<i32>} : memref<16x32xf32, #tpu.memory_space<vmem>>, vector<16x32xf32>,
    } else {
    }
    %cst = arith.constant dense<0.000000e+00> : vector<8x32xf32>
    %19 = tpu.matmul %1, %4, %cst {dimension_numbers = #tpu.dot_dimension_numbers<[1], [0], [0], [1], [0, 0, 1, 1], [], []>} : vector<8x32xf32>, vector<32x32xf32>, vector<8x32xf32> -> vector<8x32xf32>
    %20 = vector.broadcast %5 : vector<1x32xf32> to vector<8x32xf32>
    %21 = arith.addf %19, %20 : vector<8x32xf32>
    %cst_30 = arith.constant 0.353553385 : f32
    %22 = vector.broadcast %cst_30 : f32 to vector<8x32xf32>
    %23 = arith.mulf %21, %22 : vector<8x32xf32>
    %24 = vector.shape_cast %23 : vector<8x32xf32> to vector<8x4x8xf32>
    %25 = tpu.transpose %24, [1, 0, 2] : vector<8x4x8xf32> -> vector<4x8x8xf32>
    %c0_31 = arith.constant 0 : index
    %c0_32 = arith.constant 0 : index
    %26 = vector.load %arg22[%c0_31, %c0_32] : memref<16x32xf32, #tpu.memory_space<vmem>>, vector<16x32xf32>
    %27 = vector.shape_cast %26 : vector<16x32xf32> to vector<16x4x8xf32>
    %28 = tpu.transpose %27, [1, 0, 2] : vector<16x4x8xf32> -> vector<4x16x8xf32>
    %c0_33 = arith.constant 0 : index
    %c0_34 = arith.constant 0 : index
    %29 = vector.load %arg23[%c0_33, %c0_34] : memref<16x32xf32, #tpu.memory_space<vmem>>, vector<16x32xf32>
    %30 = vector.shape_cast %29 : vector<16x32xf32> to vector<16x4x8xf32>
    %31 = tpu.transpose %30, [1, 0, 2] : vector<16x4x8xf32> -> vector<4x16x8xf32>
    "tpu.trace_start"() <{level = 10 : i32, message = "hqd,hkd->hqk"}> : () -> ()
    %cst_35 = arith.constant dense<0.000000e+00> : vector<4x8x16xf32>
    %32 = tpu.matmul %25, %28, %cst_35 {dimension_numbers = #tpu.dot_dimension_numbers<[2], [2], [1], [1], [0, 0, 0, 1, 1, 1], [0], [0]>} : vector<4x8x8xf32>, vector<4x16x8xf32>, vector<4x8x16xf32> -> vector<4x8x16xf32>
    "tpu.trace_stop"() : () -> ()
    %33 = vector.shape_cast %3 : vector<1x16xf32> to vector<1x1x16xf32>
    %34 = vector.broadcast %33 : vector<1x1x16xf32> to vector<4x8x16xf32>
    %35 = arith.addf %32, %34 : vector<4x8x16xf32>
    %cst_36 = arith.constant dense<0xFF800000> : vector<4x8xf32>
    %36 = vector.multi_reduction <maximumf>, %35, %cst_36 [2] : vector<4x8x16xf32> to vector<4x8xf32>
    %37 = vector.shape_cast %36 : vector<4x8xf32> to vector<4x8x1xf32>
    %38 = vector.broadcast %37 : vector<4x8x1xf32> to vector<4x8x16xf32>
    %39 = arith.subf %35, %38 : vector<4x8x16xf32>
    %40 = math.exp %39 : vector<4x8x16xf32>
    %cst_37 = arith.constant dense<0.000000e+00> : vector<4x8xf32>
    %41 = vector.multi_reduction <add>, %40, %cst_37 [2] : vector<4x8x16xf32> to vector<4x8xf32>
    %42 = vector.shape_cast %41 : vector<4x8xf32> to vector<4x8x1xf32>
    %43 = tpu.reciprocal %42 {approx = true} : vector<4x8x1xf32> -> vector<4x8x1xf32>
    %44 = vector.broadcast %43 : vector<4x8x1xf32> to vector<4x8x16xf32>
    %45 = arith.mulf %40, %44 : vector<4x8x16xf32>
    "tpu.trace_start"() <{level = 10 : i32, message = "hqk,hkd->hqd"}> : () -> ()
    %cst_38 = arith.constant dense<0.000000e+00> : vector<4x8x8xf32>
    %46 = tpu.matmul %45, %31, %cst_38 {dimension_numbers = #tpu.dot_dimension_numbers<[2], [1], [1], [2], [0, 0, 0, 1, 1, 2], [0], [0]>} : vector<4x8x16xf32>, vector<4x16x8xf32>, vector<4x8x8xf32> -> vector<4x8x8xf32>
    "tpu.trace_stop"() : () -> ()
    %47 = tpu.transpose %46, [1, 0, 2] : vector<4x8x8xf32> -> vector<8x4x8xf32>
    %48 = vector.shape_cast %47 : vector<8x4x8xf32> to vector<8x32xf32>
    %cst_39 = arith.constant dense<0.000000e+00> : vector<8x32xf32>
    %49 = tpu.matmul %48, %6, %cst_39 {dimension_numbers = #tpu.dot_dimension_numbers<[1], [0], [0], [1], [0, 0, 1, 1], [], []>} : vector<8x32xf32>, vector<32x32xf32>, vector<8x32xf32> -> vector<8x32xf32>
    %50 = vector.broadcast %7 : vector<1x32xf32> to vector<8x32xf32>
    %51 = arith.addf %49, %50 : vector<8x32xf32>
    %52 = arith.addf %1, %51 : vector<8x32xf32>
    %cst_40 = arith.constant dense<0.000000e+00> : vector<8xf32>
    %53 = vector.multi_reduction <add>, %52, %cst_40 [1] : vector<8x32xf32> to vector<8xf32>
    %54 = vector.shape_cast %53 : vector<8xf32> to vector<8x1xf32>
    %cst_41 = arith.constant 3.200000e+01 : f32
    %55 = vector.broadcast %cst_41 : f32 to vector<8x1xf32>
    %56 = arith.divf %54, %55 : vector<8x1xf32>
    %57 = vector.broadcast %56 : vector<8x1xf32> to vector<8x32xf32>
    %58 = arith.subf %52, %57 : vector<8x32xf32>
    %59 = vector.broadcast %56 : vector<8x1xf32> to vector<8x32xf32>
    %60 = arith.subf %52, %59 : vector<8x32xf32>
    %61 = arith.mulf %58, %60 : vector<8x32xf32>
    %cst_42 = arith.constant dense<0.000000e+00> : vector<8xf32>
    %62 = vector.multi_reduction <add>, %61, %cst_42 [1] : vector<8x32xf32> to vector<8xf32>
    %63 = vector.shape_cast %62 : vector<8xf32> to vector<8x1xf32>
    %cst_43 = arith.constant 3.200000e+01 : f32
    %64 = vector.broadcast %cst_43 : f32 to vector<8x1xf32>
    %65 = arith.divf %63, %64 : vector<8x1xf32>
    %66 = vector.broadcast %56 : vector<8x1xf32> to vector<8x32xf32>
    %67 = arith.subf %52, %66 : vector<8x32xf32>
    %cst_44 = arith.constant 9.99999974E-6 : f32
    %68 = vector.broadcast %cst_44 : f32 to vector<8x1xf32>
    %69 = arith.addf %65, %68 : vector<8x1xf32>
    %70 = math.rsqrt %69 : vector<8x1xf32>
    %71 = vector.broadcast %70 : vector<8x1xf32> to vector<8x32xf32>
    %72 = arith.mulf %67, %71 : vector<8x32xf32>
    %73 = vector.broadcast %12 : vector<1x32xf32> to vector<8x32xf32>
    %74 = arith.mulf %72, %73 : vector<8x32xf32>
    %75 = vector.broadcast %13 : vector<1x32xf32> to vector<8x32xf32>
    %76 = arith.addf %74, %75 : vector<8x32xf32>
    %cst_45 = arith.constant dense<0.000000e+00> : vector<8x64xf32>
    %77 = tpu.matmul %76, %8, %cst_45 {dimension_numbers = #tpu.dot_dimension_numbers<[1], [0], [0], [1], [0, 0, 1, 1], [], []>} : vector<8x32xf32>, vector<32x64xf32>, vector<8x64xf32> -> vector<8x64xf32>
    %78 = vector.broadcast %9 : vector<1x64xf32> to vector<8x64xf32>
    %79 = arith.addf %77, %78 : vector<8x64xf32>
    %cst_46 = arith.constant 0.000000e+00 : f32
    %80 = vector.broadcast %cst_46 : f32 to vector<8x64xf32>
    %81 = arith.maximumf %79, %80 : vector<8x64xf32>
    %cst_47 = arith.constant dense<0.000000e+00> : vector<8x32xf32>
    %82 = tpu.matmul %81, %10, %cst_47 {dimension_numbers = #tpu.dot_dimension_numbers<[1], [0], [0], [1], [0, 0, 1, 1], [], []>} : vector<8x64xf32>, vector<64x32xf32>, vector<8x32xf32> -> vector<8x32xf32>
    %83 = vector.broadcast %11 : vector<1x32xf32> to vector<8x32xf32>
    %84 = arith.addf %82, %83 : vector<8x32xf32>
    %85 = arith.addf %76, %84 : vector<8x32xf32>
    %cst_48 = arith.constant dense<0.000000e+00> : vector<8xf32>
    %86 = vector.multi_reduction <add>, %85, %cst_48 [1] : vector<8x32xf32> to vector<8xf32>
    %87 = vector.shape_cast %86 : vector<8xf32> to vector<8x1xf32>
    %cst_49 = arith.constant 3.200000e+01 : f32
    %88 = vector.broadcast %cst_49 : f32 to vector<8x1xf32>
    %89 = arith.divf %87, %88 : vector<8x1xf32>
    %90 = vector.broadcast %89 : vector<8x1xf32> to vector<8x32xf32>
    %91 = arith.subf %85, %90 : vector<8x32xf32>
    %92 = vector.broadcast %89 : vector<8x1xf32> to vector<8x32xf32>
    %93 = arith.subf %85, %92 : vector<8x32xf32>
    %94 = arith.mulf %91, %93 : vector<8x32xf32>
    %cst_50 = arith.constant dense<0.000000e+00> : vector<8xf32>
    %95 = vector.multi_reduction <add>, %94, %cst_50 [1] : vector<8x32xf32> to vector<8xf32>
    %96 = vector.shape_cast %95 : vector<8xf32> to vector<8x1xf32>
    %cst_51 = arith.constant 3.200000e+01 : f32
    %97 = vector.broadcast %cst_51 : f32 to vector<8x1xf32>
    %98 = arith.divf %96, %97 : vector<8x1xf32>
    %99 = vector.broadcast %89 : vector<8x1xf32> to vector<8x32xf32>
    %100 = arith.subf %85, %99 : vector<8x32xf32>
    %cst_52 = arith.constant 9.99999974E-6 : f32
    %101 = vector.broadcast %cst_52 : f32 to vector<8x1xf32>
    %102 = arith.addf %98, %101 : vector<8x1xf32>
    %103 = math.rsqrt %102 : vector<8x1xf32>
    %104 = vector.broadcast %103 : vector<8x1xf32> to vector<8x32xf32>
    %105 = arith.mulf %100, %104 : vector<8x32xf32>
    %106 = vector.broadcast %14 : vector<1x32xf32> to vector<8x32xf32>
    %107 = arith.mulf %105, %106 : vector<8x32xf32>
    %108 = vector.broadcast %15 : vector<1x32xf32> to vector<8x32xf32>
    %109 = arith.addf %107, %108 : vector<8x32xf32>
    %c0_53 = arith.constant 0 : index
    %c0_54 = arith.constant 0 : index
    %c0_55 = arith.constant 0 : index
    %110 = vector.load %arg21[%c0_53, %c0_54, %c0_55] : memref<1x8x32xf32, #tpu.memory_space<vmem>>, vector<1x8x32xf32>
    %111 = vector.shape_cast %110 : vector<1x8x32xf32> to vector<8x32xf32>
    %112 = vector.shape_cast %109 : vector<8x32xf32> to vector<1x8x32xf32>
    tpu.vector_store %arg21[%c0_53, %c0_54, %c0_55], %112 {strides = array<i32>} : memref<1x8x32xf32, #tpu.memory_space<vmem>>, vector<1x8x32xf32>,
    return
  }
  func.func @transform_0(%arg0: i32, %arg1: i32) -> (i32, i32, i32) {
    %c0_i32 = arith.constant 0 : i32
    %c0_i32_0 = arith.constant 0 : i32
    return %arg0, %arg1, %c0_i32 : i32, i32, i32
  }
  func.func @transform_1(%arg0: i32, %arg1: i32) -> (i32, i32, i32) {
    %c0_i32 = arith.constant 0 : i32
    %c0_i32_0 = arith.constant 0 : i32
    %c0_i32_1 = arith.constant 0 : i32
    return %arg0, %c0_i32, %c0_i32_0 : i32, i32, i32
  }
  func.func @transform_2(%arg0: i32, %arg1: i32) -> (i32, i32, i32) {
    %c0_i32 = arith.constant 0 : i32
    %c0_i32_0 = arith.constant 0 : i32
    %c0_i32_1 = arith.constant 0 : i32
    return %arg0, %c0_i32, %c0_i32_0 : i32, i32, i32
  }
  func.func @transform_3(%arg0: i32, %arg1: i32) -> (i32, i32) {
    %c0_i32 = arith.constant 0 : i32
    %c0_i32_0 = arith.constant 0 : i32
    %c0_i32_1 = arith.constant 0 : i32
    return %c0_i32, %c0_i32_0 : i32, i32
  }
  func.func @transform_4(%arg0: i32, %arg1: i32) -> (i32, i32) {
    %c0_i32 = arith.constant 0 : i32
    %c0_i32_0 = arith.constant 0 : i32
    %c0_i32_1 = arith.constant 0 : i32
    return %c0_i32, %c0_i32_0 : i32, i32
  }
  func.func @transform_5(%arg0: i32, %arg1: i32) -> (i32, i32) {
    %c0_i32 = arith.constant 0 : i32
    %c0_i32_0 = arith.constant 0 : i32
    %c0_i32_1 = arith.constant 0 : i32
    return %c0_i32, %c0_i32_0 : i32, i32
  }
  func.func @transform_6(%arg0: i32, %arg1: i32) -> (i32, i32) {
    %c0_i32 = arith.constant 0 : i32
    %c0_i32_0 = arith.constant 0 : i32
    %c0_i32_1 = arith.constant 0 : i32
    return %c0_i32, %c0_i32_0 : i32, i32
  }
  func.func @transform_7(%arg0: i32, %arg1: i32) -> (i32, i32) {
    %c0_i32 = arith.constant 0 : i32
    %c0_i32_0 = arith.constant 0 : i32
    %c0_i32_1 = arith.constant 0 : i32
    return %c0_i32, %c0_i32_0 : i32, i32
  }
  func.func @transform_8(%arg0: i32, %arg1: i32) -> (i32, i32) {
    %c0_i32 = arith.constant 0 : i32
    %c0_i32_0 = arith.constant 0 : i32
    %c0_i32_1 = arith.constant 0 : i32
    return %c0_i32, %c0_i32_0 : i32, i32
  }
  func.func @transform_9(%arg0: i32, %arg1: i32) -> (i32, i32) {
    %c0_i32 = arith.constant 0 : i32
    %c0_i32_0 = arith.constant 0 : i32
    %c0_i32_1 = arith.constant 0 : i32
    return %c0_i32, %c0_i32_0 : i32, i32
  }
  func.func @transform_10(%arg0: i32, %arg1: i32) -> (i32, i32) {
    %c0_i32 = arith.constant 0 : i32
    %c0_i32_0 = arith.constant 0 : i32
    %c0_i32_1 = arith.constant 0 : i32
    return %c0_i32, %c0_i32_0 : i32, i32
  }
  func.func @transform_11(%arg0: i32, %arg1: i32) -> (i32, i32) {
    %c0_i32 = arith.constant 0 : i32
    %c0_i32_0 = arith.constant 0 : i32
    %c0_i32_1 = arith.constant 0 : i32
    return %c0_i32, %c0_i32_0 : i32, i32
  }
  func.func @transform_12(%arg0: i32, %arg1: i32) -> (i32, i32) {
    %c0_i32 = arith.constant 0 : i32
    %c0_i32_0 = arith.constant 0 : i32
    %c0_i32_1 = arith.constant 0 : i32
    return %c0_i32, %c0_i32_0 : i32, i32
  }
  func.func @transform_13(%arg0: i32, %arg1: i32) -> (i32, i32) {
    %c0_i32 = arith.constant 0 : i32
    %c0_i32_0 = arith.constant 0 : i32
    %c0_i32_1 = arith.constant 0 : i32
    return %c0_i32, %c0_i32_0 : i32, i32
  }
  func.func @transform_14(%arg0: i32, %arg1: i32) -> (i32, i32) {
    %c0_i32 = arith.constant 0 : i32
    %c0_i32_0 = arith.constant 0 : i32
    %c0_i32_1 = arith.constant 0 : i32
    return %c0_i32, %c0_i32_0 : i32, i32
  }
  func.func @transform_15(%arg0: i32, %arg1: i32) -> (i32, i32) {
    %c0_i32 = arith.constant 0 : i32
    %c0_i32_0 = arith.constant 0 : i32
    %c0_i32_1 = arith.constant 0 : i32
    return %c0_i32, %c0_i32_0 : i32, i32
  }
  func.func @transform_16(%arg0: i32, %arg1: i32) -> (i32, i32) {
    %c0_i32 = arith.constant 0 : i32
    %c0_i32_0 = arith.constant 0 : i32
    %c0_i32_1 = arith.constant 0 : i32
    return %c0_i32, %c0_i32_0 : i32, i32
  }
  func.func @transform_17(%arg0: i32, %arg1: i32) -> (i32, i32) {
    %c0_i32 = arith.constant 0 : i32
    %c0_i32_0 = arith.constant 0 : i32
    %c0_i32_1 = arith.constant 0 : i32
    return %c0_i32, %c0_i32_0 : i32, i32
  }
  func.func @transform_18(%arg0: i32, %arg1: i32) -> (i32, i32) {
    %c0_i32 = arith.constant 0 : i32
    %c0_i32_0 = arith.constant 0 : i32
    %c0_i32_1 = arith.constant 0 : i32
    return %c0_i32, %c0_i32_0 : i32, i32
  }
  func.func @transform_19(%arg0: i32, %arg1: i32) -> (i32, i32, i32) {
    %c0_i32 = arith.constant 0 : i32
    %c0_i32_0 = arith.constant 0 : i32
    return %arg0, %arg1, %c0_i32 : i32, i32, i32
  }
}

</mosaic_0001>

<bundles_post_ra>
// kernel: tpu_custom_call.1
= control target key start
LH: loop header
LB: loop body
LE: loop exit
PB: predicated region body
PF: predicated region fallthrough
CT: control target
= control target key end

     0   :  { %s4504_s0 = inlined_call_operand.vmem [shape: f32[2,16,32], index: 0, kind: input, shape index: {}]   ;;  %s4505_s1 = inlined_call_operand.vmem [shape: f32[2,16,32], index: 1, kind: input, shape index: {}]   ;;  %s4506_s2 = inlined_call_operand.vmem [shape: f32[2,1,16], index: 2, kind: input, shape index: {}]   ;;  %s4507_s3 = inlined_call_operand.vmem [shape: f32[32,32], index: 3, kind: input, shape index: {}]   ;;  %s4508_s4 = inlined_call_operand.vmem [shape: f32[1,32], index: 4, kind: input, shape index: {}]   ;;  %s4509_s5 = inlined_call_operand.hbm [shape: f32[32,32], index: 5, kind: input, shape index: {}]   ;;  %s4510_s6 = inlined_call_operand.vmem [shape: f32[1,32], index: 6, kind: input, shape index: {}]   ;;  %s4511_s7 = inlined_call_operand.hbm [shape: f32[32,32], index: 7, kind: input, shape index: {}]   ;;  %s4512_s8 = inlined_call_operand.vmem [shape: f32[1,32], index: 8, kind: input, shape index: {}]   ;;  %s4513_s9 = inlined_call_operand.hbm [shape: f32[32,32], index: 9, kind: input, shape index: {}]   ;;  %s4514_s10 = inlined_call_operand.vmem [shape: f32[1,32], index: 10, kind: input, shape index: {}]   ;;  %s4515_s11 = inlined_call_operand.hbm [shape: f32[32,64], index: 11, kind: input, shape index: {}]   ;;  %s4516_s12 = inlined_call_operand.vmem [shape: f32[1,64], index: 12, kind: input, shape index: {}]   ;;  %s4517_s13 = inlined_call_operand.vmem [shape: f32[64,32], index: 13, kind: input, shape index: {}]   ;;  %s4518_s14 = inlined_call_operand.vmem [shape: f32[1,32], index: 14, kind: input, shape index: {}]   ;;  %s4519_s15 = inlined_call_operand.vmem [shape: f32[1,32], index: 15, kind: input, shape index: {}]   ;;  %s4520_s16 = inlined_call_operand.vmem [shape: f32[1,32], index: 16, kind: input, shape index: {}]   ;;  %s4521_s17 = inlined_call_operand.vmem [shape: f32[1,32], index: 17, kind: input, shape index: {}]   ;;  %s4522_s18 = inlined_call_operand.vmem [shape: f32[1,32], index: 18, kind: input, shape index: {}]   ;;  %s4523_s19 = inlined_call_operand.hbm [shape: f32[2,16,32], index: 19, kind: output, shape index: {}]  }
   0x1   :  { %4541 = sst [smem:[#allocation27_spill]] %s4504_s0 }
   0x2   :  { %4542 = sst [smem:[#allocation28_spill]] %s4505_s1 }
   0x3   :  { %4543 = sst [smem:[#allocation29_spill]] %s4506_s2 }
   0x4   :  { %4544 = sst [smem:[#allocation30_spill]] %s4507_s3 }
   0x5   :  { %4545 = sst [smem:[#allocation31_spill]] %s4509_s5 }
   0x6   :  { %4546 = sst [smem:[#allocation32_spill]] %s4510_s6 }
   0x7   :  { %4547 = sst [smem:[#allocation33_spill]] %s4511_s7 }
   0x8   :  { %4548 = sst [smem:[#allocation34_spill]] %s4512_s8 }
   0x9   :  { %4549 = sst [smem:[#allocation35_spill]] %s4513_s9 }
   0xa   :  { %4550 = sst [smem:[#allocation36_spill]] %s4520_s16 }
   0xb   :  { %4551 = sst [smem:[#allocation37_spill]] %s4521_s17 }
   0xc   :  { %4552 = sst [smem:[#allocation38_spill]] %s4522_s18 }
   0xd   :  { %4553 = sst [smem:[#allocation39_spill]] %s4523_s19 }
   0xe   :  { %24 = vsyncpa [#allocation5], 0 }
   0xf   :  { %25 = vsyncpa [#allocation8], 0 }
  0x10   :  { %26 = vsyncpa [#allocation11], 0 }
  0x11   :  { %27 = vsyncpa [#allocation6], 0 }
  0x12   :  { %29 = vsyncpa [#allocation6 + $0x1], 0  ;;  %s3837_s0 = smov 0   ;;  %s3839_s30 = smov 0  }
  0x13   :  { %s3841_s20 = smov 0   ;;  %s3843_s21 = smov 0  }
  0x14   :  { %s3845_s1 = smov 0   ;;  %s3847_s22 = smov 0  }
  0x15   :  { %s3849_s2 = smov 0   ;;  %s3851_s23 = smov 0  }
  0x16 LB: > { %4554 = sst [smem:[#allocation17_spill]] %s3689_s0  ;;  %s3018_s24 = sadd.s32 4294967295, %s3717_s23   ;;  %s3717_s23 = sphi %s3851_s23, %s35_s23   ;;  %s3713_s2 = sphi %s3849_s2, %s4600_s2   ;;  %s3709_s22 = sphi %s3847_s22, %s4599_s22   ;;  %s3705_s1 = sphi %s3845_s1, %s4598_s1   ;;  %s3701_s21 = sphi %s3843_s21, %s4597_s21   ;;  %s3697_s20 = sphi %s3841_s20, %s4596_s20   ;;  %s3693_s30 = sphi %s3839_s30, %s4602_s30   ;;  %s3689_s0 = sphi %s3837_s0, %s4601_s0  }
  0x17   : > { %4555 = sst [smem:[#allocation18_spill]] %s3697_s20  ;;  %s3019_s25 = sadd.s32 4294967294, %s3717_s23  }
  0x18   : > { %4556 = sst [smem:[#allocation19_spill]] %s3709_s22  ;;  %s44_s3 = sadd.s32 1, %s3709_s22 }
  0x19   : > { %4557 = sst [smem:[#allocation20_spill]] %s3713_s2  ;;  %s47_s26 = sadd.s32 1, %s3713_s2 }
  0x1a   : > { %4558 = sst [smem:[#allocation21_spill]] %s3717_s23  ;;  %p45_p0 = scmp.ge.s32.totalorder %s44_s3, 2 }
  0x1b   : > { %s472_s27 = sadd.s32 1, %s3697_s20  ;;  %p482_p1 = scmp.ne.s32.totalorder %s3697_s20, %s3693_s30 }
  0x1c   : > { %p483_p2 = scmp.eq.s32.totalorder %s3018_s24, 3  ;;  %s4604_s3 = smov (%p45_p0, %s44_s3), 0 }
  0x1d   : > { %4559 = sst [smem:[#allocation22_spill]] %s4604_s3  ;;  %s4606_s26 = smov (!%p45_p0, %s47_s26), %s3713_s2 }
  0x1e   : > { %s468_s28 = ssub.s32 %s3709_s22, %s4604_s3  ;;  %p3889_p3 = por %p483_p2, %p482_p1 }
  0x1f   : > { %p49_p4 = scmp.ge.s32.totalorder %s4606_s26, 2  ;;  %p488_p5 = scmp.ne.s32.totalorder %s3693_s30, %s3689_s0 }
  0x20   : > { %s4560_s29 = scalar_select %p3889_p3, 1, 0 }
  0x21   : > { %p489_p6 = scmp.eq.s32.totalorder %s3019_s25, 3  ;;  %p3020_p7 = scmp.ge.s32.totalorder %s3717_s23, 1 }
  0x22   : > { %4561 = sst [smem:[#allocation23_spill]] %s4560_s29  ;;  %s4608_s26 = smov (%p49_p4, %s4606_s26), 0 }
  0x23   : > { %4562 = sst [smem:[#allocation24_spill]] %s4608_s26  ;;  %p3898_p8 = por %p489_p6, %p488_p5 }
  0x24   : > { %p496_p9 = scmp.lt.s32.totalorder %s3717_s23, 5  ;;  %s467_s8 = ssub.s32 %s3713_s2, %s4608_s26 }
  0x25   : > { %s4563_s19 = scalar_select %p3898_p8, 1, 0 }
  0x26   : > { %s469_s6 = sor.u32 %s468_s28, %s467_s8  ;;  %p3905_p10 = pnand %p3020_p7, %p496_p9 }
  0x27   : > { %4564 = sst [smem:[#allocation25_spill]] %s4563_s19  ;;  %p470_p11 = scmp.eq.s32.totalorder %s469_s6, 0 }
  0x28   : > { %s4565_s3 = scalar_select %p3905_p10, 1, 0 }
  0x29   : > { %p3909_p12 = scmp.eq.s32.totalorder %s3018_s24, 0  ;;  %p3372_p13 = pneg %p3905_p10 }
  0x2a   : > { %s3916_s25 = scalar_select %p470_p11, %s3697_s20, %s472_s27  }
  0x2b   : > { %s4566_s22 = scalar_select %p3909_p12, 1, 0 }
  0x2c   : > { %4567 = sst [smem:[#allocation26_spill]] %s3916_s25  ;;  %p3920_p0 = pnand %p3909_p12, %p3372_p13 }
  0x2d   : > { %s3719_s8 = smov [#allocation7]   ;;  %s4569_s7 = sld [smem:[#allocation33_spill]] }
  0x2e   : > { %s530_s28 = sshll.u32 %s3719_s8, 4  ;;  %p3932_p2 = pneg %p3920_p0  ;;  %s531_s28 = int_to_ptr.vmem [resolvable:$true] %s530_s28 }
  0x33   : > { %s3499_s24 = scalar_lea.hbm %s4569_s7, 512 }
  0x34   : > { %p3500_p1 = scmp.ne.s32.totalorder %s4569_s7, %s3499_s24  ;;  %p3506_p6 = scmp.lt.u32.totalorder %s3499_s24, %s4569_s7 }
  0x36   : > { %p3502_p4 = pnand %p3932_p2, %p3500_p1 }
  0x38   : > { %p3503_p5 = pneg %p3502_p4 }
  0x3a   : > { %p3508_p7 = pnand %p3506_p6, %p3503_p5 }
  0x3c   : > { %3511 = shalt.err (!%p3508_p7)
}
  0x3d   : > { %s3512_s26 = scalar_lea.vmem %s531_s28, 512  ;;  %p3520_p8 = scmp.lt.s32.totalorder %s531_s28, %s531_s28 }
  0x3e   : > { %p3513_p9 = scmp.ne.s32.totalorder %s531_s28, %s3512_s26  ;;  %p3521_p3 = scmp.lt.s32.totalorder %s3512_s26, %s3512_s26 }
  0x40   : > { %p3515_p11 = pnand %p3513_p9, %p3932_p2  ;;  %p3522_p12 = por %p3521_p3, %p3520_p8 }
  0x42   : > { %p3516_p13 = pneg %p3515_p11 }
  0x44   : > { %p3523_p10 = pnand %p3522_p12, %p3516_p13 }
  0x46   : > { %3526 = shalt.err (!%p3523_p10)
}
  0x47   : > { %s3720_s0 = smov 128   ;;  %s3721_s2 = smov 8  }
  0x48   : > { %3378 = dma.hbm_to_vmem [thread:$0]  (!%p3920_p0), %s4569_s7, 512, %s531_s28, [#allocation8], %s3720_s0, %s3720_s0, %s3721_s2  }
  0x49   : > { %s3722_s24 = smov [#allocation4]   ;;  %s3723_s20 = smov [#allocation9]  }
  0x4a   : > { %s514_s8 = sshll.u32 %s3722_s24, 4  ;;  %s546_s23 = sshll.u32 %s3723_s20, 4  ;;  %s515_s8 = int_to_ptr.vmem [resolvable:$true] %s514_s8  ;;  %s3951_s23 = int_to_ptr.vmem [resolvable:$true] %s546_s23 }
  0x4b   : > { %s4571_s5 = sld [smem:[#allocation31_spill]] }
  0x51   : > { %s3527_s18 = scalar_lea.hbm %s4571_s5, 512 }
  0x52   : > { %p3528_p3 = scmp.ne.s32.totalorder %s4571_s5, %s3527_s18  ;;  %p3534_p12 = scmp.lt.u32.totalorder %s3527_s18, %s4571_s5 }
  0x54   : > { %p3530_p8 = pnand %p3528_p3, %p3932_p2 }
  0x56   : > { %p3531_p10 = pneg %p3530_p8 }
  0x58   : > { %p3536_p1 = pnand %p3534_p12, %p3531_p10 }
  0x5a   : > { %3539 = shalt.err (!%p3536_p1)
}
  0x5b   : > { %s3540_s20 = scalar_lea.vmem %s515_s8, 512  ;;  %p3548_p7 = scmp.lt.s32.totalorder %s515_s8, %s515_s8 }
  0x5c   : > { %p3541_p4 = scmp.ne.s32.totalorder %s515_s8, %s3540_s20  ;;  %p3549_p9 = scmp.lt.s32.totalorder %s3540_s20, %s3540_s20 }
  0x5e   : > { %p3543_p5 = pnand %p3541_p4, %p3932_p2  ;;  %p3550_p11 = por %p3549_p9, %p3548_p7 }
  0x60   : > { %p3544_p6 = pneg %p3543_p5 }
  0x62   : > { %p3551_p13 = pnand %p3550_p11, %p3544_p6 }
  0x64   : > { %3554 = shalt.err (!%p3551_p13)
}
  0x65   : > { %3375 = dma.hbm_to_vmem [thread:$0]  (!%p3920_p0), %s4571_s5, 512, %s515_s8, [#allocation5], %s3720_s0, %s3720_s0, %s3721_s2  }
  0x66   : > { %s4572_s9 = sld [smem:[#allocation35_spill]] }
  0x6c   : > { %s3555_s6 = scalar_lea.hbm %s4572_s9, 512 }
  0x6d   : > { %p3556_p3 = scmp.ne.s32.totalorder %s4572_s9, %s3555_s6  ;;  %p3562_p12 = scmp.lt.u32.totalorder %s3555_s6, %s4572_s9 }
  0x6f   : > { %p3558_p8 = pnand %p3556_p3, %p3932_p2 }
  0x71   : > { %p3559_p10 = pneg %p3558_p8 }
  0x73   : > { %p3564_p1 = pnand %p3562_p12, %p3559_p10 }
  0x75   : > { %3567 = shalt.err (!%p3564_p1)
}
  0x76   : > { %s3568_s8 = scalar_lea.vmem %s3951_s23, 512  ;;  %p3576_p7 = scmp.lt.s32.totalorder %s3951_s23, %s3951_s23 }
  0x77   : > { %p3569_p4 = scmp.ne.s32.totalorder %s3951_s23, %s3568_s8  ;;  %p3577_p9 = scmp.lt.s32.totalorder %s3568_s8, %s3568_s8 }
  0x79   : > { %p3571_p5 = pnand %p3569_p4, %p3932_p2  ;;  %p3578_p11 = por %p3577_p9, %p3576_p7 }
  0x7b   : > { %p3572_p6 = pneg %p3571_p5 }
  0x7d   : > { %p3579_p13 = pnand %p3578_p11, %p3572_p6 }
  0x7f   : > { %3582 = shalt.err (!%p3579_p13)
}
  0x80   : > { %3381 = dma.hbm_to_vmem [thread:$0]  (!%p3920_p0), %s4572_s9, 512, %s3951_s23, [#allocation8], %s3720_s0, %s3720_s0, %s3721_s2  }
  0x81   : > { %s3724_s17 = smov [#allocation10]   ;;  %s3583_s24 = scalar_lea.hbm %s4515_s11, 512 }
  0x82   : > { %s562_s18 = sshll.u32 %s3724_s17, 4  ;;  %p3584_p3 = scmp.ne.s32.totalorder %s4515_s11, %s3583_s24  ;;  %s563_s18 = int_to_ptr.vmem [resolvable:$true] %s562_s18 }
  0x83   : > { %p3590_p12 = scmp.lt.u32.totalorder %s3583_s24, %s4515_s11 }
  0x84   : > { %p3586_p8 = pnand %p3584_p3, %p3932_p2 }
  0x86   : > { %p3587_p10 = pneg %p3586_p8 }
  0x88   : > { %p3592_p1 = pnand %p3590_p12, %p3587_p10 }
  0x8a   : > { %3595 = shalt.err (!%p3592_p1)
}
  0x8b   : > { %s3596_s23 = scalar_lea.vmem %s563_s18, 512  ;;  %p3604_p7 = scmp.lt.s32.totalorder %s563_s18, %s563_s18 }
  0x8c   : > { %p3597_p4 = scmp.ne.s32.totalorder %s563_s18, %s3596_s23  ;;  %p3605_p9 = scmp.lt.s32.totalorder %s3596_s23, %s3596_s23 }
  0x8e   : > { %p3599_p5 = pnand %p3597_p4, %p3932_p2  ;;  %p3606_p11 = por %p3605_p9, %p3604_p7 }
  0x90   : > { %p3600_p6 = pneg %p3599_p5 }
  0x92   : > { %p3607_p13 = pnand %p3606_p11, %p3600_p6 }
  0x94   : > { %3610 = shalt.err (!%p3607_p13)
}
  0x95   : > { %3384 = dma.hbm_to_vmem [thread:$0]  (!%p3920_p0), %s4515_s11, 512, %s563_s18, [#allocation11], %s3720_s0, %s3720_s0, %s3721_s2  }
  0x96   : > { %p4573_p3 = scmp.ne.s32.totalorder %s4565_s3, 0 }
  0x97   : > { %p4574_p2 = scmp.ne.s32.totalorder (!%p4573_p3), %s4566_s22, 0 }
  0x98   : > { %624 = sbr.rel (%p4573_p3) target bundleno = 2945 (0xb81), region = 96 }
  0x9f   : > { %3672 = dma.done.wait (%p4574_p2), [#allocation5], 512  }
  0xa0   : > { %3674 = vsyncadd (%p4574_p2), [#allocation5], 4294966784 }
  0xa1   : > { %3676 = dma.done.wait (%p4574_p2), [#allocation8], 1024  }
  0xa2   : > { %3678 = vsyncadd (%p4574_p2), [#allocation8], 4294966272 }
  0xa3   : > { %3680 = dma.done.wait (%p4574_p2), [#allocation11], 512  }
  0xa4   : > { %3682 = vsyncadd (%p4574_p2), [#allocation11], 4294966784  ;;  %p703_p0 = scmp.lt.s32.totalorder %s3705_s1, 1  ;;  %p705_p8 = scmp.lt.s32.totalorder %s3701_s21, 1  ;;  %v4082_v6 = vld [vmem:[%s4508_s4] ss:$0 sm:$0xff] }
  0xa5   : > { %s4575_s6 = sld [smem:[#allocation28_spill]]  ;;  %s4576_s28 = sld [smem:[#allocation29_spill]]  ;;  %v4084_v7 = vld [vmem:[#allocation9] sm:$0xff]  ;;  %v4086_v8 = vld [vmem:[#allocation9 + $0x8] sm:$0xff]  ;;  %v4088_v9 = vld [vmem:[#allocation9 + $0x10] sm:$0xff] }
  0xa6   : > { %s704_s3 = scalar_select %p703_p0, %s3705_s1, 1  ;;  %v4090_v10 = vld [vmem:[#allocation9 + $0x18] sm:$0xff]  ;;  %v4095_v11 = vld [vmem:[%s4514_s10] ss:$0 sm:$0xff]  ;;  %v4099_v13 = vld [vmem:[#allocation10 + $0x8] sm:$0xff] }
  0xa7   : > { %s706_s27 = scalar_select %p705_p8, %s3701_s21, 1  ;;  %v4097_v12 = vld [vmem:[#allocation10] sm:$0xff]  ;;  %v4101_v14 = vld [vmem:[#allocation10 + $0x10] sm:$0xff]  ;;  %v4103_v15 = vld [vmem:[#allocation10 + $0x18] sm:$0xff] }
  0xa8   : > { %s3032_s0 = sshll.u32 %s704_s3, 1  ;;  %s3089_s2 = sshll.u32 %s704_s3, 4  ;;  %v4108_v16 = vld [vmem:[%s4516_s12] ss:$0 sm:$0xff]  ;;  %v4118_v18 = vld [vmem:[%s4517_s13 + $0x8] sm:$0xff]  ;;  %v4123_v19 = vld [vmem:[%s4517_s13 + $0x10] sm:$0xff] }
  0xa9   : > { %s708_s17 = sadd.s32 %s3032_s0, %s706_s27  ;;  %s4577_s16 = sld [smem:[#allocation27_spill]]  ;;  %v4113_v17 = vld [vmem:[%s4517_s13] sm:$0xff]  ;;  %v4128_v20 = vld [vmem:[%s4517_s13 + $0x18] sm:$0xff]  ;;  %v4138_v22 = vld [vmem:[%s4517_s13 + $0x28] sm:$0xff] }
  0xaa   : > { %s3033_s22 = sshll.u32 %s708_s17, 3  ;;  %s4578_s9 = sld [smem:[#allocation30_spill]]  ;;  %v4133_v21 = vld [vmem:[%s4517_s13 + $0x20] sm:$0xff]  ;;  %v4143_v23 = vld [vmem:[%s4517_s13 + $0x30] sm:$0xff]  ;;  %v4148_v24 = vld [vmem:[%s4517_s13 + $0x38] sm:$0xff] }
  0xab   : > { %s4043_s24 = scalar_lea.vmem %s4575_s6, %s3089_s2  ;;  %s718_s8 = scalar_lea.vmem %s4576_s28, %s704_s3  ;;  %v4153_v25 = vld [vmem:[%s4518_s14] ss:$0 sm:$0xff] }
  0xac   : > { %v4051_v0 = vld [vmem:[%s718_s8] ss:$0 sm:$0xff]  ;;  %s4579_s2 = sand.u32 1, %s3693_s30   ;;  %s4582_s29 = sld [smem:[#allocation38_spill]] }
  0xad   : > { %s4065_s17 = sshll.u32 %s4579_s2, 3  ;;  %v4158_v26 = vld [vmem:[%s4519_s15] ss:$0 sm:$0xff]  ;;  %s4581_s2 = sld [smem:[#allocation37_spill]] }
  0xae   : > { %s702_s6 = scalar_lea.vmem [#allocation12], %s4065_s17  ;;  %p3036_p10 = scmp.ne.s32.totalorder %s3701_s21, 0 }
  0xaf   : > { %s710_s5 = scalar_lea.vmem %s4577_s16, %s3033_s22  ;;  %s4580_s16 = sld [smem:[#allocation36_spill]]  ;;  %v755_v30 = vld [vmem:[#allocation4] sm:$0xff] (!%p3036_p10)  ;;  %v756_v31 = vld [vmem:[#allocation4 + $0x8] sm:$0xff] (!%p3036_p10)  ;;  %vm771_vm0 = vcmask (!%p3036_p10), 261120   ;;  %v757_v35 = vld [vmem:[#allocation4 + $0x10] sm:$0xff] (!%p3036_p10) }
  0xb0   : > { %v4056_v1 = vld [vmem:[%s4578_s9] sm:$0xff]  ;;  %v4061_v2 = vld [vmem:[%s4578_s9 + $0x8] sm:$0xff]  ;;  %v4072_v4 = vld [vmem:[%s4578_s9 + $0x10] sm:$0xff]  ;;  %752 = sbr.rel (%p3036_p10) target bundleno = 407 (0x197), region = 116  ;;  %v3280_v33 = vpack.c.bf16 (!%p3036_p10), %v756_v31, %v755_v30  ;;  %s4584_s25 = sld [smem:[#allocation34_spill]] (!%p3036_p10) }
  0xb1   : > { %v4067_v3 = vld [vmem:[%s710_s5] sm:$0xff]  ;;  %v4077_v5 = vld [vmem:[%s4578_s9 + $0x18] sm:$0xff]  ;;  %v761_v34 = vld [vmem:[#allocation7 + $0x8] sm:$0xff] (!%p3036_p10)  ;;  %s4583_s5 = sld [smem:[#allocation32_spill]] (!%p3036_p10) }
  0xb2   : > { %v4173_v29 = vld [vmem:[%s4582_s29] ss:$0 sm:$0xff]  ;;  %v758_v36 = vld [vmem:[#allocation4 + $0x18] sm:$0xff] (!%p3036_p10)  ;;  %v762_v39 = vld [vmem:[#allocation7 + $0x10] sm:$0xff] (!%p3036_p10)  ;;  %3281 = vmatprep.subr.bf16.mxu0 (!%p3036_p10), %v3280_v33 }
  0xb3   : > { %v4168_v28 = vld [vmem:[%s4581_s2] ss:$0 sm:$0xff]  ;;  %v3284_v38 = vpack.c.bf16 (!%p3036_p10), %v758_v36, %v757_v35  ;;  %v763_v40 = vld [vmem:[#allocation7 + $0x18] sm:$0xff] (!%p3036_p10)  ;;  %3283 = vmatpush3.bf16.msra.mxu0 (!%p3036_p10), %v3280_v33  ;;  %v754_v43 = vld [vmem:[%s4043_s24 + $0x8] sm:$0xff] (!%p3036_p10) }
  0xb4   : > { %v760_v32 = vld [vmem:[#allocation7] sm:$0xff] (!%p3036_p10)  ;;  %v3292_v42 = vpack.c.bf16 (!%p3036_p10), %v763_v40, %v762_v39 }
  0xb5   : > { %v4163_v27 = vld [vmem:[%s4580_s16] ss:$0 sm:$0xff]  ;;  %v3288_v37 = vpack.c.bf16 (!%p3036_p10), %v761_v34, %v760_v32  ;;  %3285 = vmatprep.subr.bf16.mxu0 (!%p3036_p10), %v3284_v38 }
  0xb6   : > { %v753_v41 = vld [vmem:[%s4043_s24] sm:$0xff] (!%p3036_p10) }
  0xb7   : > { %3158 = vmatprep.mubr.msk.f32.mxu0 %vm771_vm0, %v753_v41  ;;  %3289 = vmatprep.subr.bf16.mxu1 %v3288_v37  ;;  %v3037_v44 = vld [vmem:[%s4583_s5] ss:$0 sm:$0xff] }
  0xb8   : > { %3291 = vmatpush3.bf16.msra.mxu1 %v3288_v37  ;;  %3169 = vmatprep.mubr.msk.f32.mxu1 %vm771_vm0, %v753_v41  ;;  %v3040_v45 = vld [vmem:[%s4584_s25] ss:$0 sm:$0xff] }
  0xb9   : > { %3293 = vmatprep.subr.bf16.mxu1 %v3292_v42  ;;  %3287 = vmatpush3.bf16.msra.mxu0 %v3284_v38 }
  0xbc   : > { %3295 = vmatpush3.bf16.msra.mxu1 %v3292_v42  ;;  %3159 = vmatmul.mubr.msk.f32.vlgmr.msra.gmra.mrb[0].mxu0 %vm771_vm0, %v754_v43 }
  0xbf   : > { %3170 = vmatmul.mubr.msk.f32.vlgmr.msra.gmra.mrb[0].mxu1 %vm771_vm0, %v754_v43 }
 0x18f   : > { %v3160_v46 = vpop.f32.mrb[0].mxu0 }
 0x190   : > { %v850_v47 = vadd.f32 %v3160_v46, %v3037_v44  ;;  %v844_v49 = vpop.f32.mrb[1].mxu0 }
 0x191   : > { %v845_v51 = vadd.f32 %v3037_v44, %v844_v49 }
 0x192   : > { %v3171_v48 = vpop.f32.mrb[0].mxu1  ;;  %854 = vst.msk [vmem:[#allocation2 + $0x8] sm:$0xff] %vm771_vm0, %v850_v47 }
 0x193   : > { %v933_v50 = vadd.f32 %v3171_v48, %v3040_v45  ;;  %v927_v52 = vpop.f32.mrb[1].mxu1  ;;  %853 = vst.msk [vmem:[#allocation2] sm:$0xff] %vm771_vm0, %v845_v51 }
 0x194   : > { %v928_v53 = vadd.f32 %v3040_v45, %v927_v52 }
 0x195   : > { %937 = vst.msk [vmem:[#allocation3 + $0x8] sm:$0xff] %vm771_vm0, %v933_v50 }
 0x196   : > { %936 = vst.msk [vmem:[#allocation3] sm:$0xff] %vm771_vm0, %v928_v53 }
 0x197 PF: > { %v3297_v54 = vpack.c.bf16 %v4061_v2, %v4056_v1  ;;  %v3725_v56 = vmov 0.0|0.0   ;;  %s3726_s24 = smov 112   ;;  %v3300_v57 = vpack.c.bf16 %v4077_v5, %v4072_v4  ;;  %vm3727_vm1 = vmmov 0   ;;  %s3729_s28 = smov 120  }
 0x198   : > { %3296 = vmatprep.subr.bf16.mxu1 %v3725_v56  ;;  %v3728_v58 = vmov 0.0   ;;  %3306 = vmatprep.subr.bf16.mxu0 %v3725_v56  ;;  %vm944_vm2 = vcmask 261120   ;;  %s3730_s8 = smov 104   ;;  %v3731_v60 = vmov 1983009808   ;;  %v1034_v62 = vlaneseq  ;;  %s3733_s23 = smov 16  }
 0x199   : > { %3298 = vmatpush3.bf16.msra.mxu1 %v3297_v54  ;;  %3180 = vmatprep.mubr.msk.f32.mxu1 %vm3727_vm1, %v3728_v58  ;;  %v1166_v59 = vld [vmem:[#allocation2 + $0x8] sm:$0xff]  ;;  %v1032_v61 = vunpack.c.l.s4 %v3731_v60  ;;  %v3732_v5 = vmov 1934713408   ;;  %vm1759_vm3 = vcmask 64512   ;;  %vm2076_vm5 = vcmask 130048   ;;  %s3734_s20 = smov 8  }
 0x19a   : > { %v1165_v55 = vld [vmem:[#allocation2] sm:$0xff]  ;;  %3299 = vmatprep.subr.bf16.mxu1 %v3725_v56  ;;  %3194 = vmatprep.mubr.msk.f32.mxu0 %vm3727_vm1, %v3728_v58  ;;  %v1035_v2 = vshrl.u32 %v1034_v62, 7  ;;  %v1064_v30 = vunpack.c.l.s4 %v3732_v5  ;;  %vm4253_vm4 = vmpackc.low %vm1759_vm3, %vm1759_vm3  ;;  %s3735_s16 = smov 24   ;;  %vm2563_vm6 = vcmask 195584   ;;  %vm2759_vm7 = vcmask 523264   ;;  %s4587_s27 = sld [smem:[#allocation23_spill]] }
 0x19b   : > { %1175 = vrot.lane.b32.xlu1 %v1165_v55, %s3726_s24  ;;  %1169 = vrot.lane.b32.xlu0 %v1165_v55, %s3729_s28  ;;  %v1033_v1 = vunpack.c.0.s8 %v1032_v61  ;;  %s3085_s0 = sshll.u32 %s3705_s1, 1  ;;  %s2878_s18 = sshll.u32 %s702_s6, 4  ;;  %s4448_s18 = int_to_ptr.vmem [resolvable:$true] %s2878_s18 }
 0x19c   : > { %v1065_v36 = vunpack.c.0.s8 %v1064_v30  ;;  %s2874_s2 = sadd.s32 %s3701_s21, %s3085_s0  ;;  %s4588_s19 = sld [smem:[#allocation39_spill]] }
 0x19d   : > { %3301 = vmatpush3.bf16.msra.mxu1 %v3300_v57  ;;  %v4215_v32 = vsub.s32 %v1033_v1, %v1035_v2  ;;  %s3086_s3 = sshll.u32 %s2874_s2, 7  ;;  %s4589_s21 = sand.u32 1, %s3693_s30  }
 0x19e   : > { %3302 = vmatprep.subr.bf16.mxu1 %v3725_v56  ;;  %v4219_v44 = vsub.s32 %v1065_v36, %v1035_v2  ;;  %s2863_s1 = scalar_lea.sflag [#allocation6], %s4589_s21  ;;  %s3611_s22 = scalar_lea.vmem %s4448_s18, 128 }
 0x19f   : > { %1177 = vrot.lane.b32.xlu1 %v1166_v59, %s3726_s24  ;;  %1171 = vrot.lane.b32.xlu0 %v1166_v59, %s3729_s28  ;;  %p3612_p12 = scmp.ne.s32.totalorder %s4448_s18, %s3611_s22  ;;  %s3736_s26 = smov [#allocation12]  }
 0x1a0   : > { %3181 = vmatmul.mubr.msk.f32.vlgmr.msra.gmra.mrb[0].mxu1 %vm944_vm2, %v4067_v3  ;;  %p4590_p1 = scmp.ne.s32.totalorder %s4587_s27, 0  ;;  %s3615_s25 = sshll.u32 %s3736_s26, 4  ;;  %s3616_s25 = int_to_ptr.vmem [resolvable:$false] %s3615_s25 }
 0x1a1   : > { %3187 = vmatprep.mubr.msk.f32.mxu1 %vm3727_vm1, %v3728_v58  ;;  %p3618_p6 = scmp.lt.s32.totalorder %s4448_s18, %s3616_s25 }
 0x1a2   : > { %s4446_s5 = scalar_lea.hbm %s4588_s19, %s3086_s3  ;;  %p3613_p4 = pnand %p3612_p12, %p4590_p1 }
 0x1a3   : > { %1183 = vrot.lane.b32.xlu1 %v1166_v59, %s3730_s8  ;;  %1181 = vrot.lane.b32.xlu0 %v1165_v55, %s3730_s8 }
 0x1a4   : > { %p3614_p5 = pneg %p3613_p4 }
 0x20d   : > { %v1176_v63 = vpop.permute.xlu1 %1175  ;;  %v1170_v4 = vpop.permute.xlu0 %1169 }
 0x20e   : > { %v1187_v37 = vcombine.low %v1165_v55, %v1176_v63  ;;  %v1188_v38 = vcombine.high %v1165_v55, %v1176_v63 }
 0x210   : > { %v1195_v50 = vrot.slane %v1187_v37, %v4215_v32  ;;  %v1202_v51 = vrot.slane %v1188_v38, %v4215_v32 }
 0x211   : > { %v1178_v31 = vpop.permute.xlu1 %1177  ;;  %v1172_v35 = vpop.permute.xlu0 %1171 }
 0x212   : > { %v1255_v33 = vcombine.low %v1166_v59, %v1178_v31  ;;  %v1256_v34 = vcombine.high %v1166_v59, %v1178_v31 }
 0x214   : > { %v1263_v40 = vrot.slane %v1255_v33, %v4215_v32  ;;  %v1270_v41 = vrot.slane %v1256_v34, %v4215_v32 }
 0x215   : > { %v1184_v39 = vpop.permute.xlu1 %1183  ;;  %v1182_v45 = vpop.permute.xlu0 %1181 }
 0x216   : > { %v1271_v42 = vcombine.low %v1172_v35, %v1184_v39  ;;  %v1272_v43 = vcombine.high %v1172_v35, %v1184_v39  ;;  %v1203_v48 = vcombine.low %v1170_v4, %v1182_v45  ;;  %v1204_v49 = vcombine.high %v1170_v4, %v1182_v45 }
 0x218   : > { %v1279_v46 = vrot.slane %v1271_v42, %v4215_v32  ;;  %v1286_v47 = vrot.slane %v1272_v43, %v4215_v32  ;;  %v1211_v57 = vrot.slane %v1203_v48, %v4215_v32  ;;  %v1218_v59 = vrot.slane %v1204_v49, %v4215_v32 }
 0x21a   : > { %v1287_v52 = vcombine.low %v1263_v40, %v1279_v46  ;;  %v1288_v53 = vcombine.high %v1263_v40, %v1279_v46  ;;  %v1303_v54 = vcombine.low %v1270_v41, %v1286_v47  ;;  %v1304_v55 = vcombine.high %v1270_v41, %v1286_v47 }
 0x21b   : > { %v1219_v1 = vcombine.low %v1195_v50, %v1211_v57  ;;  %v1220_v2 = vcombine.high %v1195_v50, %v1211_v57  ;;  %v1235_v4 = vcombine.low %v1202_v51, %v1218_v59  ;;  %v1236_v5 = vcombine.high %v1202_v51, %v1218_v59 }
 0x21c   : > { %v1295_v60 = vrot.slane %v1287_v52, %v4219_v44  ;;  %v1302_v61 = vrot.slane %v1288_v53, %v4219_v44  ;;  %v1311_v62 = vrot.slane %v1303_v54, %v4219_v44  ;;  %v1318_v63 = vrot.slane %v1304_v55, %v4219_v44 }
 0x21d   : > { %v1227_v35 = vrot.slane %v1219_v1, %v4219_v44  ;;  %v1234_v36 = vrot.slane %v1220_v2, %v4219_v44  ;;  %v1243_v37 = vrot.slane %v1235_v4, %v4219_v44  ;;  %v1250_v38 = vrot.slane %v1236_v5, %v4219_v44 }
 0x21e   : > { %v1391_v30 = vcombine.low %v1295_v60, %v1302_v61  ;;  %v3049_v31 = vcombine.high %v1295_v60, %v1302_v61  ;;  %v1407_v33 = vcombine.low %v1311_v62, %v1318_v63  ;;  %v3050_v34 = vcombine.high %v1311_v62, %v1318_v63 }
 0x21f   : > { %v1323_v43 = vcombine.low %v1227_v35, %v1234_v36  ;;  %v3047_v45 = vcombine.high %v1227_v35, %v1234_v36  ;;  %v1339_v46 = vcombine.low %v1243_v37, %v1250_v38  ;;  %v3048_v47 = vcombine.high %v1243_v37, %v1250_v38 }
 0x220   : > { %v1398_v39 = vrot.slane %v1391_v30, %v4215_v32  ;;  %v1406_v40 = vrot.slane %v3049_v31, %v4215_v32  ;;  %v1414_v41 = vrot.slane %v1407_v33, %v4215_v32  ;;  %v1422_v42 = vrot.slane %v3050_v34, %v4215_v32 }
 0x221   : > { %v1330_v50 = vrot.slane %v1323_v43, %v4215_v32  ;;  %v1338_v51 = vrot.slane %v3047_v45, %v4215_v32  ;;  %v1346_v52 = vrot.slane %v1339_v46, %v4215_v32  ;;  %v1354_v53 = vrot.slane %v3048_v47, %v4215_v32 }
 0x222   : > { %v1424_v48 = vcombine.high %v1398_v39, %v1406_v40  ;;  %v1440_v49 = vcombine.high %v1414_v41, %v1422_v42  ;;  %v1423_v57 = vcombine.low %v1398_v39, %v1406_v40  ;;  %v1439_v59 = vcombine.low %v1414_v41, %v1422_v42 }
 0x223   : > { %v1356_v54 = vcombine.high %v1330_v50, %v1338_v51  ;;  %v1372_v55 = vcombine.high %v1346_v52, %v1354_v53  ;;  %v1355_v60 = vcombine.low %v1330_v50, %v1338_v51  ;;  %v1371_v61 = vcombine.low %v1346_v52, %v1354_v53 }
 0x224   : > { %v1431_v62 = vrot.slane %v1423_v57, %v4219_v44  ;;  %v1447_v63 = vrot.slane %v1439_v59, %v4219_v44  ;;  %v1438_v4 = vrot.slane %v1424_v48, %v4219_v44  ;;  %v1454_v5 = vrot.slane %v1440_v49, %v4219_v44 }
 0x225   : > { %v1363_v1 = vrot.slane %v1355_v60, %v4219_v44  ;;  %v1379_v2 = vrot.slane %v1371_v61, %v4219_v44  ;;  %v1370_v30 = vrot.slane %v1356_v54, %v4219_v44  ;;  %v1386_v31 = vrot.slane %v1372_v55, %v4219_v44 }
 0x226   : > { %v1455_v34 = vcombine.low %v1431_v62, %v1447_v63  ;;  %v1456_v36 = vcombine.high %v1431_v62, %v1447_v63  ;;  %v1457_v38 = vcombine.low %v1438_v4, %v1454_v5  ;;  %v1458_v40 = vcombine.high %v1438_v4, %v1454_v5 }
 0x227   : > { %v1387_v33 = vcombine.low %v1363_v1, %v1379_v2  ;;  %v1388_v35 = vcombine.high %v1363_v1, %v1379_v2  ;;  %v1389_v37 = vcombine.low %v1370_v30, %v1386_v31  ;;  %v1390_v39 = vcombine.high %v1370_v30, %v1386_v31 }
 0x229   : > { %v3303_v41 = vpack.c.bf16 %v1455_v34, %v1387_v33  ;;  %v3307_v42 = vpack.c.bf16 %v1456_v36, %v1388_v35  ;;  %v3311_v45 = vpack.c.bf16 %v1457_v38, %v1389_v37  ;;  %v3315_v46 = vpack.c.bf16 %v1458_v40, %v1390_v39 }
 0x22b   : > { %3305 = vmatpush3.bf16.xpose.msk.msra.mxu1 %vm4253_vm4, %v3303_v41  ;;  %3309 = vmatpush3.bf16.xpose.msk.msra.mxu0 %vm4253_vm4, %v3307_v42 }
 0x22c   : > { %3310 = vmatprep.subr.bf16.mxu1 %v3725_v56  ;;  %3314 = vmatprep.subr.bf16.mxu0 %v3725_v56 }
 0x273   : > { %v1014_v47 = vpop.f32.mrb[0].mxu1 }
 0x274   : > { %v1015_v48 = vadd.f32 %v4082_v6, %v1014_v47  ;;  %v3182_v49 = vpop.f32.mrb[1].mxu1 }
 0x276   : > { %v1018_v50 = vmul.f32 0.35355338, %v1015_v48 }
 0x278   : > { %1023 = vrot.lane.b32.xlu1 %v1018_v50, %s3726_s24  ;;  %1020 = vrot.lane.b32.xlu0 %v1018_v50, %s3729_s28 }
 0x27c   : > { %1026 = vrot.lane.b32.xlu0 %v1018_v50, %s3730_s8 }
 0x2ea   : > { %v1024_v51 = vpop.permute.xlu1 %1023  ;;  %v1021_v52 = vpop.permute.xlu0 %1020 }
 0x2eb   : > { %v1029_v53 = vcombine.low %v1018_v50, %v1024_v51  ;;  %v1030_v54 = vcombine.high %v1018_v50, %v1024_v51 }
 0x2ed   : > { %v1037_v60 = vrot.slane %v1029_v53, %v4215_v32  ;;  %v1044_v61 = vrot.slane %v1030_v54, %v4215_v32 }
 0x2ee   : > { %v1027_v55 = vpop.permute.xlu0 %1026 }
 0x2ef   : > { %v1045_v57 = vcombine.low %v1021_v52, %v1027_v55  ;;  %v1046_v59 = vcombine.high %v1021_v52, %v1027_v55 }
 0x2f1   : > { %v1053_v6 = vrot.slane %v1045_v57, %v4215_v32  ;;  %v1060_v62 = vrot.slane %v1046_v59, %v4215_v32 }
 0x2f3   : > { %v1061_v63 = vcombine.low %v1037_v60, %v1053_v6  ;;  %v1062_v1 = vcombine.high %v1037_v60, %v1053_v6  ;;  %v1077_v2 = vcombine.low %v1044_v61, %v1060_v62  ;;  %v1078_v4 = vcombine.high %v1044_v61, %v1060_v62 }
 0x2f5   : > { %v1069_v5 = vrot.slane %v1061_v63, %v4219_v44  ;;  %v1076_v30 = vrot.slane %v1062_v1, %v4219_v44  ;;  %v1085_v31 = vrot.slane %v1077_v2, %v4219_v44  ;;  %v1092_v33 = vrot.slane %v1078_v4, %v4219_v44 }
 0x2f7   : > { %v1097_v34 = vcombine.low %v1069_v5, %v1076_v30  ;;  %v3045_v35 = vcombine.high %v1069_v5, %v1076_v30  ;;  %v1113_v36 = vcombine.low %v1085_v31, %v1092_v33  ;;  %v3046_v37 = vcombine.high %v1085_v31, %v1092_v33 }
 0x2f9   : > { %v1104_v38 = vrot.slane %v1097_v34, %v4215_v32  ;;  %v1112_v39 = vrot.slane %v3045_v35, %v4215_v32  ;;  %v1120_v40 = vrot.slane %v1113_v36, %v4215_v32  ;;  %v1128_v41 = vrot.slane %v3046_v37, %v4215_v32  ;;  %v1459_v35 = vld [vmem:[#allocation3] sm:$0xff]  ;;  %v1460_v36 = vld [vmem:[#allocation3 + $0x8] sm:$0xff] }
 0x2fb   : > { %v1129_v42 = vcombine.low %v1104_v38, %v1112_v39  ;;  %v1145_v47 = vcombine.low %v1120_v40, %v1128_v41  ;;  %v1130_v50 = vcombine.high %v1104_v38, %v1112_v39  ;;  %v1146_v51 = vcombine.high %v1120_v40, %v1128_v41 }
 0x2fd   : > { %v1137_v48 = vrot.slane %v1129_v42, %v4219_v44  ;;  %v1153_v49 = vrot.slane %v1145_v47, %v4219_v44  ;;  %v1144_v54 = vrot.slane %v1130_v50, %v4219_v44  ;;  %v1160_v55 = vrot.slane %v1146_v51, %v4219_v44 }
 0x2ff   : > { %v1161_v52 = vcombine.low %v1137_v48, %v1153_v49  ;;  %v1162_v53 = vcombine.high %v1137_v48, %v1153_v49  ;;  %v1163_v57 = vcombine.low %v1144_v54, %v1160_v55  ;;  %v1164_v59 = vcombine.high %v1144_v54, %v1160_v55 }
 0x301   : > { %3188 = vmatmul.mubr.msk.f32.vlgmr.msra.gmra.mrb[2].mxu1 %vm1759_vm3, %v1161_v52  ;;  %3195 = vmatmul.mubr.msk.f32.vlgmr.msra.gmra.mrb[0].mxu0 %vm1759_vm3, %v1162_v53 }
 0x302   : > { %3313 = vmatpush3.bf16.xpose.msk.msra.mxu1 %vm4253_vm4, %v3311_v45  ;;  %3317 = vmatpush3.bf16.xpose.msk.msra.mxu0 %vm4253_vm4, %v3315_v46 }
 0x303   : > { %3201 = vmatprep.mubr.msk.f32.mxu1 %vm3727_vm1, %v3728_v58  ;;  %3208 = vmatprep.mubr.msk.f32.mxu0 %vm3727_vm1, %v3728_v58 }
 0x304   : > { %3318 = vmatprep.subr.bf16.mxu1 %v3725_v56  ;;  %3324 = vmatprep.subr.bf16.mxu0 %v3725_v56 }
 0x309   : > { %3202 = vmatmul.mubr.msk.f32.vlgmr.msra.gmra.mrb[4].mxu1 %vm1759_vm3, %v1163_v57  ;;  %3209 = vmatmul.mubr.msk.f32.vlgmr.msra.gmra.mrb[2].mxu0 %vm1759_vm3, %v1164_v59 }
 0x30a   : > { %3215 = vmatprep.mubr.msk.f32.mxu1 %vm3727_vm1, %v3728_v58  ;;  %3229 = vmatprep.mubr.msk.f32.mxu0 %vm3727_vm1, %v3728_v58 }
 0x3d4   : > { %v1835_v43 = vpop.f32.mrb[2].mxu1  ;;  %v1914_v45 = vpop.f32.mrb[0].mxu0 }
 0x3d5   : > { %v1836_v46 = vadd.f32 %v4051_v0, %v1835_v43  ;;  %v1915_v60 = vadd.f32 %v4051_v0, %v1914_v45  ;;  %v3189_v61 = vpop.f32.mrb[3].mxu1  ;;  %v3196_v6 = vpop.f32.mrb[1].mxu0 }
 0x3d7   : > { %v2080_v62 = vsel %vm2076_vm5, %v1915_v60, -inf  ;;  %v2077_v63 = vsel %vm2076_vm5, %v1836_v46, -inf }
 0x3d8   : > { %2081 = vmax.xlane.f32.xlu0 %v2080_v62  ;;  %2078 = vmax.xlane.f32.xlu1 %v2077_v63 }
 0x3dc   : > { %v1993_v1 = vpop.f32.mrb[4].mxu1  ;;  %v2072_v2 = vpop.f32.mrb[2].mxu0 }
 0x3dd   : > { %v1994_v4 = vadd.f32 %v4051_v0, %v1993_v1  ;;  %v2073_v5 = vadd.f32 %v4051_v0, %v2072_v2  ;;  %v3203_v30 = vpop.f32.mrb[5].mxu1  ;;  %v3210_v31 = vpop.f32.mrb[3].mxu0 }
 0x3df   : > { %v2086_v33 = vsel %vm2076_vm5, %v2073_v5, -inf  ;;  %v2083_v34 = vsel %vm2076_vm5, %v1994_v4, -inf }
 0x3e0   : > { %2087 = vmax.xlane.f32.xlu1 %v2086_v33  ;;  %2084 = vmax.xlane.f32.xlu0 %v2083_v34 }
 0x3f1   : > { %1463 = vrot.lane.b32.xlu1 %v1459_v35, %s3729_s28 }
 0x3f5   : > { %1469 = vrot.lane.b32.xlu1 %v1459_v35, %s3726_s24 }
 0x3f6   : > { %1465 = vrot.lane.b32.xlu0 %v1460_v36, %s3729_s28 }
 0x3f9   : > { %1471 = vrot.lane.b32.xlu1 %v1460_v36, %s3726_s24  ;;  %s3617_s24 = scalar_lea.vmem %s3616_s25, 256 }
 0x3fa   : > { %1475 = vrot.lane.b32.xlu0 %v1459_v35, %s3730_s8  ;;  %p3619_p7 = scmp.lt.s32.totalorder %s3617_s24, %s3611_s22 }
 0x3fc   : > { %p3620_p9 = por %p3619_p7, %p3618_p6 }
 0x3fd   : > { %1477 = vrot.lane.b32.xlu1 %v1460_v36, %s3730_s8 }
 0x3fe   : > { %p3621_p11 = pnand %p3620_p9, %p3614_p5 }
 0x465   : > { %v2082_v0 = vpop.xlane.xlu0 %2081  ;;  %v2079_v37 = vpop.xlane.xlu1 %2078 }
 0x466   : > { %v2090_v38 = vsub.f32 %v1915_v60, %v2082_v0  ;;  %v2089_v39 = vsub.f32 %v1836_v46, %v2079_v37 }
 0x468   : > { %v2095_v40 = vmul.f32 1.442695, %v2090_v38  ;;  %v2093_v41 = vmul.f32 1.442695, %v2089_v39 }
 0x46a   : > { %3479 = vpow2.f32 %v2093_v41 }
 0x46b   : > { %3481 = vpow2.f32 %v2095_v40 }
 0x46d   : > { %v2088_v42 = vpop.xlane.xlu1 %2087  ;;  %v2085_v47 = vpop.xlane.xlu0 %2084 }
 0x46e   : > { %v2092_v48 = vsub.f32 %v2073_v5, %v2088_v42  ;;  %v2091_v49 = vsub.f32 %v1994_v4, %v2085_v47 }
 0x470   : > { %v2099_v50 = vmul.f32 1.442695, %v2092_v48  ;;  %v2097_v51 = vmul.f32 1.442695, %v2091_v49 }
 0x471   : > { %v1464_v52 = vpop.permute.xlu1 %1463  ;;  %v1466_v53 = vpop.permute.xlu0 %1465 }
 0x472   : > { %3483 = vpow2.f32 %v2099_v50 }
 0x473   : > { %3485 = vpow2.f32 %v2097_v51 }
 0x474   : > { %v4315_v54 = vpop.eup %3479 }
 0x475   : > { %v1470_v55 = vpop.permute.xlu1 %1469  ;;  %v1476_v57 = vpop.permute.xlu0 %1475  ;;  %v2101_v43 = vsel %vm2076_vm5, %v4315_v54, 0.0 }
 0x476   : > { %v4317_v59 = vpop.eup %3481  ;;  %v1481_v45 = vcombine.low %v1459_v35, %v1470_v55  ;;  %v1482_v46 = vcombine.high %v1459_v35, %v1470_v55  ;;  %v1497_v60 = vcombine.low %v1464_v52, %v1476_v57  ;;  %2102 = vadd.xlane.f32.xlu0 %v2101_v43  ;;  %v1498_v61 = vcombine.high %v1464_v52, %v1476_v57 }
 0x477   : > { %v2104_v1 = vsel %vm2076_vm5, %v4317_v59, 0.0 }
 0x478   : > { %v1489_v6 = vrot.slane %v1481_v45, %v4215_v32  ;;  %v1496_v62 = vrot.slane %v1482_v46, %v4215_v32  ;;  %v1505_v63 = vrot.slane %v1497_v60, %v4215_v32  ;;  %v1512_v4 = vrot.slane %v1498_v61, %v4215_v32 }
 0x479   : > { %v1472_v2 = vpop.permute.xlu1 %1471 }
 0x47a   : > { %v1549_v5 = vcombine.low %v1460_v36, %v1472_v2  ;;  %v1550_v30 = vcombine.high %v1460_v36, %v1472_v2  ;;  %v1513_v31 = vcombine.low %v1489_v6, %v1505_v63  ;;  %v1514_v33 = vcombine.high %v1489_v6, %v1505_v63  ;;  %2105 = vadd.xlane.f32.xlu0 %v2104_v1 }
 0x47b   : > { %v1529_v34 = vcombine.low %v1496_v62, %v1512_v4  ;;  %v1530_v35 = vcombine.high %v1496_v62, %v1512_v4 }
 0x47c   : > { %v4327_v0 = vpop.eup %3483  ;;  %v1557_v37 = vrot.slane %v1549_v5, %v4215_v32  ;;  %v1521_v38 = vrot.slane %v1513_v31, %v4219_v44  ;;  %v1528_v39 = vrot.slane %v1514_v33, %v4219_v44  ;;  %v1564_v36 = vrot.slane %v1550_v30, %v4215_v32 }
 0x47d   : > { %v4332_v40 = vpop.eup %3485  ;;  %v2110_v41 = vsel %vm2076_vm5, %v4327_v0, 0.0  ;;  %v1478_v42 = vpop.permute.xlu1 %1477  ;;  %v1537_v47 = vrot.slane %v1529_v34, %v4219_v44  ;;  %v1544_v48 = vrot.slane %v1530_v35, %v4219_v44 }
 0x47e   : > { %v2107_v49 = vsel %vm2076_vm5, %v4332_v40, 0.0  ;;  %v1565_v50 = vcombine.low %v1466_v53, %v1478_v42  ;;  %v1566_v51 = vcombine.high %v1466_v53, %v1478_v42  ;;  %v1617_v52 = vcombine.low %v1521_v38, %v1528_v39  ;;  %2111 = vadd.xlane.f32.xlu0 %v2110_v41 }
 0x47f   : > { %2108 = vadd.xlane.f32.xlu1 %v2107_v49  ;;  %v3051_v55 = vcombine.high %v1521_v38, %v1528_v39  ;;  %v1633_v57 = vcombine.low %v1537_v47, %v1544_v48  ;;  %v3052_v43 = vcombine.high %v1537_v47, %v1544_v48 }
 0x480   : > { %v1573_v45 = vrot.slane %v1565_v50, %v4215_v32  ;;  %v1580_v46 = vrot.slane %v1566_v51, %v4215_v32  ;;  %v1624_v60 = vrot.slane %v1617_v52, %v4215_v32 }
 0x481   : > { %v1632_v61 = vrot.slane %v3051_v55, %v4215_v32  ;;  %v1640_v6 = vrot.slane %v1633_v57, %v4215_v32  ;;  %v1648_v62 = vrot.slane %v3052_v43, %v4215_v32 }
 0x482   : > { %v1581_v63 = vcombine.low %v1557_v37, %v1573_v45  ;;  %v1582_v53 = vcombine.high %v1557_v37, %v1573_v45  ;;  %v1597_v1 = vcombine.low %v1564_v36, %v1580_v46  ;;  %v1598_v2 = vcombine.high %v1564_v36, %v1580_v46 }
 0x483   : > { %v1649_v4 = vcombine.low %v1624_v60, %v1632_v61  ;;  %v1665_v5 = vcombine.low %v1640_v6, %v1648_v62  ;;  %v1650_v30 = vcombine.high %v1624_v60, %v1632_v61  ;;  %v1666_v31 = vcombine.high %v1640_v6, %v1648_v62 }
 0x484   : > { %v1589_v33 = vrot.slane %v1581_v63, %v4219_v44  ;;  %v1596_v34 = vrot.slane %v1582_v53, %v4219_v44  ;;  %v1605_v35 = vrot.slane %v1597_v1, %v4219_v44  ;;  %v1612_v38 = vrot.slane %v1598_v2, %v4219_v44 }
 0x485   : > { %v1657_v39 = vrot.slane %v1649_v4, %v4219_v44  ;;  %v1673_v41 = vrot.slane %v1665_v5, %v4219_v44  ;;  %v1664_v37 = vrot.slane %v1650_v30, %v4219_v44  ;;  %v1680_v36 = vrot.slane %v1666_v31, %v4219_v44 }
 0x486   : > { %v1685_v42 = vcombine.low %v1589_v33, %v1596_v34  ;;  %v3053_v47 = vcombine.high %v1589_v33, %v1596_v34  ;;  %v1701_v48 = vcombine.low %v1605_v35, %v1612_v38  ;;  %v3054_v49 = vcombine.high %v1605_v35, %v1612_v38 }
 0x487   : > { %v1682_v50 = vcombine.high %v1657_v39, %v1673_v41  ;;  %v1684_v51 = vcombine.high %v1664_v37, %v1680_v36  ;;  %v1681_v6 = vcombine.low %v1657_v39, %v1673_v41  ;;  %v1683_v62 = vcombine.low %v1664_v37, %v1680_v36 }
 0x488   : > { %v1692_v52 = vrot.slane %v1685_v42, %v4215_v32  ;;  %v1700_v55 = vrot.slane %v3053_v47, %v4215_v32  ;;  %v1708_v57 = vrot.slane %v1701_v48, %v4215_v32  ;;  %v1716_v43 = vrot.slane %v3054_v49, %v4215_v32 }
 0x48a   : > { %v1717_v45 = vcombine.low %v1692_v52, %v1700_v55  ;;  %v1733_v46 = vcombine.low %v1708_v57, %v1716_v43  ;;  %v1718_v60 = vcombine.high %v1692_v52, %v1700_v55  ;;  %v1734_v61 = vcombine.high %v1708_v57, %v1716_v43 }
 0x48c   : > { %v1725_v63 = vrot.slane %v1717_v45, %v4219_v44  ;;  %v1741_v53 = vrot.slane %v1733_v46, %v4219_v44  ;;  %v1732_v1 = vrot.slane %v1718_v60, %v4219_v44  ;;  %v1748_v2 = vrot.slane %v1734_v61, %v4219_v44 }
 0x48e   : > { %v1749_v4 = vcombine.low %v1725_v63, %v1741_v53  ;;  %v1751_v5 = vcombine.low %v1732_v1, %v1748_v2  ;;  %v1750_v30 = vcombine.high %v1725_v63, %v1741_v53  ;;  %v1752_v31 = vcombine.high %v1732_v1, %v1748_v2 }
 0x490   : > { %v3319_v33 = vpack.c.bf16 %v1749_v4, %v1681_v6  ;;  %v3325_v34 = vpack.c.bf16 %v1751_v5, %v1683_v62  ;;  %v3322_v35 = vpack.c.bf16 %v1750_v30, %v1682_v50  ;;  %v3328_v38 = vpack.c.bf16 %v1752_v31, %v1684_v51 }
 0x491   : > { %v3334_v31 = vpack.c.bf16 %v4090_v10, %v4088_v9 }
 0x492   : > { %3320 = vmatpush3.bf16.msra.mxu1 %v3319_v33  ;;  %3326 = vmatpush3.bf16.msra.mxu0 %v3325_v34 }
 0x493   : > { %3321 = vmatprep.subr.bf16.mxu1 %v3725_v56  ;;  %3330 = vmatprep.subr.bf16.mxu0 %v3725_v56 }
 0x503   : > { %v2103_v39 = vpop.xlane.xlu0 %2102 }
 0x504   : > { %3487 = vrcp.f32 %v2103_v39 }
 0x507   : > { %v2106_v41 = vpop.xlane.xlu0 %2105 }
 0x508   : > { %3489 = vrcp.f32 %v2106_v41 }
 0x50b   : > { %v2112_v36 = vpop.xlane.xlu0 %2111 }
 0x50c   : > { %v2109_v37 = vpop.xlane.xlu1 %2108 }
 0x50d   : > { %3491 = vrcp.f32 %v2109_v37 }
 0x50e   : > { %3493 = vrcp.f32 %v2112_v36  ;;  %v3488_v42 = vpop.eup %3487 }
 0x50f   : > { %v2117_v47 = vmul.f32 %v3488_v42, %v4315_v54 }
 0x511   : > { %3216 = vmatmul.mubr.msk.f32.vlgmr.msra.gmra.mrb[6].mxu1 %vm2076_vm5, %v2117_v47 }
 0x512   : > { %v3490_v48 = vpop.eup %3489  ;;  %3323 = vmatpush3.bf16.msra.mxu1 %v3322_v35  ;;  %3222 = vmatprep.mubr.msk.f32.mxu1 %vm3727_vm1, %v3728_v58 }
 0x513   : > { %v2118_v49 = vmul.f32 %v3490_v48, %v4317_v59  ;;  %3327 = vmatprep.subr.bf16.mxu1 %v3725_v56  ;;  %v3331_v59 = vpack.c.bf16 %v4086_v8, %v4084_v7 }
 0x515   : > { %3223 = vmatmul.mubr.msk.f32.vlgmr.msra.gmra.mrb[8].mxu1 %vm2076_vm5, %v2118_v49 }
 0x516   : > { %3329 = vmatpush3.bf16.msra.mxu1 %v3328_v38  ;;  %3236 = vmatprep.mubr.msk.f32.mxu1 %vm3727_vm1, %v3728_v58 }
 0x517   : > { %v3492_v50 = vpop.eup %3491  ;;  %3336 = vmatprep.subr.bf16.mxu1 %v3725_v56 }
 0x518   : > { %v3494_v51 = vpop.eup %3493  ;;  %v2119_v54 = vmul.f32 %v3492_v50, %v4332_v40 }
 0x519   : > { %v2120_v52 = vmul.f32 %v3494_v51, %v4327_v0 }
 0x51a   : > { %3230 = vmatmul.mubr.msk.f32.vlgmr.msra.gmra.mrb[4].mxu0 %vm2076_vm5, %v2119_v54 }
 0x51b   : > { %3237 = vmatmul.mubr.msk.f32.vlgmr.msra.gmra.mrb[10].mxu1 %vm2076_vm5, %v2120_v52  ;;  %3247 = vmatprep.mubr.msk.f32.mxu0 %vm3727_vm1, %v3728_v58 }
 0x51c   : > { %3258 = vmatprep.mubr.msk.f32.mxu1 %vm3727_vm1, %v3728_v58  ;;  %3332 = vmatpush3.bf16.msra.mxu0 %v3331_v59 }
 0x51d   : > { %3333 = vmatprep.subr.bf16.mxu0 %v3725_v56 }
 0x520   : > { %3335 = vmatpush3.bf16.msra.mxu0 %v3334_v31 }
 0x521   : > { %3342 = vmatprep.subr.bf16.mxu0 %v3725_v56 }
 0x5e4   : > { %v2190_v40 = vpop.f32.mrb[6].mxu1 }
 0x5e5   : > { %v3217_v55 = vpop.f32.mrb[7].mxu1 }
 0x5e8   : > { %v2263_v57 = vpop.f32.mrb[8].mxu1 }
 0x5e9   : > { %v3224_v0 = vpop.f32.mrb[9].mxu1 }
 0x5ed   : > { %v2336_v43 = vpop.f32.mrb[4].mxu0 }
 0x5ee   : > { %v2413_v45 = vcombine.low %v2190_v40, %v2336_v43  ;;  %v2414_v46 = vcombine.high %v2190_v40, %v2336_v43  ;;  %v3231_v60 = vpop.f32.mrb[5].mxu0  ;;  %v2409_v61 = vpop.f32.mrb[10].mxu1 }
 0x5ef   : > { %v2429_v6 = vcombine.low %v2263_v57, %v2409_v61  ;;  %v2430_v62 = vcombine.high %v2263_v57, %v2409_v61  ;;  %v3238_v63 = vpop.f32.mrb[11].mxu1 }
 0x5f0   : > { %v2421_v53 = vrot.slane %v2413_v45, %v4215_v32  ;;  %v2428_v1 = vrot.slane %v2414_v46, %v4215_v32 }
 0x5f1   : > { %v2437_v7 = vrot.slane %v2429_v6, %v4215_v32  ;;  %v2444_v8 = vrot.slane %v2430_v62, %v4215_v32 }
 0x5f3   : > { %v2445_v2 = vcombine.low %v2421_v53, %v2437_v7  ;;  %v2446_v4 = vcombine.high %v2421_v53, %v2437_v7  ;;  %v2461_v5 = vcombine.low %v2428_v1, %v2444_v8  ;;  %v2462_v30 = vcombine.high %v2428_v1, %v2444_v8 }
 0x5f5   : > { %v2453_v33 = vrot.slane %v2445_v2, %v4219_v44  ;;  %v2460_v34 = vrot.slane %v2446_v4, %v4219_v44  ;;  %v2469_v35 = vrot.slane %v2461_v5, %v4219_v44  ;;  %v2476_v38 = vrot.slane %v2462_v30, %v4219_v44 }
 0x5f6   : > { %v3337_v30 = vpack.c.bf16 %v4099_v13, %v4097_v12  ;;  %v3349_v12 = vpack.c.bf16 %v4138_v22, %v4133_v21 }
 0x5f7   : > { %v2481_v39 = vcombine.low %v2453_v33, %v2460_v34  ;;  %v3072_v41 = vcombine.high %v2453_v33, %v2460_v34  ;;  %v2497_v37 = vcombine.low %v2469_v35, %v2476_v38  ;;  %v3073_v36 = vcombine.high %v2469_v35, %v2476_v38 }
 0x5f8   : > { %3338 = vmatpush3.bf16.msra.mxu1 %v3337_v30 }
 0x5f9   : > { %v2488_v42 = vrot.slane %v2481_v39, %v4215_v32  ;;  %v2496_v47 = vrot.slane %v3072_v41, %v4215_v32  ;;  %v2504_v9 = vrot.slane %v2497_v37, %v4215_v32  ;;  %v2512_v10 = vrot.slane %v3073_v36, %v4215_v32  ;;  %3339 = vmatprep.subr.bf16.mxu1 %v3725_v56 }
 0x5fb   : > { %v2514_v48 = vcombine.high %v2488_v42, %v2496_v47  ;;  %v2530_v49 = vcombine.high %v2504_v9, %v2512_v10  ;;  %v2513_v50 = vcombine.low %v2488_v42, %v2496_v47  ;;  %v2529_v51 = vcombine.low %v2504_v9, %v2512_v10 }
 0x5fd   : > { %v2528_v54 = vrot.slane %v2514_v48, %v4219_v44  ;;  %v2544_v52 = vrot.slane %v2530_v49, %v4219_v44  ;;  %v2521_v59 = vrot.slane %v2513_v50, %v4219_v44  ;;  %v2537_v40 = vrot.slane %v2529_v51, %v4219_v44 }
 0x5ff   : > { %v2547_v55 = vcombine.low %v2528_v54, %v2544_v52  ;;  %v2546_v57 = vcombine.high %v2521_v59, %v2537_v40  ;;  %v2548_v0 = vcombine.high %v2528_v54, %v2544_v52  ;;  %v2545_v43 = vcombine.low %v2521_v59, %v2537_v40 }
 0x601   : > { %2554 = vrot.lane.b32.xlu1 %v2547_v55, %s3733_s23  ;;  %2550 = vrot.lane.b32.xlu0 %v2546_v57, %s3734_s20 }
 0x605   : > { %2558 = vrot.lane.b32.xlu1 %v2548_v0, %s3735_s16 }
 0x673   : > { %v2555_v32 = vpop.permute.xlu1 %2554  ;;  %v2551_v45 = vpop.permute.xlu0 %2550 }
 0x674   : > { %v2561_v46 = vsel %vm1759_vm3, %v2545_v43, %v2551_v45 }
 0x675   : > { %v2562_v61 = vsel %vm2076_vm5, %v2561_v46, %v2555_v32 }
 0x677   : > { %v2559_v60 = vpop.permute.xlu1 %2558 }
 0x678   : > { %v2564_v6 = vsel %vm2563_vm6, %v2562_v61, %v2559_v60 }
 0x679   : > { %3248 = vmatmul.mubr.msk.f32.vlgmr.msra.gmra.mrb[6].mxu0 %vm944_vm2, %v2564_v6 }
 0x67a   : > { %3277 = vmatprep.mubr.msk.f32.mxu0 %vm3727_vm1, %v3728_v58  ;;  %v3346_v58 = vpack.c.bf16 %v4128_v20, %v4123_v19  ;;  %v3352_v20 = vpack.c.bf16 %v4148_v24, %v4143_v23 }
 0x74c   : > { %v2640_v44 = vpop.f32.mrb[6].mxu0 }
 0x74d   : > { %v2641_v62 = vadd.f32 %v4095_v11, %v2640_v44  ;;  %v3249_v63 = vpop.f32.mrb[7].mxu0  ;;  %v3340_v11 = vpack.c.bf16 %v4103_v15, %v4101_v14 }
 0x74f   : > { %v2644_v53 = vadd.f32 %v2641_v62, %v4067_v3  ;;  %3341 = vmatpush3.bf16.msra.mxu1 %v3340_v11  ;;  %v3343_v3 = vpack.c.bf16 %v4118_v18, %v4113_v17 }
 0x751   : > { %v2645_v1 = vsel %vm944_vm2, %v2644_v53, 0.0  ;;  %3344 = vmatpush3.bf16.msra.mxu0 %v3343_v3 }
 0x752   : > { %2646 = vadd.xlane.f32.xlu0 %v2645_v1  ;;  %3345 = vmatprep.subr.bf16.mxu0 %v3725_v56 }
 0x755   : > { %3347 = vmatpush3.bf16.msra.mxu0 %v3346_v58 }
 0x756   : > { %3348 = vmatprep.subr.bf16.mxu0 %v3725_v56 }
 0x759   : > { %3350 = vmatpush3.bf16.msra.mxu0 %v3349_v12 }
 0x75a   : > { %3351 = vmatprep.subr.bf16.mxu0 %v3725_v56 }
 0x75d   : > { %3353 = vmatpush3.bf16.msra.mxu0 %v3352_v20 }
 0x7df   : > { %v2647_v7 = vpop.xlane.xlu0 %2646 }
 0x7e0   : > { %v2649_v8 = vmul.f32 0.03125, %v2647_v7 }
 0x7e2   : > { %v2650_v2 = vsub.f32 %v2644_v53, %v2649_v8 }
 0x7e4   : > { %v2651_v4 = vmul.f32 %v2650_v2, %v2650_v2 }
 0x7e6   : > { %v2652_v5 = vsel %vm944_vm2, %v2651_v4, 0.0 }
 0x7e7   : > { %2653 = vadd.xlane.f32.xlu1 %v2652_v5 }
 0x874   : > { %v2654_v13 = vpop.xlane.xlu1 %2653 }
 0x875   : > { %v2655_v14 = vmul.f32 0.03125, %v2654_v13 }
 0x877   : > { %v2656_v15 = vadd.f32 1e-05, %v2655_v14 }
 0x879   : > { %3495 = vrsqrt.f32 %v2656_v15 }
 0x883   : > { %v3496_v17 = vpop.eup %3495 }
 0x884   : > { %v2658_v18 = vmul.f32 %v3496_v17, %v2650_v2 }
 0x886   : > { %v2665_v31 = vmul.f32 %v4158_v26, %v2658_v18 }
 0x888   : > { %v2672_v19 = vadd.f32 %v4163_v27, %v2665_v31 }
 0x88a   : > { %3259 = vmatmul.mubr.msk.f32.vlgmr.msra.gmra.mrb[12].mxu1 %vm944_vm2, %v2672_v19 }
 0x95d   : > { %v2748_v21 = vpop.f32.mrb[12].mxu1 }
 0x95e   : > { %v2749_v22 = vadd.f32 %v4108_v16, %v2748_v21  ;;  %v3260_v56 = vpop.f32.mrb[13].mxu1 }
 0x960   : > { %v2752_v33 = vmax.f32 %v2749_v22, 0.0 }
 0x962   : > { %3278 = vmatmul.mubr.msk.f32.vlgmr.msra.gmra.mrb[8].mxu0 %vm2759_vm7, %v2752_v33 }
 0xa35   : > { %v2829_v34 = vpop.f32.mrb[8].mxu0 }
 0xa36   : > { %v2830_v35 = vadd.f32 %v4153_v25, %v2829_v34  ;;  %v3279_v26 = vpop.f32.mrb[9].mxu0 }
 0xa38   : > { %v2833_v27 = vadd.f32 %v2830_v35, %v2672_v19 }
 0xa3a   : > { %v2834_v38 = vsel %vm944_vm2, %v2833_v27, 0.0 }
 0xa3b   : > { %2835 = vadd.xlane.f32.xlu0 %v2834_v38 }
 0xac8   : > { %v2836_v23 = vpop.xlane.xlu0 %2835 }
 0xac9   : > { %v2837_v24 = vmul.f32 0.03125, %v2836_v23 }
 0xacb   : > { %v2838_v39 = vsub.f32 %v2833_v27, %v2837_v24 }
 0xacd   : > { %v2839_v41 = vmul.f32 %v2838_v39, %v2838_v39 }
 0xacf   : > { %v2840_v16 = vsel %vm944_vm2, %v2839_v41, 0.0 }
 0xad0   : > { %2841 = vadd.xlane.f32.xlu0 %v2840_v16 }
 0xb5d   : > { %v2842_v37 = vpop.xlane.xlu0 %2841 }
 0xb5e   : > { %v2843_v36 = vmul.f32 0.03125, %v2842_v37 }
 0xb60   : > { %v2844_v42 = vadd.f32 1e-05, %v2843_v36 }
 0xb62   : > { %3497 = vrsqrt.f32 %v2844_v42 }
 0xb6c   : > { %v3498_v25 = vpop.eup %3497 }
 0xb6d   : > { %v2846_v47 = vmul.f32 %v3498_v25, %v2838_v39 }
 0xb6f   : > { %v2853_v9 = vmul.f32 %v4168_v28, %v2846_v47 }
 0xb71   : > { %v2860_v10 = vadd.f32 %v4173_v29, %v2853_v9 }
 0xb73   : > { %2861 = vst.msk [vmem:[%s702_s6] sm:$0xff] %vm944_vm2, %v2860_v10 }
 0xb74   : > { %3624 = shalt.err (!%p3621_p11)
}
 0xb75   : > { %s3625_s17 = scalar_lea.hbm %s4446_s5, 128  ;;  %s3629_s8 = scalar_lea.hbm %s4588_s19, 512 }
 0xb76   : > { %p3626_p13 = scmp.ne.s32.totalorder %s4446_s5, %s3625_s17  ;;  %p3630_p0 = scmp.lt.u32.totalorder %s4446_s5, %s4588_s19 }
 0xb77   : > { %p3631_p8 = scmp.lt.u32.totalorder %s3629_s8, %s3625_s17  ;;  %p3633_p12 = scmp.lt.u32.totalorder %s3625_s17, %s4446_s5 }
 0xb78   : > { %p3627_p3 = pnand %p3626_p13, %p4590_p1 }
 0xb79   : > { %p3632_p10 = por %p3631_p8, %p3630_p0 }
 0xb7a   : > { %p3628_p2 = pneg %p3627_p3 }
 0xb7b   : > { %p3634_p4 = por %p3633_p12, %p3632_p10 }
 0xb7d   : > { %p3635_p5 = pnand %p3634_p4, %p3628_p2 }
 0xb7f   : > { %3638 = shalt.err (!%p3635_p5)
}
 0xb80   : > { %3370 = dma.vmem_to_hbm [thread:$0]  (%p4590_p1), %s4448_s18, 128, %s4446_s5, %s2863_s1  }
 0xb81 PF: > { %s4591_s16 = sld [smem:[#allocation21_spill]]  ;;  %s4592_s0 = sld [smem:[#allocation17_spill]] }
 0xb82   : > { %s4593_s2 = sld [smem:[#allocation25_spill]] }
 0xb87   : > { %p3397_p6 = scmp.ge.s32.totalorder %s4591_s16, 2  ;;  %s2890_s3 = sand.u32 1, %s4592_s0  }
 0xb88   : > { %p4594_p7 = scmp.ne.s32.totalorder %s4593_s2, 0  ;;  %s2891_s29 = scalar_lea.sflag [#allocation6], %s2890_s3 }
 0xb8a   : > { %p3386_p9 = pnand %p3397_p6, %p4594_p7 }
 0xb8c   : > { %3684 = dma.done.wait (!%p3386_p9), %s2891_s29, 128  }
 0xb8d   : > { %3686 = vsyncadd (!%p3386_p9), %s2891_s29, 4294967168  ;;  %s35_s23 = sadd.s32 1, %s4591_s16   ;;  %s4595_s7 = sld [smem:[#allocation18_spill]] }
 0xb8e   : > { %p32_p11 = scmp.ge.s32.totalorder %s35_s23, 6   ;;  %s4596_s20 = sld [smem:[#allocation26_spill]] }
 0xb8f   : > { %s4597_s21 = sld [smem:[#allocation19_spill]]  ;;  %s4598_s1 = sld [smem:[#allocation20_spill]] }
 0xb90   : > { %s4599_s22 = sld [smem:[#allocation22_spill]]  ;;  %s4600_s2 = sld [smem:[#allocation24_spill]] }
 0xb91   : > { %s4601_s0 = smov %s3693_s30  ;;  %34 = sbr.rel (!%p32_p11) target bundleno = 22 (0x16), region = 158 }
 0xb93   : > { %s4602_s30 = smov %s4595_s7 }
 0xb98   :  { %2896 = vsyncpa [#allocation5], 1 }
 0xb99   :  { %2898 = vsyncpa [#allocation5 + $0x1], 1 }
 0xb9a   :  { %2899 = vsyncpa [#allocation8], 1 }
 0xb9b   :  { %2900 = vsyncpa [#allocation11], 1 }
 0xb9c   :  { %2901 = vsyncpa [#allocation6], 1 }
 0xb9d   :  { %2903 = vsyncpa [#allocation6 + $0x1], 1 }

// kernel: tpu_custom_call.1
= control target key start
LH: loop header
LB: loop body
LE: loop exit
PB: predicated region body
PF: predicated region fallthrough
CT: control target
= control target key end

     0   :  { %s4504_s0 = inlined_call_operand.vmem [shape: f32[2,16,32], index: 0, kind: input, shape index: {}]   ;;  %s4505_s1 = inlined_call_operand.vmem [shape: f32[2,16,32], index: 1, kind: input, shape index: {}]   ;;  %s4506_s2 = inlined_call_operand.vmem [shape: f32[2,1,16], index: 2, kind: input, shape index: {}]   ;;  %s4507_s3 = inlined_call_operand.vmem [shape: f32[32,32], index: 3, kind: input, shape index: {}]   ;;  %s4508_s4 = inlined_call_operand.vmem [shape: f32[1,32], index: 4, kind: input, shape index: {}]   ;;  %s4509_s5 = inlined_call_operand.hbm [shape: f32[32,32], index: 5, kind: input, shape index: {}]   ;;  %s4510_s6 = inlined_call_operand.vmem [shape: f32[1,32], index: 6, kind: input, shape index: {}]   ;;  %s4511_s7 = inlined_call_operand.hbm [shape: f32[32,32], index: 7, kind: input, shape index: {}]   ;;  %s4512_s8 = inlined_call_operand.vmem [shape: f32[1,32], index: 8, kind: input, shape index: {}]   ;;  %s4513_s9 = inlined_call_operand.hbm [shape: f32[32,32], index: 9, kind: input, shape index: {}]   ;;  %s4514_s10 = inlined_call_operand.vmem [shape: f32[1,32], index: 10, kind: input, shape index: {}]   ;;  %s4515_s11 = inlined_call_operand.hbm [shape: f32[32,64], index: 11, kind: input, shape index: {}]   ;;  %s4516_s12 = inlined_call_operand.vmem [shape: f32[1,64], index: 12, kind: input, shape index: {}]   ;;  %s4517_s13 = inlined_call_operand.vmem [shape: f32[64,32], index: 13, kind: input, shape index: {}]   ;;  %s4518_s14 = inlined_call_operand.vmem [shape: f32[1,32], index: 14, kind: input, shape index: {}]   ;;  %s4519_s15 = inlined_call_operand.vmem [shape: f32[1,32], index: 15, kind: input, shape index: {}]   ;;  %s4520_s16 = inlined_call_operand.vmem [shape: f32[1,32], index: 16, kind: input, shape index: {}]   ;;  %s4521_s17 = inlined_call_operand.vmem [shape: f32[1,32], index: 17, kind: input, shape index: {}]   ;;  %s4522_s18 = inlined_call_operand.vmem [shape: f32[1,32], index: 18, kind: input, shape index: {}]   ;;  %s4523_s19 = inlined_call_operand.hbm [shape: f32[2,16,32], index: 19, kind: output, shape index: {}]  }
   0x1   :  { %4541 = sst [smem:[#allocation27_spill]] %s4504_s0 }
   0x2   :  { %4542 = sst [smem:[#allocation28_spill]] %s4505_s1 }
   0x3   :  { %4543 = sst [smem:[#allocation29_spill]] %s4506_s2 }
   0x4   :  { %4544 = sst [smem:[#allocation30_spill]] %s4507_s3 }
   0x5   :  { %4545 = sst [smem:[#allocation31_spill]] %s4509_s5 }
   0x6   :  { %4546 = sst [smem:[#allocation32_spill]] %s4510_s6 }
   0x7   :  { %4547 = sst [smem:[#allocation33_spill]] %s4511_s7 }
   0x8   :  { %4548 = sst [smem:[#allocation34_spill]] %s4512_s8 }
   0x9   :  { %4549 = sst [smem:[#allocation35_spill]] %s4513_s9 }
   0xa   :  { %4550 = sst [smem:[#allocation36_spill]] %s4520_s16 }
   0xb   :  { %4551 = sst [smem:[#allocation37_spill]] %s4521_s17 }
   0xc   :  { %4552 = sst [smem:[#allocation38_spill]] %s4522_s18 }
   0xd   :  { %4553 = sst [smem:[#allocation39_spill]] %s4523_s19 }
   0xe   :  { %24 = vsyncpa [#allocation5], 0 }
   0xf   :  { %25 = vsyncpa [#allocation8], 0 }
  0x10   :  { %26 = vsyncpa [#allocation11], 0 }
  0x11   :  { %27 = vsyncpa [#allocation6], 0 }
  0x12   :  { %29 = vsyncpa [#allocation6 + $0x1], 0  ;;  %s3837_s0 = smov 0   ;;  %s3839_s30 = smov 0  }
  0x13   :  { %s3841_s20 = smov 0   ;;  %s3843_s21 = smov 0  }
  0x14   :  { %s3845_s1 = smov 0   ;;  %s3847_s22 = smov 0  }
  0x15   :  { %s3849_s2 = smov 0   ;;  %s3851_s23 = smov 0  }
  0x16 LB: > { %4554 = sst [smem:[#allocation17_spill]] %s3689_s0  ;;  %s3018_s24 = sadd.s32 4294967295, %s3717_s23   ;;  %s3717_s23 = sphi %s3851_s23, %s35_s23   ;;  %s3713_s2 = sphi %s3849_s2, %s4600_s2   ;;  %s3709_s22 = sphi %s3847_s22, %s4599_s22   ;;  %s3705_s1 = sphi %s3845_s1, %s4598_s1   ;;  %s3701_s21 = sphi %s3843_s21, %s4597_s21   ;;  %s3697_s20 = sphi %s3841_s20, %s4596_s20   ;;  %s3693_s30 = sphi %s3839_s30, %s4602_s30   ;;  %s3689_s0 = sphi %s3837_s0, %s4601_s0  }
  0x17   : > { %4555 = sst [smem:[#allocation18_spill]] %s3697_s20  ;;  %s3019_s25 = sadd.s32 4294967294, %s3717_s23  }
  0x18   : > { %4556 = sst [smem:[#allocation19_spill]] %s3709_s22  ;;  %s44_s3 = sadd.s32 1, %s3709_s22 }
  0x19   : > { %4557 = sst [smem:[#allocation20_spill]] %s3713_s2  ;;  %s47_s26 = sadd.s32 1, %s3713_s2 }
  0x1a   : > { %4558 = sst [smem:[#allocation21_spill]] %s3717_s23  ;;  %p45_p0 = scmp.ge.s32.totalorder %s44_s3, 2 }
  0x1b   : > { %s472_s27 = sadd.s32 1, %s3697_s20  ;;  %p482_p1 = scmp.ne.s32.totalorder %s3697_s20, %s3693_s30 }
  0x1c   : > { %p483_p2 = scmp.eq.s32.totalorder %s3018_s24, 3  ;;  %s4604_s3 = smov (%p45_p0, %s44_s3), 0 }
  0x1d   : > { %4559 = sst [smem:[#allocation22_spill]] %s4604_s3  ;;  %s4606_s26 = smov (!%p45_p0, %s47_s26), %s3713_s2 }
  0x1e   : > { %s468_s28 = ssub.s32 %s3709_s22, %s4604_s3  ;;  %p3889_p3 = por %p483_p2, %p482_p1 }
  0x1f   : > { %p49_p4 = scmp.ge.s32.totalorder %s4606_s26, 2  ;;  %p488_p5 = scmp.ne.s32.totalorder %s3693_s30, %s3689_s0 }
  0x20   : > { %s4560_s29 = scalar_select %p3889_p3, 1, 0 }
  0x21   : > { %p489_p6 = scmp.eq.s32.totalorder %s3019_s25, 3  ;;  %p3020_p7 = scmp.ge.s32.totalorder %s3717_s23, 1 }
  0x22   : > { %4561 = sst [smem:[#allocation23_spill]] %s4560_s29  ;;  %s4608_s26 = smov (%p49_p4, %s4606_s26), 0 }
  0x23   : > { %4562 = sst [smem:[#allocation24_spill]] %s4608_s26  ;;  %p3898_p8 = por %p489_p6, %p488_p5 }
  0x24   : > { %p496_p9 = scmp.lt.s32.totalorder %s3717_s23, 5  ;;  %s467_s8 = ssub.s32 %s3713_s2, %s4608_s26 }
  0x25   : > { %s4563_s19 = scalar_select %p3898_p8, 1, 0 }
  0x26   : > { %s469_s6 = sor.u32 %s468_s28, %s467_s8  ;;  %p3905_p10 = pnand %p3020_p7, %p496_p9 }
  0x27   : > { %4564 = sst [smem:[#allocation25_spill]] %s4563_s19  ;;  %p470_p11 = scmp.eq.s32.totalorder %s469_s6, 0 }
  0x28   : > { %s4565_s3 = scalar_select %p3905_p10, 1, 0 }
  0x29   : > { %p3909_p12 = scmp.eq.s32.totalorder %s3018_s24, 0  ;;  %p3372_p13 = pneg %p3905_p10 }
  0x2a   : > { %s3916_s25 = scalar_select %p470_p11, %s3697_s20, %s472_s27  }
  0x2b   : > { %s4566_s22 = scalar_select %p3909_p12, 1, 0 }
  0x2c   : > { %4567 = sst [smem:[#allocation26_spill]] %s3916_s25  ;;  %p3920_p0 = pnand %p3909_p12, %p3372_p13 }
  0x2d   : > { %s3719_s8 = smov [#allocation7]   ;;  %s4569_s7 = sld [smem:[#allocation33_spill]] }
  0x2e   : > { %s530_s28 = sshll.u32 %s3719_s8, 4  ;;  %p3932_p2 = pneg %p3920_p0  ;;  %s531_s28 = int_to_ptr.vmem [resolvable:$true] %s530_s28 }
  0x33   : > { %s3499_s24 = scalar_lea.hbm %s4569_s7, 512 }
  0x34   : > { %p3500_p1 = scmp.ne.s32.totalorder %s4569_s7, %s3499_s24  ;;  %p3506_p6 = scmp.lt.u32.totalorder %s3499_s24, %s4569_s7 }
  0x36   : > { %p3502_p4 = pnand %p3932_p2, %p3500_p1 }
  0x38   : > { %p3503_p5 = pneg %p3502_p4 }
  0x3a   : > { %p3508_p7 = pnand %p3506_p6, %p3503_p5 }
  0x3c   : > { %3511 = shalt.err (!%p3508_p7)
}
  0x3d   : > { %s3512_s26 = scalar_lea.vmem %s531_s28, 512  ;;  %p3520_p8 = scmp.lt.s32.totalorder %s531_s28, %s531_s28 }
  0x3e   : > { %p3513_p9 = scmp.ne.s32.totalorder %s531_s28, %s3512_s26  ;;  %p3521_p3 = scmp.lt.s32.totalorder %s3512_s26, %s3512_s26 }
  0x40   : > { %p3515_p11 = pnand %p3513_p9, %p3932_p2  ;;  %p3522_p12 = por %p3521_p3, %p3520_p8 }
  0x42   : > { %p3516_p13 = pneg %p3515_p11 }
  0x44   : > { %p3523_p10 = pnand %p3522_p12, %p3516_p13 }
  0x46   : > { %3526 = shalt.err (!%p3523_p10)
}
  0x47   : > { %s3720_s0 = smov 128   ;;  %s3721_s2 = smov 8  }
  0x48   : > { %3378 = dma.hbm_to_vmem [thread:$0]  (!%p3920_p0), %s4569_s7, 512, %s531_s28, [#allocation8], %s3720_s0, %s3720_s0, %s3721_s2  }
  0x49   : > { %s3722_s24 = smov [#allocation4]   ;;  %s3723_s20 = smov [#allocation9]  }
  0x4a   : > { %s514_s8 = sshll.u32 %s3722_s24, 4  ;;  %s546_s23 = sshll.u32 %s3723_s20, 4  ;;  %s515_s8 = int_to_ptr.vmem [resolvable:$true] %s514_s8  ;;  %s3951_s23 = int_to_ptr.vmem [resolvable:$true] %s546_s23 }
  0x4b   : > { %s4571_s5 = sld [smem:[#allocation31_spill]] }
  0x51   : > { %s3527_s18 = scalar_lea.hbm %s4571_s5, 512 }
  0x52   : > { %p3528_p3 = scmp.ne.s32.totalorder %s4571_s5, %s3527_s18  ;;  %p3534_p12 = scmp.lt.u32.totalorder %s3527_s18, %s4571_s5 }
  0x54   : > { %p3530_p8 = pnand %p3528_p3, %p3932_p2 }
  0x56   : > { %p3531_p10 = pneg %p3530_p8 }
  0x58   : > { %p3536_p1 = pnand %p3534_p12, %p3531_p10 }
  0x5a   : > { %3539 = shalt.err (!%p3536_p1)
}
  0x5b   : > { %s3540_s20 = scalar_lea.vmem %s515_s8, 512  ;;  %p3548_p7 = scmp.lt.s32.totalorder %s515_s8, %s515_s8 }
  0x5c   : > { %p3541_p4 = scmp.ne.s32.totalorder %s515_s8, %s3540_s20  ;;  %p3549_p9 = scmp.lt.s32.totalorder %s3540_s20, %s3540_s20 }
  0x5e   : > { %p3543_p5 = pnand %p3541_p4, %p3932_p2  ;;  %p3550_p11 = por %p3549_p9, %p3548_p7 }
  0x60   : > { %p3544_p6 = pneg %p3543_p5 }
  0x62   : > { %p3551_p13 = pnand %p3550_p11, %p3544_p6 }
  0x64   : > { %3554 = shalt.err (!%p3551_p13)
}
  0x65   : > { %3375 = dma.hbm_to_vmem [thread:$0]  (!%p3920_p0), %s4571_s5, 512, %s515_s8, [#allocation5], %s3720_s0, %s3720_s0, %s3721_s2  }
  0x66   : > { %s4572_s9 = sld [smem:[#allocation35_spill]] }
  0x6c   : > { %s3555_s6 = scalar_lea.hbm %s4572_s9, 512 }
  0x6d   : > { %p3556_p3 = scmp.ne.s32.totalorder %s4572_s9, %s3555_s6  ;;  %p3562_p12 = scmp.lt.u32.totalorder %s3555_s6, %s4572_s9 }
  0x6f   : > { %p3558_p8 = pnand %p3556_p3, %p3932_p2 }
  0x71   : > { %p3559_p10 = pneg %p3558_p8 }
  0x73   : > { %p3564_p1 = pnand %p3562_p12, %p3559_p10 }
  0x75   : > { %3567 = shalt.err (!%p3564_p1)
}
  0x76   : > { %s3568_s8 = scalar_lea.vmem %s3951_s23, 512  ;;  %p3576_p7 = scmp.lt.s32.totalorder %s3951_s23, %s3951_s23 }
  0x77   : > { %p3569_p4 = scmp.ne.s32.totalorder %s3951_s23, %s3568_s8  ;;  %p3577_p9 = scmp.lt.s32.totalorder %s3568_s8, %s3568_s8 }
  0x79   : > { %p3571_p5 = pnand %p3569_p4, %p3932_p2  ;;  %p3578_p11 = por %p3577_p9, %p3576_p7 }
  0x7b   : > { %p3572_p6 = pneg %p3571_p5 }
  0x7d   : > { %p3579_p13 = pnand %p3578_p11, %p3572_p6 }
  0x7f   : > { %3582 = shalt.err (!%p3579_p13)
}
  0x80   : > { %3381 = dma.hbm_to_vmem [thread:$0]  (!%p3920_p0), %s4572_s9, 512, %s3951_s23, [#allocation8], %s3720_s0, %s3720_s0, %s3721_s2  }
  0x81   : > { %s3724_s17 = smov [#allocation10]   ;;  %s3583_s24 = scalar_lea.hbm %s4515_s11, 512 }
  0x82   : > { %s562_s18 = sshll.u32 %s3724_s17, 4  ;;  %p3584_p3 = scmp.ne.s32.totalorder %s4515_s11, %s3583_s24  ;;  %s563_s18 = int_to_ptr.vmem [resolvable:$true] %s562_s18 }
  0x83   : > { %p3590_p12 = scmp.lt.u32.totalorder %s3583_s24, %s4515_s11 }
  0x84   : > { %p3586_p8 = pnand %p3584_p3, %p3932_p2 }
  0x86   : > { %p3587_p10 = pneg %p3586_p8 }
  0x88   : > { %p3592_p1 = pnand %p3590_p12, %p3587_p10 }
  0x8a   : > { %3595 = shalt.err (!%p3592_p1)
}
  0x8b   : > { %s3596_s23 = scalar_lea.vmem %s563_s18, 512  ;;  %p3604_p7 = scmp.lt.s32.totalorder %s563_s18, %s563_s18 }
  0x8c   : > { %p3597_p4 = scmp.ne.s32.totalorder %s563_s18, %s3596_s23  ;;  %p3605_p9 = scmp.lt.s32.totalorder %s3596_s23, %s3596_s23 }
  0x8e   : > { %p3599_p5 = pnand %p3597_p4, %p3932_p2  ;;  %p3606_p11 = por %p3605_p9, %p3604_p7 }
  0x90   : > { %p3600_p6 = pneg %p3599_p5 }
  0x92   : > { %p3607_p13 = pnand %p3606_p11, %p3600_p6 }
  0x94   : > { %3610 = shalt.err (!%p3607_p13)
}
  0x95   : > { %3384 = dma.hbm_to_vmem [thread:$0]  (!%p3920_p0), %s4515_s11, 512, %s563_s18, [#allocation11], %s3720_s0, %s3720_s0, %s3721_s2  }
  0x96   : > { %p4573_p3 = scmp.ne.s32.totalorder %s4565_s3, 0 }
  0x97   : > { %p4574_p2 = scmp.ne.s32.totalorder (!%p4573_p3), %s4566_s22, 0 }
  0x98   : > { %624 = sbr.rel (%p4573_p3) target bundleno = 2945 (0xb81), region = 96 }
  0x9f   : > { %3672 = dma.done.wait (%p4574_p2), [#allocation5], 512  }
  0xa0   : > { %3674 = vsyncadd (%p4574_p2), [#allocation5], 4294966784 }
  0xa1   : > { %3676 = dma.done.wait (%p4574_p2), [#allocation8], 1024  }
  0xa2   : > { %3678 = vsyncadd (%p4574_p2), [#allocation8], 4294966272 }
  0xa3   : > { %3680 = dma.done.wait (%p4574_p2), [#allocation11], 512  }
  0xa4   : > { %3682 = vsyncadd (%p4574_p2), [#allocation11], 4294966784  ;;  %p703_p0 = scmp.lt.s32.totalorder %s3705_s1, 1  ;;  %p705_p8 = scmp.lt.s32.totalorder %s3701_s21, 1  ;;  %v4082_v6 = vld [vmem:[%s4508_s4] ss:$0 sm:$0xff] }
  0xa5   : > { %s4575_s6 = sld [smem:[#allocation28_spill]]  ;;  %s4576_s28 = sld [smem:[#allocation29_spill]]  ;;  %v4084_v7 = vld [vmem:[#allocation9] sm:$0xff]  ;;  %v4086_v8 = vld [vmem:[#allocation9 + $0x8] sm:$0xff]  ;;  %v4088_v9 = vld [vmem:[#allocation9 + $0x10] sm:$0xff] }
  0xa6   : > { %s704_s3 = scalar_select %p703_p0, %s3705_s1, 1  ;;  %v4090_v10 = vld [vmem:[#allocation9 + $0x18] sm:$0xff]  ;;  %v4095_v11 = vld [vmem:[%s4514_s10] ss:$0 sm:$0xff]  ;;  %v4099_v13 = vld [vmem:[#allocation10 + $0x8] sm:$0xff] }
  0xa7   : > { %s706_s27 = scalar_select %p705_p8, %s3701_s21, 1  ;;  %v4097_v12 = vld [vmem:[#allocation10] sm:$0xff]  ;;  %v4101_v14 = vld [vmem:[#allocation10 + $0x10] sm:$0xff]  ;;  %v4103_v15 = vld [vmem:[#allocation10 + $0x18] sm:$0xff] }
  0xa8   : > { %s3032_s0 = sshll.u32 %s704_s3, 1  ;;  %s3089_s2 = sshll.u32 %s704_s3, 4  ;;  %v4108_v16 = vld [vmem:[%s4516_s12] ss:$0 sm:$0xff]  ;;  %v4118_v18 = vld [vmem:[%s4517_s13 + $0x8] sm:$0xff]  ;;  %v4123_v19 = vld [vmem:[%s4517_s13 + $0x10] sm:$0xff] }
  0xa9   : > { %s708_s17 = sadd.s32 %s3032_s0, %s706_s27  ;;  %s4577_s16 = sld [smem:[#allocation27_spill]]  ;;  %v4113_v17 = vld [vmem:[%s4517_s13] sm:$0xff]  ;;  %v4128_v20 = vld [vmem:[%s4517_s13 + $0x18] sm:$0xff]  ;;  %v4138_v22 = vld [vmem:[%s4517_s13 + $0x28] sm:$0xff] }
  0xaa   : > { %s3033_s22 = sshll.u32 %s708_s17, 3  ;;  %s4578_s9 = sld [smem:[#allocation30_spill]]  ;;  %v4133_v21 = vld [vmem:[%s4517_s13 + $0x20] sm:$0xff]  ;;  %v4143_v23 = vld [vmem:[%s4517_s13 + $0x30] sm:$0xff]  ;;  %v4148_v24 = vld [vmem:[%s4517_s13 + $0x38] sm:$0xff] }
  0xab   : > { %s4043_s24 = scalar_lea.vmem %s4575_s6, %s3089_s2  ;;  %s718_s8 = scalar_lea.vmem %s4576_s28, %s704_s3  ;;  %v4153_v25 = vld [vmem:[%s4518_s14] ss:$0 sm:$0xff] }
  0xac   : > { %v4051_v0 = vld [vmem:[%s718_s8] ss:$0 sm:$0xff]  ;;  %s4579_s2 = sand.u32 1, %s3693_s30   ;;  %s4582_s29 = sld [smem:[#allocation38_spill]] }
  0xad   : > { %s4065_s17 = sshll.u32 %s4579_s2, 3  ;;  %v4158_v26 = vld [vmem:[%s4519_s15] ss:$0 sm:$0xff]  ;;  %s4581_s2 = sld [smem:[#allocation37_spill]] }
  0xae   : > { %s702_s6 = scalar_lea.vmem [#allocation12], %s4065_s17  ;;  %p3036_p10 = scmp.ne.s32.totalorder %s3701_s21, 0 }
  0xaf   : > { %s710_s5 = scalar_lea.vmem %s4577_s16, %s3033_s22  ;;  %s4580_s16 = sld [smem:[#allocation36_spill]]  ;;  %v755_v30 = vld [vmem:[#allocation4] sm:$0xff] (!%p3036_p10)  ;;  %v756_v31 = vld [vmem:[#allocation4 + $0x8] sm:$0xff] (!%p3036_p10)  ;;  %vm771_vm0 = vcmask (!%p3036_p10), 261120   ;;  %v757_v35 = vld [vmem:[#allocation4 + $0x10] sm:$0xff] (!%p3036_p10) }
  0xb0   : > { %v4056_v1 = vld [vmem:[%s4578_s9] sm:$0xff]  ;;  %v4061_v2 = vld [vmem:[%s4578_s9 + $0x8] sm:$0xff]  ;;  %v4072_v4 = vld [vmem:[%s4578_s9 + $0x10] sm:$0xff]  ;;  %752 = sbr.rel (%p3036_p10) target bundleno = 407 (0x197), region = 116  ;;  %v3280_v33 = vpack.c.bf16 (!%p3036_p10), %v756_v31, %v755_v30  ;;  %s4584_s25 = sld [smem:[#allocation34_spill]] (!%p3036_p10) }
  0xb1   : > { %v4067_v3 = vld [vmem:[%s710_s5] sm:$0xff]  ;;  %v4077_v5 = vld [vmem:[%s4578_s9 + $0x18] sm:$0xff]  ;;  %v761_v34 = vld [vmem:[#allocation7 + $0x8] sm:$0xff] (!%p3036_p10)  ;;  %s4583_s5 = sld [smem:[#allocation32_spill]] (!%p3036_p10) }
  0xb2   : > { %v4173_v29 = vld [vmem:[%s4582_s29] ss:$0 sm:$0xff]  ;;  %v758_v36 = vld [vmem:[#allocation4 + $0x18] sm:$0xff] (!%p3036_p10)  ;;  %v762_v39 = vld [vmem:[#allocation7 + $0x10] sm:$0xff] (!%p3036_p10)  ;;  %3281 = vmatprep.subr.bf16.mxu0 (!%p3036_p10), %v3280_v33 }
  0xb3   : > { %v4168_v28 = vld [vmem:[%s4581_s2] ss:$0 sm:$0xff]  ;;  %v3284_v38 = vpack.c.bf16 (!%p3036_p10), %v758_v36, %v757_v35  ;;  %v763_v40 = vld [vmem:[#allocation7 + $0x18] sm:$0xff] (!%p3036_p10)  ;;  %3283 = vmatpush3.bf16.msra.mxu0 (!%p3036_p10), %v3280_v33  ;;  %v754_v43 = vld [vmem:[%s4043_s24 + $0x8] sm:$0xff] (!%p3036_p10) }
  0xb4   : > { %v760_v32 = vld [vmem:[#allocation7] sm:$0xff] (!%p3036_p10)  ;;  %v3292_v42 = vpack.c.bf16 (!%p3036_p10), %v763_v40, %v762_v39 }
  0xb5   : > { %v4163_v27 = vld [vmem:[%s4580_s16] ss:$0 sm:$0xff]  ;;  %v3288_v37 = vpack.c.bf16 (!%p3036_p10), %v761_v34, %v760_v32  ;;  %3285 = vmatprep.subr.bf16.mxu0 (!%p3036_p10), %v3284_v38 }
  0xb6   : > { %v753_v41 = vld [vmem:[%s4043_s24] sm:$0xff] (!%p3036_p10) }
  0xb7   : > { %3158 = vmatprep.mubr.msk.f32.mxu0 %vm771_vm0, %v753_v41  ;;  %3289 = vmatprep.subr.bf16.mxu1 %v3288_v37  ;;  %v3037_v44 = vld [vmem:[%s4583_s5] ss:$0 sm:$0xff] }
  0xb8   : > { %3291 = vmatpush3.bf16.msra.mxu1 %v3288_v37  ;;  %3169 = vmatprep.mubr.msk.f32.mxu1 %vm771_vm0, %v753_v41  ;;  %v3040_v45 = vld [vmem:[%s4584_s25] ss:$0 sm:$0xff] }
  0xb9   : > { %3293 = vmatprep.subr.bf16.mxu1 %v3292_v42  ;;  %3287 = vmatpush3.bf16.msra.mxu0 %v3284_v38 }
  0xbc   : > { %3295 = vmatpush3.bf16.msra.mxu1 %v3292_v42  ;;  %3159 = vmatmul.mubr.msk.f32.vlgmr.msra.gmra.mrb[0].mxu0 %vm771_vm0, %v754_v43 }
  0xbf   : > { %3170 = vmatmul.mubr.msk.f32.vlgmr.msra.gmra.mrb[0].mxu1 %vm771_vm0, %v754_v43 }
 0x18f   : > { %v3160_v46 = vpop.f32.mrb[0].mxu0 }
 0x190   : > { %v850_v47 = vadd.f32 %v3160_v46, %v3037_v44  ;;  %v844_v49 = vpop.f32.mrb[1].mxu0 }
 0x191   : > { %v845_v51 = vadd.f32 %v3037_v44, %v844_v49 }
 0x192   : > { %v3171_v48 = vpop.f32.mrb[0].mxu1  ;;  %854 = vst.msk [vmem:[#allocation2 + $0x8] sm:$0xff] %vm771_vm0, %v850_v47 }
 0x193   : > { %v933_v50 = vadd.f32 %v3171_v48, %v3040_v45  ;;  %v927_v52 = vpop.f32.mrb[1].mxu1  ;;  %853 = vst.msk [vmem:[#allocation2] sm:$0xff] %vm771_vm0, %v845_v51 }
 0x194   : > { %v928_v53 = vadd.f32 %v3040_v45, %v927_v52 }
 0x195   : > { %937 = vst.msk [vmem:[#allocation3 + $0x8] sm:$0xff] %vm771_vm0, %v933_v50 }
 0x196   : > { %936 = vst.msk [vmem:[#allocation3] sm:$0xff] %vm771_vm0, %v928_v53 }
 0x197 PF: > { %v3297_v54 = vpack.c.bf16 %v4061_v2, %v4056_v1  ;;  %v3725_v56 = vmov 0.0|0.0   ;;  %s3726_s24 = smov 112   ;;  %v3300_v57 = vpack.c.bf16 %v4077_v5, %v4072_v4  ;;  %vm3727_vm1 = vmmov 0   ;;  %s3729_s28 = smov 120  }
 0x198   : > { %3296 = vmatprep.subr.bf16.mxu1 %v3725_v56  ;;  %v3728_v58 = vmov 0.0   ;;  %3306 = vmatprep.subr.bf16.mxu0 %v3725_v56  ;;  %vm944_vm2 = vcmask 261120   ;;  %s3730_s8 = smov 104   ;;  %v3731_v60 = vmov 1983009808   ;;  %v1034_v62 = vlaneseq  ;;  %s3733_s23 = smov 16  }
 0x199   : > { %3298 = vmatpush3.bf16.msra.mxu1 %v3297_v54  ;;  %3180 = vmatprep.mubr.msk.f32.mxu1 %vm3727_vm1, %v3728_v58  ;;  %v1166_v59 = vld [vmem:[#allocation2 + $0x8] sm:$0xff]  ;;  %v1032_v61 = vunpack.c.l.s4 %v3731_v60  ;;  %v3732_v5 = vmov 1934713408   ;;  %vm1759_vm3 = vcmask 64512   ;;  %vm2076_vm5 = vcmask 130048   ;;  %s3734_s20 = smov 8  }
 0x19a   : > { %v1165_v55 = vld [vmem:[#allocation2] sm:$0xff]  ;;  %3299 = vmatprep.subr.bf16.mxu1 %v3725_v56  ;;  %3194 = vmatprep.mubr.msk.f32.mxu0 %vm3727_vm1, %v3728_v58  ;;  %v1035_v2 = vshrl.u32 %v1034_v62, 7  ;;  %v1064_v30 = vunpack.c.l.s4 %v3732_v5  ;;  %vm4253_vm4 = vmpackc.low %vm1759_vm3, %vm1759_vm3  ;;  %s3735_s16 = smov 24   ;;  %vm2563_vm6 = vcmask 195584   ;;  %vm2759_vm7 = vcmask 523264   ;;  %s4587_s27 = sld [smem:[#allocation23_spill]] }
 0x19b   : > { %1175 = vrot.lane.b32.xlu1 %v1165_v55, %s3726_s24  ;;  %1169 = vrot.lane.b32.xlu0 %v1165_v55, %s3729_s28  ;;  %v1033_v1 = vunpack.c.0.s8 %v1032_v61  ;;  %s3085_s0 = sshll.u32 %s3705_s1, 1  ;;  %s2878_s18 = sshll.u32 %s702_s6, 4  ;;  %s4448_s18 = int_to_ptr.vmem [resolvable:$true] %s2878_s18 }
 0x19c   : > { %v1065_v36 = vunpack.c.0.s8 %v1064_v30  ;;  %s2874_s2 = sadd.s32 %s3701_s21, %s3085_s0  ;;  %s4588_s19 = sld [smem:[#allocation39_spill]] }
 0x19d   : > { %3301 = vmatpush3.bf16.msra.mxu1 %v3300_v57  ;;  %v4215_v32 = vsub.s32 %v1033_v1, %v1035_v2  ;;  %s3086_s3 = sshll.u32 %s2874_s2, 7  ;;  %s4589_s21 = sand.u32 1, %s3693_s30  }
 0x19e   : > { %3302 = vmatprep.subr.bf16.mxu1 %v3725_v56  ;;  %v4219_v44 = vsub.s32 %v1065_v36, %v1035_v2  ;;  %s2863_s1 = scalar_lea.sflag [#allocation6], %s4589_s21  ;;  %s3611_s22 = scalar_lea.vmem %s4448_s18, 128 }
 0x19f   : > { %1177 = vrot.lane.b32.xlu1 %v1166_v59, %s3726_s24  ;;  %1171 = vrot.lane.b32.xlu0 %v1166_v59, %s3729_s28  ;;  %p3612_p12 = scmp.ne.s32.totalorder %s4448_s18, %s3611_s22  ;;  %s3736_s26 = smov [#allocation12]  }
 0x1a0   : > { %3181 = vmatmul.mubr.msk.f32.vlgmr.msra.gmra.mrb[0].mxu1 %vm944_vm2, %v4067_v3  ;;  %p4590_p1 = scmp.ne.s32.totalorder %s4587_s27, 0  ;;  %s3615_s25 = sshll.u32 %s3736_s26, 4  ;;  %s3616_s25 = int_to_ptr.vmem [resolvable:$false] %s3615_s25 }
 0x1a1   : > { %3187 = vmatprep.mubr.msk.f32.mxu1 %vm3727_vm1, %v3728_v58  ;;  %p3618_p6 = scmp.lt.s32.totalorder %s4448_s18, %s3616_s25 }
 0x1a2   : > { %s4446_s5 = scalar_lea.hbm %s4588_s19, %s3086_s3  ;;  %p3613_p4 = pnand %p3612_p12, %p4590_p1 }
 0x1a3   : > { %1183 = vrot.lane.b32.xlu1 %v1166_v59, %s3730_s8  ;;  %1181 = vrot.lane.b32.xlu0 %v1165_v55, %s3730_s8 }
 0x1a4   : > { %p3614_p5 = pneg %p3613_p4 }
 0x20d   : > { %v1176_v63 = vpop.permute.xlu1 %1175  ;;  %v1170_v4 = vpop.permute.xlu0 %1169 }
 0x20e   : > { %v1187_v37 = vcombine.low %v1165_v55, %v1176_v63  ;;  %v1188_v38 = vcombine.high %v1165_v55, %v1176_v63 }
 0x210   : > { %v1195_v50 = vrot.slane %v1187_v37, %v4215_v32  ;;  %v1202_v51 = vrot.slane %v1188_v38, %v4215_v32 }
 0x211   : > { %v1178_v31 = vpop.permute.xlu1 %1177  ;;  %v1172_v35 = vpop.permute.xlu0 %1171 }
 0x212   : > { %v1255_v33 = vcombine.low %v1166_v59, %v1178_v31  ;;  %v1256_v34 = vcombine.high %v1166_v59, %v1178_v31 }
 0x214   : > { %v1263_v40 = vrot.slane %v1255_v33, %v4215_v32  ;;  %v1270_v41 = vrot.slane %v1256_v34, %v4215_v32 }
 0x215   : > { %v1184_v39 = vpop.permute.xlu1 %1183  ;;  %v1182_v45 = vpop.permute.xlu0 %1181 }
 0x216   : > { %v1271_v42 = vcombine.low %v1172_v35, %v1184_v39  ;;  %v1272_v43 = vcombine.high %v1172_v35, %v1184_v39  ;;  %v1203_v48 = vcombine.low %v1170_v4, %v1182_v45  ;;  %v1204_v49 = vcombine.high %v1170_v4, %v1182_v45 }
 0x218   : > { %v1279_v46 = vrot.slane %v1271_v42, %v4215_v32  ;;  %v1286_v47 = vrot.slane %v1272_v43, %v4215_v32  ;;  %v1211_v57 = vrot.slane %v1203_v48, %v4215_v32  ;;  %v1218_v59 = vrot.slane %v1204_v49, %v4215_v32 }
 0x21a   : > { %v1287_v52 = vcombine.low %v1263_v40, %v1279_v46  ;;  %v1288_v53 = vcombine.high %v1263_v40, %v1279_v46  ;;  %v1303_v54 = vcombine.low %v1270_v41, %v1286_v47  ;;  %v1304_v55 = vcombine.high %v1270_v41, %v1286_v47 }
 0x21b   : > { %v1219_v1 = vcombine.low %v1195_v50, %v1211_v57  ;;  %v1220_v2 = vcombine.high %v1195_v50, %v1211_v57  ;;  %v1235_v4 = vcombine.low %v1202_v51, %v1218_v59  ;;  %v1236_v5 = vcombine.high %v1202_v51, %v1218_v59 }
 0x21c   : > { %v1295_v60 = vrot.slane %v1287_v52, %v4219_v44  ;;  %v1302_v61 = vrot.slane %v1288_v53, %v4219_v44  ;;  %v1311_v62 = vrot.slane %v1303_v54, %v4219_v44  ;;  %v1318_v63 = vrot.slane %v1304_v55, %v4219_v44 }
 0x21d   : > { %v1227_v35 = vrot.slane %v1219_v1, %v4219_v44  ;;  %v1234_v36 = vrot.slane %v1220_v2, %v4219_v44  ;;  %v1243_v37 = vrot.slane %v1235_v4, %v4219_v44  ;;  %v1250_v38 = vrot.slane %v1236_v5, %v4219_v44 }
 0x21e   : > { %v1391_v30 = vcombine.low %v1295_v60, %v1302_v61  ;;  %v3049_v31 = vcombine.high %v1295_v60, %v1302_v61  ;;  %v1407_v33 = vcombine.low %v1311_v62, %v1318_v63  ;;  %v3050_v34 = vcombine.high %v1311_v62, %v1318_v63 }
 0x21f   : > { %v1323_v43 = vcombine.low %v1227_v35, %v1234_v36  ;;  %v3047_v45 = vcombine.high %v1227_v35, %v1234_v36  ;;  %v1339_v46 = vcombine.low %v1243_v37, %v1250_v38  ;;  %v3048_v47 = vcombine.high %v1243_v37, %v1250_v38 }
 0x220   : > { %v1398_v39 = vrot.slane %v1391_v30, %v4215_v32  ;;  %v1406_v40 = vrot.slane %v3049_v31, %v4215_v32  ;;  %v1414_v41 = vrot.slane %v1407_v33, %v4215_v32  ;;  %v1422_v42 = vrot.slane %v3050_v34, %v4215_v32 }
 0x221   : > { %v1330_v50 = vrot.slane %v1323_v43, %v4215_v32  ;;  %v1338_v51 = vrot.slane %v3047_v45, %v4215_v32  ;;  %v1346_v52 = vrot.slane %v1339_v46, %v4215_v32  ;;  %v1354_v53 = vrot.slane %v3048_v47, %v4215_v32 }
 0x222   : > { %v1424_v48 = vcombine.high %v1398_v39, %v1406_v40  ;;  %v1440_v49 = vcombine.high %v1414_v41, %v1422_v42  ;;  %v1423_v57 = vcombine.low %v1398_v39, %v1406_v40  ;;  %v1439_v59 = vcombine.low %v1414_v41, %v1422_v42 }
 0x223   : > { %v1356_v54 = vcombine.high %v1330_v50, %v1338_v51  ;;  %v1372_v55 = vcombine.high %v1346_v52, %v1354_v53  ;;  %v1355_v60 = vcombine.low %v1330_v50, %v1338_v51  ;;  %v1371_v61 = vcombine.low %v1346_v52, %v1354_v53 }
 0x224   : > { %v1431_v62 = vrot.slane %v1423_v57, %v4219_v44  ;;  %v1447_v63 = vrot.slane %v1439_v59, %v4219_v44  ;;  %v1438_v4 = vrot.slane %v1424_v48, %v4219_v44  ;;  %v1454_v5 = vrot.slane %v1440_v49, %v4219_v44 }
 0x225   : > { %v1363_v1 = vrot.slane %v1355_v60, %v4219_v44  ;;  %v1379_v2 = vrot.slane %v1371_v61, %v4219_v44  ;;  %v1370_v30 = vrot.slane %v1356_v54, %v4219_v44  ;;  %v1386_v31 = vrot.slane %v1372_v55, %v4219_v44 }
 0x226   : > { %v1455_v34 = vcombine.low %v1431_v62, %v1447_v63  ;;  %v1456_v36 = vcombine.high %v1431_v62, %v1447_v63  ;;  %v1457_v38 = vcombine.low %v1438_v4, %v1454_v5  ;;  %v1458_v40 = vcombine.high %v1438_v4, %v1454_v5 }
 0x227   : > { %v1387_v33 = vcombine.low %v1363_v1, %v1379_v2  ;;  %v1388_v35 = vcombine.high %v1363_v1, %v1379_v2  ;;  %v1389_v37 = vcombine.low %v1370_v30, %v1386_v31  ;;  %v1390_v39 = vcombine.high %v1370_v30, %v1386_v31 }
 0x229   : > { %v3303_v41 = vpack.c.bf16 %v1455_v34, %v1387_v33  ;;  %v3307_v42 = vpack.c.bf16 %v1456_v36, %v1388_v35  ;;  %v3311_v45 = vpack.c.bf16 %v1457_v38, %v1389_v37  ;;  %v3315_v46 = vpack.c.bf16 %v1458_v40, %v1390_v39 }
 0x22b   : > { %3305 = vmatpush3.bf16.xpose.msk.msra.mxu1 %vm4253_vm4, %v3303_v41  ;;  %3309 = vmatpush3.bf16.xpose.msk.msra.mxu0 %vm4253_vm4, %v3307_v42 }
 0x22c   : > { %3310 = vmatprep.subr.bf16.mxu1 %v3725_v56  ;;  %3314 = vmatprep.subr.bf16.mxu0 %v3725_v56 }
 0x273   : > { %v1014_v47 = vpop.f32.mrb[0].mxu1 }
 0x274   : > { %v1015_v48 = vadd.f32 %v4082_v6, %v1014_v47  ;;  %v3182_v49 = vpop.f32.mrb[1].mxu1 }
 0x276   : > { %v1018_v50 = vmul.f32 0.35355338, %v1015_v48 }
 0x278   : > { %1023 = vrot.lane.b32.xlu1 %v1018_v50, %s3726_s24  ;;  %1020 = vrot.lane.b32.xlu0 %v1018_v50, %s3729_s28 }
 0x27c   : > { %1026 = vrot.lane.b32.xlu0 %v1018_v50, %s3730_s8 }
 0x2ea   : > { %v1024_v51 = vpop.permute.xlu1 %1023  ;;  %v1021_v52 = vpop.permute.xlu0 %1020 }
 0x2eb   : > { %v1029_v53 = vcombine.low %v1018_v50, %v1024_v51  ;;  %v1030_v54 = vcombine.high %v1018_v50, %v1024_v51 }
 0x2ed   : > { %v1037_v60 = vrot.slane %v1029_v53, %v4215_v32  ;;  %v1044_v61 = vrot.slane %v1030_v54, %v4215_v32 }
 0x2ee   : > { %v1027_v55 = vpop.permute.xlu0 %1026 }
 0x2ef   : > { %v1045_v57 = vcombine.low %v1021_v52, %v1027_v55  ;;  %v1046_v59 = vcombine.high %v1021_v52, %v1027_v55 }
 0x2f1   : > { %v1053_v6 = vrot.slane %v1045_v57, %v4215_v32  ;;  %v1060_v62 = vrot.slane %v1046_v59, %v4215_v32 }
 0x2f3   : > { %v1061_v63 = vcombine.low %v1037_v60, %v1053_v6  ;;  %v1062_v1 = vcombine.high %v1037_v60, %v1053_v6  ;;  %v1077_v2 = vcombine.low %v1044_v61, %v1060_v62  ;;  %v1078_v4 = vcombine.high %v1044_v61, %v1060_v62 }
 0x2f5   : > { %v1069_v5 = vrot.slane %v1061_v63, %v4219_v44  ;;  %v1076_v30 = vrot.slane %v1062_v1, %v4219_v44  ;;  %v1085_v31 = vrot.slane %v1077_v2, %v4219_v44  ;;  %v1092_v33 = vrot.slane %v1078_v4, %v4219_v44 }
 0x2f7   : > { %v1097_v34 = vcombine.low %v1069_v5, %v1076_v30  ;;  %v3045_v35 = vcombine.high %v1069_v5, %v1076_v30  ;;  %v1113_v36 = vcombine.low %v1085_v31, %v1092_v33  ;;  %v3046_v37 = vcombine.high %v1085_v31, %v1092_v33 }
 0x2f9   : > { %v1104_v38 = vrot.slane %v1097_v34, %v4215_v32  ;;  %v1112_v39 = vrot.slane %v3045_v35, %v4215_v32  ;;  %v1120_v40 = vrot.slane %v1113_v36, %v4215_v32  ;;  %v1128_v41 = vrot.slane %v3046_v37, %v4215_v32  ;;  %v1459_v35 = vld [vmem:[#allocation3] sm:$0xff]  ;;  %v1460_v36 = vld [vmem:[#allocation3 + $0x8] sm:$0xff] }
 0x2fb   : > { %v1129_v42 = vcombine.low %v1104_v38, %v1112_v39  ;;  %v1145_v47 = vcombine.low %v1120_v40, %v1128_v41  ;;  %v1130_v50 = vcombine.high %v1104_v38, %v1112_v39  ;;  %v1146_v51 = vcombine.high %v1120_v40, %v1128_v41 }
 0x2fd   : > { %v1137_v48 = vrot.slane %v1129_v42, %v4219_v44  ;;  %v1153_v49 = vrot.slane %v1145_v47, %v4219_v44  ;;  %v1144_v54 = vrot.slane %v1130_v50, %v4219_v44  ;;  %v1160_v55 = vrot.slane %v1146_v51, %v4219_v44 }
 0x2ff   : > { %v1161_v52 = vcombine.low %v1137_v48, %v1153_v49  ;;  %v1162_v53 = vcombine.high %v1137_v48, %v1153_v49  ;;  %v1163_v57 = vcombine.low %v1144_v54, %v1160_v55  ;;  %v1164_v59 = vcombine.high %v1144_v54, %v1160_v55 }
 0x301   : > { %3188 = vmatmul.mubr.msk.f32.vlgmr.msra.gmra.mrb[2].mxu1 %vm1759_vm3, %v1161_v52  ;;  %3195 = vmatmul.mubr.msk.f32.vlgmr.msra.gmra.mrb[0].mxu0 %vm1759_vm3, %v1162_v53 }
 0x302   : > { %3313 = vmatpush3.bf16.xpose.msk.msra.mxu1 %vm4253_vm4, %v3311_v45  ;;  %3317 = vmatpush3.bf16.xpose.msk.msra.mxu0 %vm4253_vm4, %v3315_v46 }
 0x303   : > { %3201 = vmatprep.mubr.msk.f32.mxu1 %vm3727_vm1, %v3728_v58  ;;  %3208 = vmatprep.mubr.msk.f32.mxu0 %vm3727_vm1, %v3728_v58 }
 0x304   : > { %3318 = vmatprep.subr.bf16.mxu1 %v3725_v56  ;;  %3324 = vmatprep.subr.bf16.mxu0 %v3725_v56 }
 0x309   : > { %3202 = vmatmul.mubr.msk.f32.vlgmr.msra.gmra.mrb[4].mxu1 %vm1759_vm3, %v1163_v57  ;;  %3209 = vmatmul.mubr.msk.f32.vlgmr.msra.gmra.mrb[2].mxu0 %vm1759_vm3, %v1164_v59 }
 0x30a   : > { %3215 = vmatprep.mubr.msk.f32.mxu1 %vm3727_vm1, %v3728_v58  ;;  %3229 = vmatprep.mubr.msk.f32.mxu0 %vm3727_vm1, %v3728_v58 }
 0x3d4   : > { %v1835_v43 = vpop.f32.mrb[2].mxu1  ;;  %v1914_v45 = vpop.f32.mrb[0].mxu0 }
 0x3d5   : > { %v1836_v46 = vadd.f32 %v4051_v0, %v1835_v43  ;;  %v1915_v60 = vadd.f32 %v4051_v0, %v1914_v45  ;;  %v3189_v61 = vpop.f32.mrb[3].mxu1  ;;  %v3196_v6 = vpop.f32.mrb[1].mxu0 }
 0x3d7   : > { %v2080_v62 = vsel %vm2076_vm5, %v1915_v60, -inf  ;;  %v2077_v63 = vsel %vm2076_vm5, %v1836_v46, -inf }
 0x3d8   : > { %2081 = vmax.xlane.f32.xlu0 %v2080_v62  ;;  %2078 = vmax.xlane.f32.xlu1 %v2077_v63 }
 0x3dc   : > { %v1993_v1 = vpop.f32.mrb[4].mxu1  ;;  %v2072_v2 = vpop.f32.mrb[2].mxu0 }
 0x3dd   : > { %v1994_v4 = vadd.f32 %v4051_v0, %v1993_v1  ;;  %v2073_v5 = vadd.f32 %v4051_v0, %v2072_v2  ;;  %v3203_v30 = vpop.f32.mrb[5].mxu1  ;;  %v3210_v31 = vpop.f32.mrb[3].mxu0 }
 0x3df   : > { %v2086_v33 = vsel %vm2076_vm5, %v2073_v5, -inf  ;;  %v2083_v34 = vsel %vm2076_vm5, %v1994_v4, -inf }
 0x3e0   : > { %2087 = vmax.xlane.f32.xlu1 %v2086_v33  ;;  %2084 = vmax.xlane.f32.xlu0 %v2083_v34 }
 0x3f1   : > { %1463 = vrot.lane.b32.xlu1 %v1459_v35, %s3729_s28 }
 0x3f5   : > { %1469 = vrot.lane.b32.xlu1 %v1459_v35, %s3726_s24 }
 0x3f6   : > { %1465 = vrot.lane.b32.xlu0 %v1460_v36, %s3729_s28 }
 0x3f9   : > { %1471 = vrot.lane.b32.xlu1 %v1460_v36, %s3726_s24  ;;  %s3617_s24 = scalar_lea.vmem %s3616_s25, 256 }
 0x3fa   : > { %1475 = vrot.lane.b32.xlu0 %v1459_v35, %s3730_s8  ;;  %p3619_p7 = scmp.lt.s32.totalorder %s3617_s24, %s3611_s22 }
 0x3fc   : > { %p3620_p9 = por %p3619_p7, %p3618_p6 }
 0x3fd   : > { %1477 = vrot.lane.b32.xlu1 %v1460_v36, %s3730_s8 }
 0x3fe   : > { %p3621_p11 = pnand %p3620_p9, %p3614_p5 }
 0x465   : > { %v2082_v0 = vpop.xlane.xlu0 %2081  ;;  %v2079_v37 = vpop.xlane.xlu1 %2078 }
 0x466   : > { %v2090_v38 = vsub.f32 %v1915_v60, %v2082_v0  ;;  %v2089_v39 = vsub.f32 %v1836_v46, %v2079_v37 }
 0x468   : > { %v2095_v40 = vmul.f32 1.442695, %v2090_v38  ;;  %v2093_v41 = vmul.f32 1.442695, %v2089_v39 }
 0x46a   : > { %3479 = vpow2.f32 %v2093_v41 }
 0x46b   : > { %3481 = vpow2.f32 %v2095_v40 }
 0x46d   : > { %v2088_v42 = vpop.xlane.xlu1 %2087  ;;  %v2085_v47 = vpop.xlane.xlu0 %2084 }
 0x46e   : > { %v2092_v48 = vsub.f32 %v2073_v5, %v2088_v42  ;;  %v2091_v49 = vsub.f32 %v1994_v4, %v2085_v47 }
 0x470   : > { %v2099_v50 = vmul.f32 1.442695, %v2092_v48  ;;  %v2097_v51 = vmul.f32 1.442695, %v2091_v49 }
 0x471   : > { %v1464_v52 = vpop.permute.xlu1 %1463  ;;  %v1466_v53 = vpop.permute.xlu0 %1465 }
 0x472   : > { %3483 = vpow2.f32 %v2099_v50 }
 0x473   : > { %3485 = vpow2.f32 %v2097_v51 }
 0x474   : > { %v4315_v54 = vpop.eup %3479 }
 0x475   : > { %v1470_v55 = vpop.permute.xlu1 %1469  ;;  %v1476_v57 = vpop.permute.xlu0 %1475  ;;  %v2101_v43 = vsel %vm2076_vm5, %v4315_v54, 0.0 }
 0x476   : > { %v4317_v59 = vpop.eup %3481  ;;  %v1481_v45 = vcombine.low %v1459_v35, %v1470_v55  ;;  %v1482_v46 = vcombine.high %v1459_v35, %v1470_v55  ;;  %v1497_v60 = vcombine.low %v1464_v52, %v1476_v57  ;;  %2102 = vadd.xlane.f32.xlu0 %v2101_v43  ;;  %v1498_v61 = vcombine.high %v1464_v52, %v1476_v57 }
 0x477   : > { %v2104_v1 = vsel %vm2076_vm5, %v4317_v59, 0.0 }
 0x478   : > { %v1489_v6 = vrot.slane %v1481_v45, %v4215_v32  ;;  %v1496_v62 = vrot.slane %v1482_v46, %v4215_v32  ;;  %v1505_v63 = vrot.slane %v1497_v60, %v4215_v32  ;;  %v1512_v4 = vrot.slane %v1498_v61, %v4215_v32 }
 0x479   : > { %v1472_v2 = vpop.permute.xlu1 %1471 }
 0x47a   : > { %v1549_v5 = vcombine.low %v1460_v36, %v1472_v2  ;;  %v1550_v30 = vcombine.high %v1460_v36, %v1472_v2  ;;  %v1513_v31 = vcombine.low %v1489_v6, %v1505_v63  ;;  %v1514_v33 = vcombine.high %v1489_v6, %v1505_v63  ;;  %2105 = vadd.xlane.f32.xlu0 %v2104_v1 }
 0x47b   : > { %v1529_v34 = vcombine.low %v1496_v62, %v1512_v4  ;;  %v1530_v35 = vcombine.high %v1496_v62, %v1512_v4 }
 0x47c   : > { %v4327_v0 = vpop.eup %3483  ;;  %v1557_v37 = vrot.slane %v1549_v5, %v4215_v32  ;;  %v1521_v38 = vrot.slane %v1513_v31, %v4219_v44  ;;  %v1528_v39 = vrot.slane %v1514_v33, %v4219_v44  ;;  %v1564_v36 = vrot.slane %v1550_v30, %v4215_v32 }
 0x47d   : > { %v4332_v40 = vpop.eup %3485  ;;  %v2110_v41 = vsel %vm2076_vm5, %v4327_v0, 0.0  ;;  %v1478_v42 = vpop.permute.xlu1 %1477  ;;  %v1537_v47 = vrot.slane %v1529_v34, %v4219_v44  ;;  %v1544_v48 = vrot.slane %v1530_v35, %v4219_v44 }
 0x47e   : > { %v2107_v49 = vsel %vm2076_vm5, %v4332_v40, 0.0  ;;  %v1565_v50 = vcombine.low %v1466_v53, %v1478_v42  ;;  %v1566_v51 = vcombine.high %v1466_v53, %v1478_v42  ;;  %v1617_v52 = vcombine.low %v1521_v38, %v1528_v39  ;;  %2111 = vadd.xlane.f32.xlu0 %v2110_v41 }
 0x47f   : > { %2108 = vadd.xlane.f32.xlu1 %v2107_v49  ;;  %v3051_v55 = vcombine.high %v1521_v38, %v1528_v39  ;;  %v1633_v57 = vcombine.low %v1537_v47, %v1544_v48  ;;  %v3052_v43 = vcombine.high %v1537_v47, %v1544_v48 }
 0x480   : > { %v1573_v45 = vrot.slane %v1565_v50, %v4215_v32  ;;  %v1580_v46 = vrot.slane %v1566_v51, %v4215_v32  ;;  %v1624_v60 = vrot.slane %v1617_v52, %v4215_v32 }
 0x481   : > { %v1632_v61 = vrot.slane %v3051_v55, %v4215_v32  ;;  %v1640_v6 = vrot.slane %v1633_v57, %v4215_v32  ;;  %v1648_v62 = vrot.slane %v3052_v43, %v4215_v32 }
 0x482   : > { %v1581_v63 = vcombine.low %v1557_v37, %v1573_v45  ;;  %v1582_v53 = vcombine.high %v1557_v37, %v1573_v45  ;;  %v1597_v1 = vcombine.low %v1564_v36, %v1580_v46  ;;  %v1598_v2 = vcombine.high %v1564_v36, %v1580_v46 }
 0x483   : > { %v1649_v4 = vcombine.low %v1624_v60, %v1632_v61  ;;  %v1665_v5 = vcombine.low %v1640_v6, %v1648_v62  ;;  %v1650_v30 = vcombine.high %v1624_v60, %v1632_v61  ;;  %v1666_v31 = vcombine.high %v1640_v6, %v1648_v62 }
 0x484   : > { %v1589_v33 = vrot.slane %v1581_v63, %v4219_v44  ;;  %v1596_v34 = vrot.slane %v1582_v53, %v4219_v44  ;;  %v1605_v35 = vrot.slane %v1597_v1, %v4219_v44  ;;  %v1612_v38 = vrot.slane %v1598_v2, %v4219_v44 }
 0x485   : > { %v1657_v39 = vrot.slane %v1649_v4, %v4219_v44  ;;  %v1673_v41 = vrot.slane %v1665_v5, %v4219_v44  ;;  %v1664_v37 = vrot.slane %v1650_v30, %v4219_v44  ;;  %v1680_v36 = vrot.slane %v1666_v31, %v4219_v44 }
 0x486   : > { %v1685_v42 = vcombine.low %v1589_v33, %v1596_v34  ;;  %v3053_v47 = vcombine.high %v1589_v33, %v1596_v34  ;;  %v1701_v48 = vcombine.low %v1605_v35, %v1612_v38  ;;  %v3054_v49 = vcombine.high %v1605_v35, %v1612_v38 }
 0x487   : > { %v1682_v50 = vcombine.high %v1657_v39, %v1673_v41  ;;  %v1684_v51 = vcombine.high %v1664_v37, %v1680_v36  ;;  %v1681_v6 = vcombine.low %v1657_v39, %v1673_v41  ;;  %v1683_v62 = vcombine.low %v1664_v37, %v1680_v36 }
 0x488   : > { %v1692_v52 = vrot.slane %v1685_v42, %v4215_v32  ;;  %v1700_v55 = vrot.slane %v3053_v47, %v4215_v32  ;;  %v1708_v57 = vrot.slane %v1701_v48, %v4215_v32  ;;  %v1716_v43 = vrot.slane %v3054_v49, %v4215_v32 }
 0x48a   : > { %v1717_v45 = vcombine.low %v1692_v52, %v1700_v55  ;;  %v1733_v46 = vcombine.low %v1708_v57, %v1716_v43  ;;  %v1718_v60 = vcombine.high %v1692_v52, %v1700_v55  ;;  %v1734_v61 = vcombine.high %v1708_v57, %v1716_v43 }
 0x48c   : > { %v1725_v63 = vrot.slane %v1717_v45, %v4219_v44  ;;  %v1741_v53 = vrot.slane %v1733_v46, %v4219_v44  ;;  %v1732_v1 = vrot.slane %v1718_v60, %v4219_v44  ;;  %v1748_v2 = vrot.slane %v1734_v61, %v4219_v44 }
 0x48e   : > { %v1749_v4 = vcombine.low %v1725_v63, %v1741_v53  ;;  %v1751_v5 = vcombine.low %v1732_v1, %v1748_v2  ;;  %v1750_v30 = vcombine.high %v1725_v63, %v1741_v53  ;;  %v1752_v31 = vcombine.high %v1732_v1, %v1748_v2 }
 0x490   : > { %v3319_v33 = vpack.c.bf16 %v1749_v4, %v1681_v6  ;;  %v3325_v34 = vpack.c.bf16 %v1751_v5, %v1683_v62  ;;  %v3322_v35 = vpack.c.bf16 %v1750_v30, %v1682_v50  ;;  %v3328_v38 = vpack.c.bf16 %v1752_v31, %v1684_v51 }
 0x491   : > { %v3334_v31 = vpack.c.bf16 %v4090_v10, %v4088_v9 }
 0x492   : > { %3320 = vmatpush3.bf16.msra.mxu1 %v3319_v33  ;;  %3326 = vmatpush3.bf16.msra.mxu0 %v3325_v34 }
 0x493   : > { %3321 = vmatprep.subr.bf16.mxu1 %v3725_v56  ;;  %3330 = vmatprep.subr.bf16.mxu0 %v3725_v56 }
 0x503   : > { %v2103_v39 = vpop.xlane.xlu0 %2102 }
 0x504   : > { %3487 = vrcp.f32 %v2103_v39 }
 0x507   : > { %v2106_v41 = vpop.xlane.xlu0 %2105 }
 0x508   : > { %3489 = vrcp.f32 %v2106_v41 }
 0x50b   : > { %v2112_v36 = vpop.xlane.xlu0 %2111 }
 0x50c   : > { %v2109_v37 = vpop.xlane.xlu1 %2108 }
 0x50d   : > { %3491 = vrcp.f32 %v2109_v37 }
 0x50e   : > { %3493 = vrcp.f32 %v2112_v36  ;;  %v3488_v42 = vpop.eup %3487 }
 0x50f   : > { %v2117_v47 = vmul.f32 %v3488_v42, %v4315_v54 }
 0x511   : > { %3216 = vmatmul.mubr.msk.f32.vlgmr.msra.gmra.mrb[6].mxu1 %vm2076_vm5, %v2117_v47 }
 0x512   : > { %v3490_v48 = vpop.eup %3489  ;;  %3323 = vmatpush3.bf16.msra.mxu1 %v3322_v35  ;;  %3222 = vmatprep.mubr.msk.f32.mxu1 %vm3727_vm1, %v3728_v58 }
 0x513   : > { %v2118_v49 = vmul.f32 %v3490_v48, %v4317_v59  ;;  %3327 = vmatprep.subr.bf16.mxu1 %v3725_v56  ;;  %v3331_v59 = vpack.c.bf16 %v4086_v8, %v4084_v7 }
 0x515   : > { %3223 = vmatmul.mubr.msk.f32.vlgmr.msra.gmra.mrb[8].mxu1 %vm2076_vm5, %v2118_v49 }
 0x516   : > { %3329 = vmatpush3.bf16.msra.mxu1 %v3328_v38  ;;  %3236 = vmatprep.mubr.msk.f32.mxu1 %vm3727_vm1, %v3728_v58 }
 0x517   : > { %v3492_v50 = vpop.eup %3491  ;;  %3336 = vmatprep.subr.bf16.mxu1 %v3725_v56 }
 0x518   : > { %v3494_v51 = vpop.eup %3493  ;;  %v2119_v54 = vmul.f32 %v3492_v50, %v4332_v40 }
 0x519   : > { %v2120_v52 = vmul.f32 %v3494_v51, %v4327_v0 }
 0x51a   : > { %3230 = vmatmul.mubr.msk.f32.vlgmr.msra.gmra.mrb[4].mxu0 %vm2076_vm5, %v2119_v54 }
 0x51b   : > { %3237 = vmatmul.mubr.msk.f32.vlgmr.msra.gmra.mrb[10].mxu1 %vm2076_vm5, %v2120_v52  ;;  %3247 = vmatprep.mubr.msk.f32.mxu0 %vm3727_vm1, %v3728_v58 }
 0x51c   : > { %3258 = vmatprep.mubr.msk.f32.mxu1 %vm3727_vm1, %v3728_v58  ;;  %3332 = vmatpush3.bf16.msra.mxu0 %v3331_v59 }
 0x51d   : > { %3333 = vmatprep.subr.bf16.mxu0 %v3725_v56 }
 0x520   : > { %3335 = vmatpush3.bf16.msra.mxu0 %v3334_v31 }
 0x521   : > { %3342 = vmatprep.subr.bf16.mxu0 %v3725_v56 }
 0x5e4   : > { %v2190_v40 = vpop.f32.mrb[6].mxu1 }
 0x5e5   : > { %v3217_v55 = vpop.f32.mrb[7].mxu1 }
 0x5e8   : > { %v2263_v57 = vpop.f32.mrb[8].mxu1 }
 0x5e9   : > { %v3224_v0 = vpop.f32.mrb[9].mxu1 }
 0x5ed   : > { %v2336_v43 = vpop.f32.mrb[4].mxu0 }
 0x5ee   : > { %v2413_v45 = vcombine.low %v2190_v40, %v2336_v43  ;;  %v2414_v46 = vcombine.high %v2190_v40, %v2336_v43  ;;  %v3231_v60 = vpop.f32.mrb[5].mxu0  ;;  %v2409_v61 = vpop.f32.mrb[10].mxu1 }
 0x5ef   : > { %v2429_v6 = vcombine.low %v2263_v57, %v2409_v61  ;;  %v2430_v62 = vcombine.high %v2263_v57, %v2409_v61  ;;  %v3238_v63 = vpop.f32.mrb[11].mxu1 }
 0x5f0   : > { %v2421_v53 = vrot.slane %v2413_v45, %v4215_v32  ;;  %v2428_v1 = vrot.slane %v2414_v46, %v4215_v32 }
 0x5f1   : > { %v2437_v7 = vrot.slane %v2429_v6, %v4215_v32  ;;  %v2444_v8 = vrot.slane %v2430_v62, %v4215_v32 }
 0x5f3   : > { %v2445_v2 = vcombine.low %v2421_v53, %v2437_v7  ;;  %v2446_v4 = vcombine.high %v2421_v53, %v2437_v7  ;;  %v2461_v5 = vcombine.low %v2428_v1, %v2444_v8  ;;  %v2462_v30 = vcombine.high %v2428_v1, %v2444_v8 }
 0x5f5   : > { %v2453_v33 = vrot.slane %v2445_v2, %v4219_v44  ;;  %v2460_v34 = vrot.slane %v2446_v4, %v4219_v44  ;;  %v2469_v35 = vrot.slane %v2461_v5, %v4219_v44  ;;  %v2476_v38 = vrot.slane %v2462_v30, %v4219_v44 }
 0x5f6   : > { %v3337_v30 = vpack.c.bf16 %v4099_v13, %v4097_v12  ;;  %v3349_v12 = vpack.c.bf16 %v4138_v22, %v4133_v21 }
 0x5f7   : > { %v2481_v39 = vcombine.low %v2453_v33, %v2460_v34  ;;  %v3072_v41 = vcombine.high %v2453_v33, %v2460_v34  ;;  %v2497_v37 = vcombine.low %v2469_v35, %v2476_v38  ;;  %v3073_v36 = vcombine.high %v2469_v35, %v2476_v38 }
 0x5f8   : > { %3338 = vmatpush3.bf16.msra.mxu1 %v3337_v30 }
 0x5f9   : > { %v2488_v42 = vrot.slane %v2481_v39, %v4215_v32  ;;  %v2496_v47 = vrot.slane %v3072_v41, %v4215_v32  ;;  %v2504_v9 = vrot.slane %v2497_v37, %v4215_v32  ;;  %v2512_v10 = vrot.slane %v3073_v36, %v4215_v32  ;;  %3339 = vmatprep.subr.bf16.mxu1 %v3725_v56 }
 0x5fb   : > { %v2514_v48 = vcombine.high %v2488_v42, %v2496_v47  ;;  %v2530_v49 = vcombine.high %v2504_v9, %v2512_v10  ;;  %v2513_v50 = vcombine.low %v2488_v42, %v2496_v47  ;;  %v2529_v51 = vcombine.low %v2504_v9, %v2512_v10 }
 0x5fd   : > { %v2528_v54 = vrot.slane %v2514_v48, %v4219_v44  ;;  %v2544_v52 = vrot.slane %v2530_v49, %v4219_v44  ;;  %v2521_v59 = vrot.slane %v2513_v50, %v4219_v44  ;;  %v2537_v40 = vrot.slane %v2529_v51, %v4219_v44 }
 0x5ff   : > { %v2547_v55 = vcombine.low %v2528_v54, %v2544_v52  ;;  %v2546_v57 = vcombine.high %v2521_v59, %v2537_v40  ;;  %v2548_v0 = vcombine.high %v2528_v54, %v2544_v52  ;;  %v2545_v43 = vcombine.low %v2521_v59, %v2537_v40 }
 0x601   : > { %2554 = vrot.lane.b32.xlu1 %v2547_v55, %s3733_s23  ;;  %2550 = vrot.lane.b32.xlu0 %v2546_v57, %s3734_s20 }
 0x605   : > { %2558 = vrot.lane.b32.xlu1 %v2548_v0, %s3735_s16 }
 0x673   : > { %v2555_v32 = vpop.permute.xlu1 %2554  ;;  %v2551_v45 = vpop.permute.xlu0 %2550 }
 0x674   : > { %v2561_v46 = vsel %vm1759_vm3, %v2545_v43, %v2551_v45 }
 0x675   : > { %v2562_v61 = vsel %vm2076_vm5, %v2561_v46, %v2555_v32 }
 0x677   : > { %v2559_v60 = vpop.permute.xlu1 %2558 }
 0x678   : > { %v2564_v6 = vsel %vm2563_vm6, %v2562_v61, %v2559_v60 }
 0x679   : > { %3248 = vmatmul.mubr.msk.f32.vlgmr.msra.gmra.mrb[6].mxu0 %vm944_vm2, %v2564_v6 }
 0x67a   : > { %3277 = vmatprep.mubr.msk.f32.mxu0 %vm3727_vm1, %v3728_v58  ;;  %v3346_v58 = vpack.c.bf16 %v4128_v20, %v4123_v19  ;;  %v3352_v20 = vpack.c.bf16 %v4148_v24, %v4143_v23 }
 0x74c   : > { %v2640_v44 = vpop.f32.mrb[6].mxu0 }
 0x74d   : > { %v2641_v62 = vadd.f32 %v4095_v11, %v2640_v44  ;;  %v3249_v63 = vpop.f32.mrb[7].mxu0  ;;  %v3340_v11 = vpack.c.bf16 %v4103_v15, %v4101_v14 }
 0x74f   : > { %v2644_v53 = vadd.f32 %v2641_v62, %v4067_v3  ;;  %3341 = vmatpush3.bf16.msra.mxu1 %v3340_v11  ;;  %v3343_v3 = vpack.c.bf16 %v4118_v18, %v4113_v17 }
 0x751   : > { %v2645_v1 = vsel %vm944_vm2, %v2644_v53, 0.0  ;;  %3344 = vmatpush3.bf16.msra.mxu0 %v3343_v3 }
 0x752   : > { %2646 = vadd.xlane.f32.xlu0 %v2645_v1  ;;  %3345 = vmatprep.subr.bf16.mxu0 %v3725_v56 }
 0x755   : > { %3347 = vmatpush3.bf16.msra.mxu0 %v3346_v58 }
 0x756   : > { %3348 = vmatprep.subr.bf16.mxu0 %v3725_v56 }
 0x759   : > { %3350 = vmatpush3.bf16.msra.mxu0 %v3349_v12 }
 0x75a   : > { %3351 = vmatprep.subr.bf16.mxu0 %v3725_v56 }
 0x75d   : > { %3353 = vmatpush3.bf16.msra.mxu0 %v3352_v20 }
 0x7df   : > { %v2647_v7 = vpop.xlane.xlu0 %2646 }
 0x7e0   : > { %v2649_v8 = vmul.f32 0.03125, %v2647_v7 }
 0x7e2   : > { %v2650_v2 = vsub.f32 %v2644_v53, %v2649_v8 }
 0x7e4   : > { %v2651_v4 = vmul.f32 %v2650_v2, %v2650_v2 }
 0x7e6   : > { %v2652_v5 = vsel %vm944_vm2, %v2651_v4, 0.0 }
 0x7e7   : > { %2653 = vadd.xlane.f32.xlu1 %v2652_v5 }
 0x874   : > { %v2654_v13 = vpop.xlane.xlu1 %2653 }
 0x875   : > { %v2655_v14 = vmul.f32 0.03125, %v2654_v13 }
 0x877   : > { %v2656_v15 = vadd.f32 1e-05, %v2655_v14 }
 0x879   : > { %3495 = vrsqrt.f32 %v2656_v15 }
 0x883   : > { %v3496_v17 = vpop.eup %3495 }
 0x884   : > { %v2658_v18 = vmul.f32 %v3496_v17, %v2650_v2 }
 0x886   : > { %v2665_v31 = vmul.f32 %v4158_v26, %v2658_v18 }
 0x888   : > { %v2672_v19 = vadd.f32 %v4163_v27, %v2665_v31 }
 0x88a   : > { %3259 = vmatmul.mubr.msk.f32.vlgmr.msra.gmra.mrb[12].mxu1 %vm944_vm2, %v2672_v19 }
 0x95d   : > { %v2748_v21 = vpop.f32.mrb[12].mxu1 }
 0x95e   : > { %v2749_v22 = vadd.f32 %v4108_v16, %v2748_v21  ;;  %v3260_v56 = vpop.f32.mrb[13].mxu1 }
 0x960   : > { %v2752_v33 = vmax.f32 %v2749_v22, 0.0 }
 0x962   : > { %3278 = vmatmul.mubr.msk.f32.vlgmr.msra.gmra.mrb[8].mxu0 %vm2759_vm7, %v2752_v33 }
 0xa35   : > { %v2829_v34 = vpop.f32.mrb[8].mxu0 }
 0xa36   : > { %v2830_v35 = vadd.f32 %v4153_v25, %v2829_v34  ;;  %v3279_v26 = vpop.f32.mrb[9].mxu0 }
 0xa38   : > { %v2833_v27 = vadd.f32 %v2830_v35, %v2672_v19 }
 0xa3a   : > { %v2834_v38 = vsel %vm944_vm2, %v2833_v27, 0.0 }
 0xa3b   : > { %2835 = vadd.xlane.f32.xlu0 %v2834_v38 }
 0xac8   : > { %v2836_v23 = vpop.xlane.xlu0 %2835 }
 0xac9   : > { %v2837_v24 = vmul.f32 0.03125, %v2836_v23 }
 0xacb   : > { %v2838_v39 = vsub.f32 %v2833_v27, %v2837_v24 }
 0xacd   : > { %v2839_v41 = vmul.f32 %v2838_v39, %v2838_v39 }
 0xacf   : > { %v2840_v16 = vsel %vm944_vm2, %v2839_v41, 0.0 }
 0xad0   : > { %2841 = vadd.xlane.f32.xlu0 %v2840_v16 }
 0xb5d   : > { %v2842_v37 = vpop.xlane.xlu0 %2841 }
 0xb5e   : > { %v2843_v36 = vmul.f32 0.03125, %v2842_v37 }
 0xb60   : > { %v2844_v42 = vadd.f32 1e-05, %v2843_v36 }
 0xb62   : > { %3497 = vrsqrt.f32 %v2844_v42 }
 0xb6c   : > { %v3498_v25 = vpop.eup %3497 }
 0xb6d   : > { %v2846_v47 = vmul.f32 %v3498_v25, %v2838_v39 }
 0xb6f   : > { %v2853_v9 = vmul.f32 %v4168_v28, %v2846_v47 }
 0xb71   : > { %v2860_v10 = vadd.f32 %v4173_v29, %v2853_v9 }
 0xb73   : > { %2861 = vst.msk [vmem:[%s702_s6] sm:$0xff] %vm944_vm2, %v2860_v10 }
 0xb74   : > { %3624 = shalt.err (!%p3621_p11)
}
 0xb75   : > { %s3625_s17 = scalar_lea.hbm %s4446_s5, 128  ;;  %s3629_s8 = scalar_lea.hbm %s4588_s19, 512 }
 0xb76   : > { %p3626_p13 = scmp.ne.s32.totalorder %s4446_s5, %s3625_s17  ;;  %p3630_p0 = scmp.lt.u32.totalorder %s4446_s5, %s4588_s19 }
 0xb77   : > { %p3631_p8 = scmp.lt.u32.totalorder %s3629_s8, %s3625_s17  ;;  %p3633_p12 = scmp.lt.u32.totalorder %s3625_s17, %s4446_s5 }
 0xb78   : > { %p3627_p3 = pnand %p3626_p13, %p4590_p1 }
 0xb79   : > { %p3632_p10 = por %p3631_p8, %p3630_p0 }
 0xb7a   : > { %p3628_p2 = pneg %p3627_p3 }
 0xb7b   : > { %p3634_p4 = por %p3633_p12, %p3632_p10 }
 0xb7d   : > { %p3635_p5 = pnand %p3634_p4, %p3628_p2 }
 0xb7f   : > { %3638 = shalt.err (!%p3635_p5)
}
 0xb80   : > { %3370 = dma.vmem_to_hbm [thread:$0]  (%p4590_p1), %s4448_s18, 128, %s4446_s5, %s2863_s1  }
 0xb81 PF: > { %s4591_s16 = sld [smem:[#allocation21_spill]]  ;;  %s4592_s0 = sld [smem:[#allocation17_spill]] }
 0xb82   : > { %s4593_s2 = sld [smem:[#allocation25_spill]] }
 0xb87   : > { %p3397_p6 = scmp.ge.s32.totalorder %s4591_s16, 2  ;;  %s2890_s3 = sand.u32 1, %s4592_s0  }
 0xb88   : > { %p4594_p7 = scmp.ne.s32.totalorder %s4593_s2, 0  ;;  %s2891_s29 = scalar_lea.sflag [#allocation6], %s2890_s3 }
 0xb8a   : > { %p3386_p9 = pnand %p3397_p6, %p4594_p7 }
 0xb8c   : > { %3684 = dma.done.wait (!%p3386_p9), %s2891_s29, 128  }
 0xb8d   : > { %3686 = vsyncadd (!%p3386_p9), %s2891_s29, 4294967168  ;;  %s35_s23 = sadd.s32 1, %s4591_s16   ;;  %s4595_s7 = sld [smem:[#allocation18_spill]] }
 0xb8e   : > { %p32_p11 = scmp.ge.s32.totalorder %s35_s23, 6   ;;  %s4596_s20 = sld [smem:[#allocation26_spill]] }
 0xb8f   : > { %s4597_s21 = sld [smem:[#allocation19_spill]]  ;;  %s4598_s1 = sld [smem:[#allocation20_spill]] }
 0xb90   : > { %s4599_s22 = sld [smem:[#allocation22_spill]]  ;;  %s4600_s2 = sld [smem:[#allocation24_spill]] }
 0xb91   : > { %s4601_s0 = smov %s3693_s30  ;;  %34 = sbr.rel (!%p32_p11) target bundleno = 22 (0x16), region = 158 }
 0xb93   : > { %s4602_s30 = smov %s4595_s7 }
 0xb98   :  { %2896 = vsyncpa [#allocation5], 1 }
 0xb99   :  { %2898 = vsyncpa [#allocation5 + $0x1], 1 }
 0xb9a   :  { %2899 = vsyncpa [#allocation8], 1 }
 0xb9b   :  { %2900 = vsyncpa [#allocation11], 1 }
 0xb9c   :  { %2901 = vsyncpa [#allocation6], 1 }
 0xb9d   :  { %2903 = vsyncpa [#allocation6 + $0x1], 1 }

</bundles_post_ra>
